<compile_context>
chip_gen: v7x
topology: tpu7x:2x2x1
jax: 0.10.0
libtpu: 0.0.40
codegen_flags: <defaults>
</compile_context>

<pallas_src>
import functools
import jax
import jax.numpy as jnp
from jax.experimental import pallas as pl
from jax.experimental.pallas import tpu as pltpu

# ------------------- small config (module uses 512/8/6/21128) -------------------
VOCAB = 128
HIDDEN = 64
HEADS = 8
HEAD_DIM = HIDDEN // HEADS
INTER = 128           # BERT intermediate (FFN) size
LAYERS = 2            # module uses 6; reduced for a small synthetic run
MAX_POS = 32
LN_EPS = 1e-12
NEG = -10000.0        # BERT additive-mask constant


def _row_tile(n, target=256):
    """Largest 'nice' row tile (multiple of 8, <= target) that divides n."""
    for cand in (target, 128, 64, 32, 16, 8):
        if cand <= n and n % cand == 0:
            return cand
    return n


# =============================== Pallas kernels ===============================

def _layer_norm(x, gamma, beta, eps):
    mean = jnp.mean(x, axis=-1, keepdims=True)
    xc = x - mean
    var = jnp.mean(xc * xc, axis=-1, keepdims=True)
    inv = jax.lax.rsqrt(var + eps)
    return (xc * inv) * gamma + beta


def _attn_block_kernel(x_ref, kv_ref, mask_ref,
                       wq_ref, bq_ref, wkv_ref, bkv_ref,
                       wo_ref, bo_ref, g_ref, beta_ref,
                       o_ref, ctx_ref,
                       *, scale, heads, head_dim, eps, causal):
    """Fused BertSelfAttention + BertSelfOutput for one (batch, Sq-tile) block.

    x_ref:    (1, tq, H)  query source (also the residual input), f32
    kv_ref:   (1, Sk, H)  key/value source (== x for self-attn, encoder for cross)
    mask_ref: (1, 1, Sk)  padding mask (1 = keep, 0 = pad), f32
    wq:(H,H) bq:(1,H)  wkv:(H,2H) bkv:(1,2H)  wo:(H,H)  bo/gamma/beta:(1,H)
    ctx_ref:  (tq, H)   VMEM scratch holding the per-head contexts contiguously
    """
    x2 = x_ref[0]                       # (tq, H)  f32
    kv2 = kv_ref[0]                     # (Sk, H)  f32
    tq, hid = x2.shape
    sk = kv2.shape[0]

    xb = x2.astype(jnp.bfloat16)
    kvb = kv2.astype(jnp.bfloat16)

    # Lane-dense fused projections (bf16 MXU operands, f32 accumulation).
    q_all = jnp.dot(xb, wq_ref[...], preferred_element_type=jnp.float32) + bq_ref[...]
    kv_all = jnp.dot(kvb, wkv_ref[...], preferred_element_type=jnp.float32) + bkv_ref[...]
    k_all = kv_all[:, :hid]
    v_all = kv_all[:, hid:]

    # Additive attention bias built in-kernel (no HBM (B,Sq,Sk) bias array).
    mask_row = mask_ref[0]                                        # (1, Sk) f32
    allowed = jnp.broadcast_to(mask_row > 0.5, (tq, sk))
    if causal:
        q0 = pl.program_id(1) * tq
        q_pos = jax.lax.broadcasted_iota(jnp.int32, (tq, sk), 0) + q0
        k_pos = jax.lax.broadcasted_iota(jnp.int32, (tq, sk), 1)
        allowed = jnp.logical_and(allowed, k_pos <= q_pos)
    bias = jnp.where(allowed, 0.0, NEG)

    qb = q_all.astype(jnp.bfloat16)
    kb = k_all.astype(jnp.bfloat16)
    vb = v_all.astype(jnp.bfloat16)

    # Per-head score/softmax/context; contexts written contiguously to scratch
    # so a single lane-dense (tq,H)@(H,H) output projection follows.
    for h in range(heads):
        lo = h * head_dim
        hi = lo + head_dim
        qh = qb[:, lo:hi]                                         # (tq, D)
        kh = kb[:, lo:hi]                                         # (Sk, D)
        vh = vb[:, lo:hi]                                         # (Sk, D)
        s = jax.lax.dot_general(qh, kh, (((1,), (1,)), ((), ())),
                                preferred_element_type=jnp.float32)
        s = s * scale + bias
        s = s - jnp.max(s, axis=-1, keepdims=True)
        p = jnp.exp(s)
        p = p * pl.reciprocal(jnp.sum(p, axis=-1, keepdims=True), approx=True)
        ctx_ref[:, lo:hi] = jnp.dot(p.astype(jnp.bfloat16), vh,
                                    preferred_element_type=jnp.float32)

    out = jnp.dot(ctx_ref[...].astype(jnp.bfloat16), wo_ref[...],
                  preferred_element_type=jnp.float32) + bo_ref[...]
    o_ref[0] = _layer_norm(out + x2, g_ref[...], beta_ref[...], eps)


def attention_block(x, kv, mask, p, *, causal):
    """x: (B,Sq,H), kv: (B,Sk,H), mask: (B,Sk) padding mask -> (B,Sq,H)."""
    B, Sq, H = x.shape
    Sk = kv.shape[1]
    tq = _row_tile(Sq, 128)
    scale = 1.0 / (HEAD_DIM ** 0.5)
    mask3 = mask.astype(jnp.float32).reshape(B, 1, Sk)
    kernel = functools.partial(_attn_block_kernel, scale=scale, heads=HEADS,
                               head_dim=HEAD_DIM, eps=LN_EPS, causal=causal)
    # TODO(synk): at module scale (H=512, S=512) set
    # pltpu.CompilerParams(vmem_limit_bytes=...) from the double-buffered block
    # shapes (and keep it under the 64 MiB v7x physical ceiling).
    return pl.pallas_call(
        kernel,
        grid=(B, Sq // tq),
        in_specs=[
            pl.BlockSpec((1, tq, H), lambda b, q: (b, q, 0)),
            pl.BlockSpec((1, Sk, H), lambda b, q: (b, 0, 0)),
            pl.BlockSpec((1, 1, Sk), lambda b, q: (b, 0, 0)),
            pl.BlockSpec((H, H), lambda b, q: (0, 0)),         # wq
            pl.BlockSpec((1, H), lambda b, q: (0, 0)),         # bq
            pl.BlockSpec((H, 2 * H), lambda b, q: (0, 0)),     # wkv
            pl.BlockSpec((1, 2 * H), lambda b, q: (0, 0)),     # bkv
            pl.BlockSpec((H, H), lambda b, q: (0, 0)),         # wo
            pl.BlockSpec((1, H), lambda b, q: (0, 0)),         # bo
            pl.BlockSpec((1, H), lambda b, q: (0, 0)),         # ln gamma
            pl.BlockSpec((1, H), lambda b, q: (0, 0)),         # ln beta
        ],
        out_specs=pl.BlockSpec((1, tq, H), lambda b, q: (b, q, 0)),
        out_shape=jax.ShapeDtypeStruct((B, Sq, H), jnp.float32),
        scratch_shapes=[pltpu.VMEM((tq, H), jnp.float32)],
        compiler_params=pltpu.CompilerParams(
            dimension_semantics=("parallel", "parallel")),
    )(x, kv, mask3,
      p["wq"], p["bq"], p["wkv"], p["bkv"],
      p["wo"], p["bo"], p["ln_g"], p["ln_b"])


def _ffn_block_kernel(x_ref, wi_ref, bi_ref, wo_ref, bo_ref, g_ref, beta_ref,
                      o_ref, *, eps):
    """Fused BertIntermediate (GELU) + BertOutput (residual + LayerNorm)."""
    x2 = x_ref[...]                                                   # (tm, H) f32
    h = jnp.dot(x2.astype(jnp.bfloat16), wi_ref[...],
                preferred_element_type=jnp.float32) + bi_ref[...]
    # TODO(synk): HF BERT uses exact erf-GELU; tanh-approx GELU used in-kernel.
    c = 0.7978845608028654  # sqrt(2/pi)
    h = 0.5 * h * (1.0 + jnp.tanh(c * (h + 0.044715 * h * h * h)))
    out = jnp.dot(h.astype(jnp.bfloat16), wo_ref[...],
                  preferred_element_type=jnp.float32) + bo_ref[...]
    o_ref[...] = _layer_norm(out + x2, g_ref[...], beta_ref[...], eps)


def ffn_block(x, p):
    B, S, H = x.shape
    M = B * S
    x2 = x.reshape(M, H)
    tm = _row_tile(M, 256)
    out = pl.pallas_call(
        functools.partial(_ffn_block_kernel, eps=LN_EPS),
        grid=(M // tm,),
        in_specs=[pl.BlockSpec((tm, H), lambda i: (i, 0)),
                  pl.BlockSpec((H, INTER), lambda i: (0, 0)),
                  pl.BlockSpec((1, INTER), lambda i: (0, 0)),
                  pl.BlockSpec((INTER, H), lambda i: (0, 0)),
                  pl.BlockSpec((1, H), lambda i: (0, 0)),
                  pl.BlockSpec((1, H), lambda i: (0, 0)),
                  pl.BlockSpec((1, H), lambda i: (0, 0))],
        out_specs=pl.BlockSpec((tm, H), lambda i: (i, 0)),
        out_shape=jax.ShapeDtypeStruct((M, H), jnp.float32),
        compiler_params=pltpu.CompilerParams(dimension_semantics=("parallel",)),
    )(x2, p["wi"], p["bi"], p["wo"], p["bo"], p["ln_g"], p["ln_b"])
    return out.reshape(B, S, H)


def _matmul_kernel(x_ref, w_ref, o_ref):
    o_ref[...] = jnp.dot(x_ref[...].astype(jnp.bfloat16), w_ref[...],
                         preferred_element_type=jnp.float32)


def lm_head(x2, w):
    """Bias-free LM head.  x2: (M, H) f32, w: (H, VOCAB) bf16 -> (M, VOCAB) f32."""
    M, K = x2.shape
    N = w.shape[1]
    tm = _row_tile(M, 256)
    tn = N
    for cand in (4096, 2048, 1024, 512, 256, 128):
        if cand <= N and N % cand == 0:
            tn = cand
            break
    # K = hidden (512 at module scale) fits as a single contraction block, so no
    # K-axis accumulator is needed; the weight is tiled along N (vocab).
    return pl.pallas_call(
        _matmul_kernel,
        grid=(M // tm, N // tn),
        in_specs=[pl.BlockSpec((tm, K), lambda i, j: (i, 0)),
                  pl.BlockSpec((K, tn), lambda i, j: (0, j))],
        out_specs=pl.BlockSpec((tm, tn), lambda i, j: (i, j)),
        out_shape=jax.ShapeDtypeStruct((M, N), jnp.float32),
        compiler_params=pltpu.CompilerParams(
            dimension_semantics=("parallel", "parallel")),
    )(x2, w)


# ============================ model glue (plain JAX) ===========================

def _ln_jax(x, gamma, beta, eps=LN_EPS):
    mean = jnp.mean(x, axis=-1, keepdims=True)
    xc = x - mean
    var = jnp.mean(xc * xc, axis=-1, keepdims=True)
    return (xc * jax.lax.rsqrt(var + eps)) * gamma + beta


def bert_embeddings(p, input_ids):
    B, S = input_ids.shape
    we = jnp.take(p["word"], input_ids, axis=0)          # gather stays in JAX
    pe = p["pos"][:S][None, :, :]
    te = p["tok"][0][None, None, :]                      # token_type_ids == 0
    # Embedding LayerNorm folded into the embedding add (plain JAX; avoids a
    # tiny standalone pallas_call).
    return _ln_jax(we + pe + te, p["ln_g"], p["ln_b"])


def bert_encoder(params, input_ids, attention_mask):
    x = bert_embeddings(params["emb"], input_ids)
    for lp in params["layers"]:
        x = attention_block(x, x, attention_mask, lp["self"], causal=False)
        x = ffn_block(x, lp["ffn"])
    return x


def bert_decoder(params, input_ids, attention_mask, enc_hidden, enc_mask):
    x = bert_embeddings(params["emb"], input_ids)
    for lp in params["layers"]:
        x = attention_block(x, x, attention_mask, lp["self"], causal=True)
        x = attention_block(x, enc_hidden, enc_mask, lp["cross"], causal=False)
        x = ffn_block(x, lp["ffn"])
    return x


def transformer_forward(params, input_ids, mask_encoder_input, output_ids,
                        mask_decoder_input):
    enc = bert_encoder(params["encoder"], input_ids, mask_encoder_input)
    # In the PyTorch module, encoder_attention_mask is NOT passed to the decoder,
    # so HF BertModel defaults it to all-ones (no cross-attention masking).
    enc_mask = jnp.ones(input_ids.shape, jnp.float32)
    dec = bert_decoder(params["decoder"], output_ids, mask_decoder_input, enc,
                       enc_mask)
    B, S, H = dec.shape
    logits = lm_head(dec.reshape(B * S, H), params["lm_w"])   # bias-free LM head
    return logits.reshape(B, S, VOCAB)


# ============================== parameter init =================================

def init_params(key):
    keys = iter(jax.random.split(key, 4096))

    def nrm(shape, dtype=jnp.bfloat16):
        # matmul weights stored bf16 (MXU operands); everything else f32
        w = 0.02 * jax.random.normal(next(keys), shape, jnp.float32)
        return w.astype(dtype)

    def zeros(shape):
        return jnp.zeros(shape, jnp.float32)

    def attn_params():
        # Q weight (H,H); K and V fused into one (H, 2H) slab so the in-kernel
        # projections are lane-dense single matmuls.
        return dict(wq=nrm((HIDDEN, HIDDEN)), bq=zeros((1, HIDDEN)),
                    wkv=nrm((HIDDEN, 2 * HIDDEN)), bkv=zeros((1, 2 * HIDDEN)),
                    wo=nrm((HIDDEN, HIDDEN)), bo=zeros((1, HIDDEN)),
                    ln_g=jnp.ones((1, HIDDEN), jnp.float32),
                    ln_b=zeros((1, HIDDEN)))

    def ffn_params():
        return dict(wi=nrm((HIDDEN, INTER)), bi=zeros((1, INTER)),
                    wo=nrm((INTER, HIDDEN)), bo=zeros((1, HIDDEN)),
                    ln_g=jnp.ones((1, HIDDEN), jnp.float32),
                    ln_b=zeros((1, HIDDEN)))

    def emb_params():
        return dict(word=nrm((VOCAB, HIDDEN), jnp.float32),
                    pos=nrm((MAX_POS, HIDDEN), jnp.float32),
                    tok=nrm((2, HIDDEN), jnp.float32),
                    ln_g=jnp.ones((HIDDEN,), jnp.float32),
                    ln_b=jnp.zeros((HIDDEN,), jnp.float32))

    def bert_params(is_decoder):
        layers = []
        for _ in range(LAYERS):
            lp = dict(self=attn_params(), ffn=ffn_params())
            if is_decoder:
                lp["cross"] = attn_params()
            layers.append(lp)
        return dict(emb=emb_params(), layers=layers)

    return dict(encoder=bert_params(False),
                decoder=bert_params(True),
                lm_w=nrm((HIDDEN, VOCAB)))


# ==================================== main =====================================

if __name__ == "__main__":
    B, S_ENC, S_DEC = 2, 8, 8
    key = jax.random.PRNGKey(0)
    pkey, k1, k2 = jax.random.split(key, 3)
    params = init_params(pkey)

    input_ids = jax.random.randint(k1, (B, S_ENC), 0, VOCAB)
    output_ids = jax.random.randint(k2, (B, S_DEC), 0, VOCAB)
    mask_encoder_input = jnp.ones((B, S_ENC), jnp.float32).at[:, -2:].set(0.0)
    mask_decoder_input = jnp.ones((B, S_DEC), jnp.float32).at[:, -1:].set(0.0)

    fwd = jax.jit(transformer_forward)
    logits = fwd(params, input_ids, mask_encoder_input, output_ids,
                 mask_decoder_input)
    jax.block_until_ready(logits)

    assert logits.shape == (B, S_DEC, VOCAB), logits.shape
    assert bool(jnp.all(jnp.isfinite(logits)))
    print("KERNEL_OK")
</pallas_src>

<mosaic_0001>
module attributes {stable_mosaic.version = 11 : i64} {
  func.func @_matmul_kernel(%arg0: i32, %arg1: i32, %arg2: memref<16x64xf32, #tpu.memory_space<vmem>>, %arg3: memref<64x128xbf16, #tpu.memory_space<vmem>>, %arg4: memref<16x128xf32, #tpu.memory_space<vmem>>) attributes {dimension_semantics = [#tpu.dimension_semantics<parallel>, #tpu.dimension_semantics<parallel>], iteration_bounds = array<i64: 1, 1>, scalar_prefetch = 0 : i64, scratch_operands = 0 : i64, tpu.core_type = #tpu.core_type<tc>, window_params = [{transform_indices = @transform_0, window_bounds = array<i64: 16, 64>}, {transform_indices = @transform_1, window_bounds = array<i64: 64, 128>}, {transform_indices = @transform_2, window_bounds = array<i64: 16, 128>}]} {
    %c0 = arith.constant 0 : index
    %c0_0 = arith.constant 0 : index
    %0 = vector.load %arg2[%c0, %c0_0] : memref<16x64xf32, #tpu.memory_space<vmem>>, vector<16x64xf32>
    %1 = arith.truncf %0 : vector<16x64xf32> to vector<16x64xbf16>
    %c0_1 = arith.constant 0 : index
    %c0_2 = arith.constant 0 : index
    %2 = vector.load %arg3[%c0_1, %c0_2] : memref<64x128xbf16, #tpu.memory_space<vmem>>, vector<64x128xbf16>
    %cst = arith.constant dense<0.000000e+00> : vector<16x128xf32>
    %3 = tpu.matmul %1, %2, %cst {dimension_numbers = #tpu.dot_dimension_numbers<[1], [0], [0], [1], [0, 0, 1, 1], [], []>} : vector<16x64xbf16>, vector<64x128xbf16>, vector<16x128xf32> -> vector<16x128xf32>
    %c0_3 = arith.constant 0 : index
    %c0_4 = arith.constant 0 : index
    %4 = vector.load %arg4[%c0_3, %c0_4] : memref<16x128xf32, #tpu.memory_space<vmem>>, vector<16x128xf32>
    tpu.vector_store %arg4[%c0_3, %c0_4], %3 {strides = array<i32>} : memref<16x128xf32, #tpu.memory_space<vmem>>, vector<16x128xf32>,
    return
  }
  func.func @transform_0(%arg0: i32, %arg1: i32) -> (i32, i32) {
    %c0_i32 = arith.constant 0 : i32
    %c0_i32_0 = arith.constant 0 : i32
    return %arg0, %c0_i32 : i32, i32
  }
  func.func @transform_1(%arg0: i32, %arg1: i32) -> (i32, i32) {
    %c0_i32 = arith.constant 0 : i32
    %c0_i32_0 = arith.constant 0 : i32
    return %c0_i32, %arg1 : i32, i32
  }
  func.func @transform_2(%arg0: i32, %arg1: i32) -> (i32, i32) {
    %c0_i32 = arith.constant 0 : i32
    return %arg0, %arg1 : i32, i32
  }
}

module attributes {stable_mosaic.version = 11 : i64} {
  func.func @_ffn_block_kernel(%arg0: i32, %arg1: memref<16x64xf32, #tpu.memory_space<vmem>>, %arg2: memref<64x128xbf16, #tpu.memory_space<vmem>>, %arg3: memref<1x128xf32, #tpu.memory_space<vmem>>, %arg4: memref<128x64xbf16, #tpu.memory_space<vmem>>, %arg5: memref<1x64xf32, #tpu.memory_space<vmem>>, %arg6: memref<1x64xf32, #tpu.memory_space<vmem>>, %arg7: memref<1x64xf32, #tpu.memory_space<vmem>>, %arg8: memref<16x64xf32, #tpu.memory_space<vmem>>) attributes {dimension_semantics = [#tpu.dimension_semantics<parallel>], iteration_bounds = array<i64: 1>, scalar_prefetch = 0 : i64, scratch_operands = 0 : i64, tpu.core_type = #tpu.core_type<tc>, window_params = [{transform_indices = @transform_0, window_bounds = array<i64: 16, 64>}, {pipeline_mode = #tpu.pipeline_mode<synchronous>, transform_indices = @transform_1, window_bounds = array<i64: 64, 128>}, {pipeline_mode = #tpu.pipeline_mode<synchronous>, transform_indices = @transform_2, window_bounds = array<i64: 1, 128>}, {pipeline_mode = #tpu.pipeline_mode<synchronous>, transform_indices = @transform_3, window_bounds = array<i64: 128, 64>}, {pipeline_mode = #tpu.pipeline_mode<synchronous>, transform_indices = @transform_4, window_bounds = array<i64: 1, 64>}, {pipeline_mode = #tpu.pipeline_mode<synchronous>, transform_indices = @transform_5, window_bounds = array<i64: 1, 64>}, {pipeline_mode = #tpu.pipeline_mode<synchronous>, transform_indices = @transform_6, window_bounds = array<i64: 1, 64>}, {transform_indices = @transform_7, window_bounds = array<i64: 16, 64>}]} {
    %c0 = arith.constant 0 : index
    %c0_0 = arith.constant 0 : index
    %0 = vector.load %arg1[%c0, %c0_0] : memref<16x64xf32, #tpu.memory_space<vmem>>, vector<16x64xf32>
    %1 = arith.truncf %0 : vector<16x64xf32> to vector<16x64xbf16>
    %c0_1 = arith.constant 0 : index
    %c0_2 = arith.constant 0 : index
    %2 = vector.load %arg2[%c0_1, %c0_2] : memref<64x128xbf16, #tpu.memory_space<vmem>>, vector<64x128xbf16>
    %cst = arith.constant dense<0.000000e+00> : vector<16x128xf32>
    %3 = tpu.matmul %1, %2, %cst {dimension_numbers = #tpu.dot_dimension_numbers<[1], [0], [0], [1], [0, 0, 1, 1], [], []>} : vector<16x64xbf16>, vector<64x128xbf16>, vector<16x128xf32> -> vector<16x128xf32>
    %c0_3 = arith.constant 0 : index
    %c0_4 = arith.constant 0 : index
    %4 = vector.load %arg3[%c0_3, %c0_4] : memref<1x128xf32, #tpu.memory_space<vmem>>, vector<1x128xf32>
    %5 = vector.broadcast %4 : vector<1x128xf32> to vector<16x128xf32>
    %6 = arith.addf %3, %5 : vector<16x128xf32>
    %cst_5 = arith.constant 5.000000e-01 : f32
    %7 = vector.broadcast %cst_5 : f32 to vector<16x128xf32>
    %8 = arith.mulf %7, %6 : vector<16x128xf32>
    %cst_6 = arith.constant 4.471500e-02 : f32
    %9 = vector.broadcast %cst_6 : f32 to vector<16x128xf32>
    %10 = arith.mulf %9, %6 : vector<16x128xf32>
    %11 = arith.mulf %10, %6 : vector<16x128xf32>
    %12 = arith.mulf %11, %6 : vector<16x128xf32>
    %13 = arith.addf %6, %12 : vector<16x128xf32>
    %cst_7 = arith.constant 0.797884583 : f32
    %14 = vector.broadcast %cst_7 : f32 to vector<16x128xf32>
    %15 = arith.mulf %14, %13 : vector<16x128xf32>
    %16 = math.tanh %15 : vector<16x128xf32>
    %cst_8 = arith.constant 1.000000e+00 : f32
    %17 = vector.broadcast %cst_8 : f32 to vector<16x128xf32>
    %18 = arith.addf %17, %16 : vector<16x128xf32>
    %19 = arith.mulf %8, %18 : vector<16x128xf32>
    %20 = arith.truncf %19 : vector<16x128xf32> to vector<16x128xbf16>
    %c0_9 = arith.constant 0 : index
    %c0_10 = arith.constant 0 : index
    %21 = vector.load %arg4[%c0_9, %c0_10] : memref<128x64xbf16, #tpu.memory_space<vmem>>, vector<128x64xbf16>
    %cst_11 = arith.constant dense<0.000000e+00> : vector<16x64xf32>
    %22 = tpu.matmul %20, %21, %cst_11 {dimension_numbers = #tpu.dot_dimension_numbers<[1], [0], [0], [1], [0, 0, 1, 1], [], []>} : vector<16x128xbf16>, vector<128x64xbf16>, vector<16x64xf32> -> vector<16x64xf32>
    %c0_12 = arith.constant 0 : index
    %c0_13 = arith.constant 0 : index
    %23 = vector.load %arg5[%c0_12, %c0_13] : memref<1x64xf32, #tpu.memory_space<vmem>>, vector<1x64xf32>
    %24 = vector.broadcast %23 : vector<1x64xf32> to vector<16x64xf32>
    %25 = arith.addf %22, %24 : vector<16x64xf32>
    %26 = arith.addf %25, %0 : vector<16x64xf32>
    %c0_14 = arith.constant 0 : index
    %c0_15 = arith.constant 0 : index
    %27 = vector.load %arg6[%c0_14, %c0_15] : memref<1x64xf32, #tpu.memory_space<vmem>>, vector<1x64xf32>
    %c0_16 = arith.constant 0 : index
    %c0_17 = arith.constant 0 : index
    %28 = vector.load %arg7[%c0_16, %c0_17] : memref<1x64xf32, #tpu.memory_space<vmem>>, vector<1x64xf32>
    %cst_18 = arith.constant dense<0.000000e+00> : vector<16xf32>
    %29 = vector.multi_reduction <add>, %26, %cst_18 [1] : vector<16x64xf32> to vector<16xf32>
    %30 = vector.shape_cast %29 : vector<16xf32> to vector<16x1xf32>
    %cst_19 = arith.constant 6.400000e+01 : f32
    %31 = vector.broadcast %cst_19 : f32 to vector<16x1xf32>
    %32 = arith.divf %30, %31 : vector<16x1xf32>
    %33 = vector.broadcast %32 : vector<16x1xf32> to vector<16x64xf32>
    %34 = arith.subf %26, %33 : vector<16x64xf32>
    %35 = arith.mulf %34, %34 : vector<16x64xf32>
    %cst_20 = arith.constant dense<0.000000e+00> : vector<16xf32>
    %36 = vector.multi_reduction <add>, %35, %cst_20 [1] : vector<16x64xf32> to vector<16xf32>
    %37 = vector.shape_cast %36 : vector<16xf32> to vector<16x1xf32>
    %cst_21 = arith.constant 6.400000e+01 : f32
    %38 = vector.broadcast %cst_21 : f32 to vector<16x1xf32>
    %39 = arith.divf %37, %38 : vector<16x1xf32>
    %cst_22 = arith.constant 9.99999996E-13 : f32
    %40 = vector.broadcast %cst_22 : f32 to vector<16x1xf32>
    %41 = arith.addf %39, %40 : vector<16x1xf32>
    %42 = math.rsqrt %41 : vector<16x1xf32>
    %43 = vector.broadcast %42 : vector<16x1xf32> to vector<16x64xf32>
    %44 = arith.mulf %34, %43 : vector<16x64xf32>
    %45 = vector.broadcast %27 : vector<1x64xf32> to vector<16x64xf32>
    %46 = arith.mulf %44, %45 : vector<16x64xf32>
    %47 = vector.broadcast %28 : vector<1x64xf32> to vector<16x64xf32>
    %48 = arith.addf %46, %47 : vector<16x64xf32>
    %c0_23 = arith.constant 0 : index
    %c0_24 = arith.constant 0 : index
    %49 = vector.load %arg8[%c0_23, %c0_24] : memref<16x64xf32, #tpu.memory_space<vmem>>, vector<16x64xf32>
    tpu.vector_store %arg8[%c0_23, %c0_24], %48 {strides = array<i32>} : memref<16x64xf32, #tpu.memory_space<vmem>>, vector<16x64xf32>,
    return
  }
  func.func @transform_0(%arg0: i32) -> (i32, i32) {
    %c0_i32 = arith.constant 0 : i32
    %c0_i32_0 = arith.constant 0 : i32
    return %arg0, %c0_i32 : i32, i32
  }
  func.func @transform_1(%arg0: i32) -> (i32, i32) {
    %c0_i32 = arith.constant 0 : i32
    %c0_i32_0 = arith.constant 0 : i32
    %c0_i32_1 = arith.constant 0 : i32
    return %c0_i32, %c0_i32_0 : i32, i32
  }
  func.func @transform_2(%arg0: i32) -> (i32, i32) {
    %c0_i32 = arith.constant 0 : i32
    %c0_i32_0 = arith.constant 0 : i32
    %c0_i32_1 = arith.constant 0 : i32
    return %c0_i32, %c0_i32_0 : i32, i32
  }
  func.func @transform_3(%arg0: i32) -> (i32, i32) {
    %c0_i32 = arith.constant 0 : i32
    %c0_i32_0 = arith.constant 0 : i32
    %c0_i32_1 = arith.constant 0 : i32
    return %c0_i32, %c0_i32_0 : i32, i32
  }
  func.func @transform_4(%arg0: i32) -> (i32, i32) {
    %c0_i32 = arith.constant 0 : i32
    %c0_i32_0 = arith.constant 0 : i32
    %c0_i32_1 = arith.constant 0 : i32
    return %c0_i32, %c0_i32_0 : i32, i32
  }
  func.func @transform_5(%arg0: i32) -> (i32, i32) {
    %c0_i32 = arith.constant 0 : i32
    %c0_i32_0 = arith.constant 0 : i32
    %c0_i32_1 = arith.constant 0 : i32
    return %c0_i32, %c0_i32_0 : i32, i32
  }
  func.func @transform_6(%arg0: i32) -> (i32, i32) {
    %c0_i32 = arith.constant 0 : i32
    %c0_i32_0 = arith.constant 0 : i32
    %c0_i32_1 = arith.constant 0 : i32
    return %c0_i32, %c0_i32_0 : i32, i32
  }
  func.func @transform_7(%arg0: i32) -> (i32, i32) {
    %c0_i32 = arith.constant 0 : i32
    %c0_i32_0 = arith.constant 0 : i32
    return %arg0, %c0_i32 : i32, i32
  }
}

module attributes {stable_mosaic.version = 11 : i64} {
  func.func @_attn_block_kernel(%arg0: i32, %arg1: i32, %arg2: memref<1x8x64xf32, #tpu.memory_space<vmem>>, %arg3: memref<1x8x64xf32, #tpu.memory_space<vmem>>, %arg4: memref<1x1x8xf32, #tpu.memory_space<vmem>>, %arg5: memref<64x64xbf16, #tpu.memory_space<vmem>>, %arg6: memref<1x64xf32, #tpu.memory_space<vmem>>, %arg7: memref<64x128xbf16, #tpu.memory_space<vmem>>, %arg8: memref<1x128xf32, #tpu.memory_space<vmem>>, %arg9: memref<64x64xbf16, #tpu.memory_space<vmem>>, %arg10: memref<1x64xf32, #tpu.memory_space<vmem>>, %arg11: memref<1x64xf32, #tpu.memory_space<vmem>>, %arg12: memref<1x64xf32, #tpu.memory_space<vmem>>, %arg13: memref<1x8x64xf32, #tpu.memory_space<vmem>>, %arg14: memref<8x64xf32, #tpu.memory_space<vmem>>) attributes {dimension_semantics = [#tpu.dimension_semantics<parallel>, #tpu.dimension_semantics<parallel>], iteration_bounds = array<i64: 2, 1>, scalar_prefetch = 0 : i64, scratch_operands = 1 : i64, tpu.core_type = #tpu.core_type<tc>, window_params = [{transform_indices = @transform_0, window_bounds = array<i64: 1, 8, 64>}, {transform_indices = @transform_1, window_bounds = array<i64: 1, 8, 64>}, {transform_indices = @transform_2, window_bounds = array<i64: 1, 1, 8>}, {pipeline_mode = #tpu.pipeline_mode<synchronous>, transform_indices = @transform_3, window_bounds = array<i64: 64, 64>}, {pipeline_mode = #tpu.pipeline_mode<synchronous>, transform_indices = @transform_4, window_bounds = array<i64: 1, 64>}, {pipeline_mode = #tpu.pipeline_mode<synchronous>, transform_indices = @transform_5, window_bounds = array<i64: 64, 128>}, {pipeline_mode = #tpu.pipeline_mode<synchronous>, transform_indices = @transform_6, window_bounds = array<i64: 1, 128>}, {pipeline_mode = #tpu.pipeline_mode<synchronous>, transform_indices = @transform_7, window_bounds = array<i64: 64, 64>}, {pipeline_mode = #tpu.pipeline_mode<synchronous>, transform_indices = @transform_8, window_bounds = array<i64: 1, 64>}, {pipeline_mode = #tpu.pipeline_mode<synchronous>, transform_indices = @transform_9, window_bounds = array<i64: 1, 64>}, {pipeline_mode = #tpu.pipeline_mode<synchronous>, transform_indices = @transform_10, window_bounds = array<i64: 1, 64>}, {transform_indices = @transform_11, window_bounds = array<i64: 1, 8, 64>}]} {
    %c0 = arith.constant 0 : index
    %c0_0 = arith.constant 0 : index
    %c0_1 = arith.constant 0 : index
    %0 = vector.load %arg2[%c0, %c0_0, %c0_1] : memref<1x8x64xf32, #tpu.memory_space<vmem>>, vector<1x8x64xf32>
    %1 = vector.shape_cast %0 : vector<1x8x64xf32> to vector<8x64xf32>
    %c0_2 = arith.constant 0 : index
    %c0_3 = arith.constant 0 : index
    %c0_4 = arith.constant 0 : index
    %2 = vector.load %arg3[%c0_2, %c0_3, %c0_4] : memref<1x8x64xf32, #tpu.memory_space<vmem>>, vector<1x8x64xf32>
    %3 = vector.shape_cast %2 : vector<1x8x64xf32> to vector<8x64xf32>
    %4 = arith.truncf %1 : vector<8x64xf32> to vector<8x64xbf16>
    %5 = arith.truncf %3 : vector<8x64xf32> to vector<8x64xbf16>
    %c0_5 = arith.constant 0 : index
    %c0_6 = arith.constant 0 : index
    %6 = vector.load %arg5[%c0_5, %c0_6] : memref<64x64xbf16, #tpu.memory_space<vmem>>, vector<64x64xbf16>
    %cst = arith.constant dense<0.000000e+00> : vector<8x64xf32>
    %7 = tpu.matmul %4, %6, %cst {dimension_numbers = #tpu.dot_dimension_numbers<[1], [0], [0], [1], [0, 0, 1, 1], [], []>} : vector<8x64xbf16>, vector<64x64xbf16>, vector<8x64xf32> -> vector<8x64xf32>
    %c0_7 = arith.constant 0 : index
    %c0_8 = arith.constant 0 : index
    %8 = vector.load %arg6[%c0_7, %c0_8] : memref<1x64xf32, #tpu.memory_space<vmem>>, vector<1x64xf32>
    %9 = vector.broadcast %8 : vector<1x64xf32> to vector<8x64xf32>
    %10 = arith.addf %7, %9 : vector<8x64xf32>
    %c0_9 = arith.constant 0 : index
    %c0_10 = arith.constant 0 : index
    %11 = vector.load %arg7[%c0_9, %c0_10] : memref<64x128xbf16, #tpu.memory_space<vmem>>, vector<64x128xbf16>
    %cst_11 = arith.constant dense<0.000000e+00> : vector<8x128xf32>
    %12 = tpu.matmul %5, %11, %cst_11 {dimension_numbers = #tpu.dot_dimension_numbers<[1], [0], [0], [1], [0, 0, 1, 1], [], []>} : vector<8x64xbf16>, vector<64x128xbf16>, vector<8x128xf32> -> vector<8x128xf32>
    %c0_12 = arith.constant 0 : index
    %c0_13 = arith.constant 0 : index
    %13 = vector.load %arg8[%c0_12, %c0_13] : memref<1x128xf32, #tpu.memory_space<vmem>>, vector<1x128xf32>
    %14 = vector.broadcast %13 : vector<1x128xf32> to vector<8x128xf32>
    %15 = arith.addf %12, %14 : vector<8x128xf32>
    %16 = vector.extract_strided_slice %15 {offsets = [0, 0], sizes = [8, 64], strides = [1, 1]} : vector<8x128xf32> to vector<8x64xf32>
    %17 = vector.extract_strided_slice %15 {offsets = [0, 64], sizes = [8, 64], strides = [1, 1]} : vector<8x128xf32> to vector<8x64xf32>
    %c0_14 = arith.constant 0 : index
    %c0_15 = arith.constant 0 : index
    %c0_16 = arith.constant 0 : index
    %18 = vector.load %arg4[%c0_14, %c0_15, %c0_16] : memref<1x1x8xf32, #tpu.memory_space<vmem>>, vector<1x1x8xf32>
    %19 = vector.shape_cast %18 : vector<1x1x8xf32> to vector<1x8xf32>
    %cst_17 = arith.constant 5.000000e-01 : f32
    %20 = vector.broadcast %cst_17 : f32 to vector<1x8xf32>
    %21 = arith.cmpf ogt, %19, %20 : vector<1x8xf32>
    %22 = vector.shape_cast %21 : vector<1x8xi1> to vector<1x8xi1>
    %23 = vector.broadcast %22 : vector<1x8xi1> to vector<8x8xi1>
    %c8_i32 = arith.constant 8 : i32
    %24 = arith.muli %arg1, %c8_i32 : i32
    %25 = tpu.iota {dimensions = array<i32: 0>} : vector<8x8xi32>
    %26 = vector.broadcast %24 : i32 to vector<8x8xi32>
    %27 = arith.addi %25, %26 : vector<8x8xi32>
    %28 = tpu.iota {dimensions = array<i32: 1>} : vector<8x8xi32>
    %29 = arith.cmpi sle, %28, %27 : vector<8x8xi32>
    %30 = arith.andi %23, %29 : vector<8x8xi1>
    %cst_18 = arith.constant 0.000000e+00 : f32
    %cst_19 = arith.constant -1.000000e+04 : f32
    %31 = vector.broadcast %cst_18 : f32 to vector<8x8xf32>
    %32 = vector.broadcast %cst_19 : f32 to vector<8x8xf32>
    %33 = arith.select %30, %31, %32 : vector<8x8xi1>, vector<8x8xf32>
    %34 = arith.truncf %10 : vector<8x64xf32> to vector<8x64xbf16>
    %35 = arith.truncf %16 : vector<8x64xf32> to vector<8x64xbf16>
    %36 = arith.truncf %17 : vector<8x64xf32> to vector<8x64xbf16>
    %37 = vector.extract_strided_slice %34 {offsets = [0, 0], sizes = [8, 8], strides = [1, 1]} : vector<8x64xbf16> to vector<8x8xbf16>
    %38 = vector.extract_strided_slice %35 {offsets = [0, 0], sizes = [8, 8], strides = [1, 1]} : vector<8x64xbf16> to vector<8x8xbf16>
    %39 = vector.extract_strided_slice %36 {offsets = [0, 0], sizes = [8, 8], strides = [1, 1]} : vector<8x64xbf16> to vector<8x8xbf16>
    %cst_20 = arith.constant dense<0.000000e+00> : vector<8x8xf32>
    %40 = tpu.matmul %37, %38, %cst_20 {dimension_numbers = #tpu.dot_dimension_numbers<[1], [1], [0], [0], [0, 0, 1, 0], [], []>} : vector<8x8xbf16>, vector<8x8xbf16>, vector<8x8xf32> -> vector<8x8xf32>
    %cst_21 = arith.constant 0.353553385 : f32
    %41 = vector.broadcast %cst_21 : f32 to vector<8x8xf32>
    %42 = arith.mulf %40, %41 : vector<8x8xf32>
    %43 = arith.addf %42, %33 : vector<8x8xf32>
    %cst_22 = arith.constant dense<0xFF800000> : vector<8xf32>
    %44 = vector.multi_reduction <maximumf>, %43, %cst_22 [1] : vector<8x8xf32> to vector<8xf32>
    %45 = vector.shape_cast %44 : vector<8xf32> to vector<8x1xf32>
    %46 = vector.broadcast %45 : vector<8x1xf32> to vector<8x8xf32>
    %47 = arith.subf %43, %46 : vector<8x8xf32>
    %48 = math.exp %47 : vector<8x8xf32>
    %cst_23 = arith.constant dense<0.000000e+00> : vector<8xf32>
    %49 = vector.multi_reduction <add>, %48, %cst_23 [1] : vector<8x8xf32> to vector<8xf32>
    %50 = vector.shape_cast %49 : vector<8xf32> to vector<8x1xf32>
    %51 = tpu.reciprocal %50 {approx = true} : vector<8x1xf32> -> vector<8x1xf32>
    %52 = vector.broadcast %51 : vector<8x1xf32> to vector<8x8xf32>
    %53 = arith.mulf %48, %52 : vector<8x8xf32>
    %54 = arith.truncf %53 : vector<8x8xf32> to vector<8x8xbf16>
    %cst_24 = arith.constant dense<0.000000e+00> : vector<8x8xf32>
    %55 = tpu.matmul %54, %39, %cst_24 {dimension_numbers = #tpu.dot_dimension_numbers<[1], [0], [0], [1], [0, 0, 1, 1], [], []>} : vector<8x8xbf16>, vector<8x8xbf16>, vector<8x8xf32> -> vector<8x8xf32>
    %c0_25 = arith.constant 0 : index
    %c0_26 = arith.constant 0 : index
    %56 = vector.load %arg14[%c0_25, %c0_26] : memref<8x64xf32, #tpu.memory_space<vmem>>, vector<8x8xf32>
    tpu.vector_store %arg14[%c0_25, %c0_26], %55 {strides = array<i32>} : memref<8x64xf32, #tpu.memory_space<vmem>>, vector<8x8xf32>,
    %57 = vector.extract_strided_slice %34 {offsets = [0, 8], sizes = [8, 8], strides = [1, 1]} : vector<8x64xbf16> to vector<8x8xbf16>
    %58 = vector.extract_strided_slice %35 {offsets = [0, 8], sizes = [8, 8], strides = [1, 1]} : vector<8x64xbf16> to vector<8x8xbf16>
    %59 = vector.extract_strided_slice %36 {offsets = [0, 8], sizes = [8, 8], strides = [1, 1]} : vector<8x64xbf16> to vector<8x8xbf16>
    %cst_27 = arith.constant dense<0.000000e+00> : vector<8x8xf32>
    %60 = tpu.matmul %57, %58, %cst_27 {dimension_numbers = #tpu.dot_dimension_numbers<[1], [1], [0], [0], [0, 0, 1, 0], [], []>} : vector<8x8xbf16>, vector<8x8xbf16>, vector<8x8xf32> -> vector<8x8xf32>
    %cst_28 = arith.constant 0.353553385 : f32
    %61 = vector.broadcast %cst_28 : f32 to vector<8x8xf32>
    %62 = arith.mulf %60, %61 : vector<8x8xf32>
    %63 = arith.addf %62, %33 : vector<8x8xf32>
    %cst_29 = arith.constant dense<0xFF800000> : vector<8xf32>
    %64 = vector.multi_reduction <maximumf>, %63, %cst_29 [1] : vector<8x8xf32> to vector<8xf32>
    %65 = vector.shape_cast %64 : vector<8xf32> to vector<8x1xf32>
    %66 = vector.broadcast %65 : vector<8x1xf32> to vector<8x8xf32>
    %67 = arith.subf %63, %66 : vector<8x8xf32>
    %68 = math.exp %67 : vector<8x8xf32>
    %cst_30 = arith.constant dense<0.000000e+00> : vector<8xf32>
    %69 = vector.multi_reduction <add>, %68, %cst_30 [1] : vector<8x8xf32> to vector<8xf32>
    %70 = vector.shape_cast %69 : vector<8xf32> to vector<8x1xf32>
    %71 = tpu.reciprocal %70 {approx = true} : vector<8x1xf32> -> vector<8x1xf32>
    %72 = vector.broadcast %71 : vector<8x1xf32> to vector<8x8xf32>
    %73 = arith.mulf %68, %72 : vector<8x8xf32>
    %74 = arith.truncf %73 : vector<8x8xf32> to vector<8x8xbf16>
    %cst_31 = arith.constant dense<0.000000e+00> : vector<8x8xf32>
    %75 = tpu.matmul %74, %59, %cst_31 {dimension_numbers = #tpu.dot_dimension_numbers<[1], [0], [0], [1], [0, 0, 1, 1], [], []>} : vector<8x8xbf16>, vector<8x8xbf16>, vector<8x8xf32> -> vector<8x8xf32>
    %c0_32 = arith.constant 0 : index
    %c8 = arith.constant 8 : index
    %76 = vector.load %arg14[%c0_32, %c8] : memref<8x64xf32, #tpu.memory_space<vmem>>, vector<8x8xf32>
    tpu.vector_store %arg14[%c0_32, %c8], %75 {strides = array<i32>} : memref<8x64xf32, #tpu.memory_space<vmem>>, vector<8x8xf32>,
    %77 = vector.extract_strided_slice %34 {offsets = [0, 16], sizes = [8, 8], strides = [1, 1]} : vector<8x64xbf16> to vector<8x8xbf16>
    %78 = vector.extract_strided_slice %35 {offsets = [0, 16], sizes = [8, 8], strides = [1, 1]} : vector<8x64xbf16> to vector<8x8xbf16>
    %79 = vector.extract_strided_slice %36 {offsets = [0, 16], sizes = [8, 8], strides = [1, 1]} : vector<8x64xbf16> to vector<8x8xbf16>
    %cst_33 = arith.constant dense<0.000000e+00> : vector<8x8xf32>
    %80 = tpu.matmul %77, %78, %cst_33 {dimension_numbers = #tpu.dot_dimension_numbers<[1], [1], [0], [0], [0, 0, 1, 0], [], []>} : vector<8x8xbf16>, vector<8x8xbf16>, vector<8x8xf32> -> vector<8x8xf32>
    %cst_34 = arith.constant 0.353553385 : f32
    %81 = vector.broadcast %cst_34 : f32 to vector<8x8xf32>
    %82 = arith.mulf %80, %81 : vector<8x8xf32>
    %83 = arith.addf %82, %33 : vector<8x8xf32>
    %cst_35 = arith.constant dense<0xFF800000> : vector<8xf32>
    %84 = vector.multi_reduction <maximumf>, %83, %cst_35 [1] : vector<8x8xf32> to vector<8xf32>
    %85 = vector.shape_cast %84 : vector<8xf32> to vector<8x1xf32>
    %86 = vector.broadcast %85 : vector<8x1xf32> to vector<8x8xf32>
    %87 = arith.subf %83, %86 : vector<8x8xf32>
    %88 = math.exp %87 : vector<8x8xf32>
    %cst_36 = arith.constant dense<0.000000e+00> : vector<8xf32>
    %89 = vector.multi_reduction <add>, %88, %cst_36 [1] : vector<8x8xf32> to vector<8xf32>
    %90 = vector.shape_cast %89 : vector<8xf32> to vector<8x1xf32>
    %91 = tpu.reciprocal %90 {approx = true} : vector<8x1xf32> -> vector<8x1xf32>
    %92 = vector.broadcast %91 : vector<8x1xf32> to vector<8x8xf32>
    %93 = arith.mulf %88, %92 : vector<8x8xf32>
    %94 = arith.truncf %93 : vector<8x8xf32> to vector<8x8xbf16>
    %cst_37 = arith.constant dense<0.000000e+00> : vector<8x8xf32>
    %95 = tpu.matmul %94, %79, %cst_37 {dimension_numbers = #tpu.dot_dimension_numbers<[1], [0], [0], [1], [0, 0, 1, 1], [], []>} : vector<8x8xbf16>, vector<8x8xbf16>, vector<8x8xf32> -> vector<8x8xf32>
    %c0_38 = arith.constant 0 : index
    %c16 = arith.constant 16 : index
    %96 = vector.load %arg14[%c0_38, %c16] : memref<8x64xf32, #tpu.memory_space<vmem>>, vector<8x8xf32>
    tpu.vector_store %arg14[%c0_38, %c16], %95 {strides = array<i32>} : memref<8x64xf32, #tpu.memory_space<vmem>>, vector<8x8xf32>,
    %97 = vector.extract_strided_slice %34 {offsets = [0, 24], sizes = [8, 8], strides = [1, 1]} : vector<8x64xbf16> to vector<8x8xbf16>
    %98 = vector.extract_strided_slice %35 {offsets = [0, 24], sizes = [8, 8], strides = [1, 1]} : vector<8x64xbf16> to vector<8x8xbf16>
    %99 = vector.extract_strided_slice %36 {offsets = [0, 24], sizes = [8, 8], strides = [1, 1]} : vector<8x64xbf16> to vector<8x8xbf16>
    %cst_39 = arith.constant dense<0.000000e+00> : vector<8x8xf32>
    %100 = tpu.matmul %97, %98, %cst_39 {dimension_numbers = #tpu.dot_dimension_numbers<[1], [1], [0], [0], [0, 0, 1, 0], [], []>} : vector<8x8xbf16>, vector<8x8xbf16>, vector<8x8xf32> -> vector<8x8xf32>
    %cst_40 = arith.constant 0.353553385 : f32
    %101 = vector.broadcast %cst_40 : f32 to vector<8x8xf32>
    %102 = arith.mulf %100, %101 : vector<8x8xf32>
    %103 = arith.addf %102, %33 : vector<8x8xf32>
    %cst_41 = arith.constant dense<0xFF800000> : vector<8xf32>
    %104 = vector.multi_reduction <maximumf>, %103, %cst_41 [1] : vector<8x8xf32> to vector<8xf32>
    %105 = vector.shape_cast %104 : vector<8xf32> to vector<8x1xf32>
    %106 = vector.broadcast %105 : vector<8x1xf32> to vector<8x8xf32>
    %107 = arith.subf %103, %106 : vector<8x8xf32>
    %108 = math.exp %107 : vector<8x8xf32>
    %cst_42 = arith.constant dense<0.000000e+00> : vector<8xf32>
    %109 = vector.multi_reduction <add>, %108, %cst_42 [1] : vector<8x8xf32> to vector<8xf32>
    %110 = vector.shape_cast %109 : vector<8xf32> to vector<8x1xf32>
    %111 = tpu.reciprocal %110 {approx = true} : vector<8x1xf32> -> vector<8x1xf32>
    %112 = vector.broadcast %111 : vector<8x1xf32> to vector<8x8xf32>
    %113 = arith.mulf %108, %112 : vector<8x8xf32>
    %114 = arith.truncf %113 : vector<8x8xf32> to vector<8x8xbf16>
    %cst_43 = arith.constant dense<0.000000e+00> : vector<8x8xf32>
    %115 = tpu.matmul %114, %99, %cst_43 {dimension_numbers = #tpu.dot_dimension_numbers<[1], [0], [0], [1], [0, 0, 1, 1], [], []>} : vector<8x8xbf16>, vector<8x8xbf16>, vector<8x8xf32> -> vector<8x8xf32>
    %c0_44 = arith.constant 0 : index
    %c24 = arith.constant 24 : index
    %116 = vector.load %arg14[%c0_44, %c24] : memref<8x64xf32, #tpu.memory_space<vmem>>, vector<8x8xf32>
    tpu.vector_store %arg14[%c0_44, %c24], %115 {strides = array<i32>} : memref<8x64xf32, #tpu.memory_space<vmem>>, vector<8x8xf32>,
    %117 = vector.extract_strided_slice %34 {offsets = [0, 32], sizes = [8, 8], strides = [1, 1]} : vector<8x64xbf16> to vector<8x8xbf16>
    %118 = vector.extract_strided_slice %35 {offsets = [0, 32], sizes = [8, 8], strides = [1, 1]} : vector<8x64xbf16> to vector<8x8xbf16>
    %119 = vector.extract_strided_slice %36 {offsets = [0, 32], sizes = [8, 8], strides = [1, 1]} : vector<8x64xbf16> to vector<8x8xbf16>
    %cst_45 = arith.constant dense<0.000000e+00> : vector<8x8xf32>
    %120 = tpu.matmul %117, %118, %cst_45 {dimension_numbers = #tpu.dot_dimension_numbers<[1], [1], [0], [0], [0, 0, 1, 0], [], []>} : vector<8x8xbf16>, vector<8x8xbf16>, vector<8x8xf32> -> vector<8x8xf32>
    %cst_46 = arith.constant 0.353553385 : f32
    %121 = vector.broadcast %cst_46 : f32 to vector<8x8xf32>
    %122 = arith.mulf %120, %121 : vector<8x8xf32>
    %123 = arith.addf %122, %33 : vector<8x8xf32>
    %cst_47 = arith.constant dense<0xFF800000> : vector<8xf32>
    %124 = vector.multi_reduction <maximumf>, %123, %cst_47 [1] : vector<8x8xf32> to vector<8xf32>
    %125 = vector.shape_cast %124 : vector<8xf32> to vector<8x1xf32>
    %126 = vector.broadcast %125 : vector<8x1xf32> to vector<8x8xf32>
    %127 = arith.subf %123, %126 : vector<8x8xf32>
    %128 = math.exp %127 : vector<8x8xf32>
    %cst_48 = arith.constant dense<0.000000e+00> : vector<8xf32>
    %129 = vector.multi_reduction <add>, %128, %cst_48 [1] : vector<8x8xf32> to vector<8xf32>
    %130 = vector.shape_cast %129 : vector<8xf32> to vector<8x1xf32>
    %131 = tpu.reciprocal %130 {approx = true} : vector<8x1xf32> -> vector<8x1xf32>
    %132 = vector.broadcast %131 : vector<8x1xf32> to vector<8x8xf32>
    %133 = arith.mulf %128, %132 : vector<8x8xf32>
    %134 = arith.truncf %133 : vector<8x8xf32> to vector<8x8xbf16>
    %cst_49 = arith.constant dense<0.000000e+00> : vector<8x8xf32>
    %135 = tpu.matmul %134, %119, %cst_49 {dimension_numbers = #tpu.dot_dimension_numbers<[1], [0], [0], [1], [0, 0, 1, 1], [], []>} : vector<8x8xbf16>, vector<8x8xbf16>, vector<8x8xf32> -> vector<8x8xf32>
    %c0_50 = arith.constant 0 : index
    %c32 = arith.constant 32 : index
    %136 = vector.load %arg14[%c0_50, %c32] : memref<8x64xf32, #tpu.memory_space<vmem>>, vector<8x8xf32>
    tpu.vector_store %arg14[%c0_50, %c32], %135 {strides = array<i32>} : memref<8x64xf32, #tpu.memory_space<vmem>>, vector<8x8xf32>,
    %137 = vector.extract_strided_slice %34 {offsets = [0, 40], sizes = [8, 8], strides = [1, 1]} : vector<8x64xbf16> to vector<8x8xbf16>
    %138 = vector.extract_strided_slice %35 {offsets = [0, 40], sizes = [8, 8], strides = [1, 1]} : vector<8x64xbf16> to vector<8x8xbf16>
    %139 = vector.extract_strided_slice %36 {offsets = [0, 40], sizes = [8, 8], strides = [1, 1]} : vector<8x64xbf16> to vector<8x8xbf16>
    %cst_51 = arith.constant dense<0.000000e+00> : vector<8x8xf32>
    %140 = tpu.matmul %137, %138, %cst_51 {dimension_numbers = #tpu.dot_dimension_numbers<[1], [1], [0], [0], [0, 0, 1, 0], [], []>} : vector<8x8xbf16>, vector<8x8xbf16>, vector<8x8xf32> -> vector<8x8xf32>
    %cst_52 = arith.constant 0.353553385 : f32
    %141 = vector.broadcast %cst_52 : f32 to vector<8x8xf32>
    %142 = arith.mulf %140, %141 : vector<8x8xf32>
    %143 = arith.addf %142, %33 : vector<8x8xf32>
    %cst_53 = arith.constant dense<0xFF800000> : vector<8xf32>
    %144 = vector.multi_reduction <maximumf>, %143, %cst_53 [1] : vector<8x8xf32> to vector<8xf32>
    %145 = vector.shape_cast %144 : vector<8xf32> to vector<8x1xf32>
    %146 = vector.broadcast %145 : vector<8x1xf32> to vector<8x8xf32>
    %147 = arith.subf %143, %146 : vector<8x8xf32>
    %148 = math.exp %147 : vector<8x8xf32>
    %cst_54 = arith.constant dense<0.000000e+00> : vector<8xf32>
    %149 = vector.multi_reduction <add>, %148, %cst_54 [1] : vector<8x8xf32> to vector<8xf32>
    %150 = vector.shape_cast %149 : vector<8xf32> to vector<8x1xf32>
    %151 = tpu.reciprocal %150 {approx = true} : vector<8x1xf32> -> vector<8x1xf32>
    %152 = vector.broadcast %151 : vector<8x1xf32> to vector<8x8xf32>
    %153 = arith.mulf %148, %152 : vector<8x8xf32>
    %154 = arith.truncf %153 : vector<8x8xf32> to vector<8x8xbf16>
    %cst_55 = arith.constant dense<0.000000e+00> : vector<8x8xf32>
    %155 = tpu.matmul %154, %139, %cst_55 {dimension_numbers = #tpu.dot_dimension_numbers<[1], [0], [0], [1], [0, 0, 1, 1], [], []>} : vector<8x8xbf16>, vector<8x8xbf16>, vector<8x8xf32> -> vector<8x8xf32>
    %c0_56 = arith.constant 0 : index
    %c40 = arith.constant 40 : index
    %156 = vector.load %arg14[%c0_56, %c40] : memref<8x64xf32, #tpu.memory_space<vmem>>, vector<8x8xf32>
    tpu.vector_store %arg14[%c0_56, %c40], %155 {strides = array<i32>} : memref<8x64xf32, #tpu.memory_space<vmem>>, vector<8x8xf32>,
    %157 = vector.extract_strided_slice %34 {offsets = [0, 48], sizes = [8, 8], strides = [1, 1]} : vector<8x64xbf16> to vector<8x8xbf16>
    %158 = vector.extract_strided_slice %35 {offsets = [0, 48], sizes = [8, 8], strides = [1, 1]} : vector<8x64xbf16> to vector<8x8xbf16>
    %159 = vector.extract_strided_slice %36 {offsets = [0, 48], sizes = [8, 8], strides = [1, 1]} : vector<8x64xbf16> to vector<8x8xbf16>
    %cst_57 = arith.constant dense<0.000000e+00> : vector<8x8xf32>
    %160 = tpu.matmul %157, %158, %cst_57 {dimension_numbers = #tpu.dot_dimension_numbers<[1], [1], [0], [0], [0, 0, 1, 0], [], []>} : vector<8x8xbf16>, vector<8x8xbf16>, vector<8x8xf32> -> vector<8x8xf32>
    %cst_58 = arith.constant 0.353553385 : f32
    %161 = vector.broadcast %cst_58 : f32 to vector<8x8xf32>
    %162 = arith.mulf %160, %161 : vector<8x8xf32>
    %163 = arith.addf %162, %33 : vector<8x8xf32>
    %cst_59 = arith.constant dense<0xFF800000> : vector<8xf32>
    %164 = vector.multi_reduction <maximumf>, %163, %cst_59 [1] : vector<8x8xf32> to vector<8xf32>
    %165 = vector.shape_cast %164 : vector<8xf32> to vector<8x1xf32>
    %166 = vector.broadcast %165 : vector<8x1xf32> to vector<8x8xf32>
    %167 = arith.subf %163, %166 : vector<8x8xf32>
    %168 = math.exp %167 : vector<8x8xf32>
    %cst_60 = arith.constant dense<0.000000e+00> : vector<8xf32>
    %169 = vector.multi_reduction <add>, %168, %cst_60 [1] : vector<8x8xf32> to vector<8xf32>
    %170 = vector.shape_cast %169 : vector<8xf32> to vector<8x1xf32>
    %171 = tpu.reciprocal %170 {approx = true} : vector<8x1xf32> -> vector<8x1xf32>
    %172 = vector.broadcast %171 : vector<8x1xf32> to vector<8x8xf32>
    %173 = arith.mulf %168, %172 : vector<8x8xf32>
    %174 = arith.truncf %173 : vector<8x8xf32> to vector<8x8xbf16>
    %cst_61 = arith.constant dense<0.000000e+00> : vector<8x8xf32>
    %175 = tpu.matmul %174, %159, %cst_61 {dimension_numbers = #tpu.dot_dimension_numbers<[1], [0], [0], [1], [0, 0, 1, 1], [], []>} : vector<8x8xbf16>, vector<8x8xbf16>, vector<8x8xf32> -> vector<8x8xf32>
    %c0_62 = arith.constant 0 : index
    %c48 = arith.constant 48 : index
    %176 = vector.load %arg14[%c0_62, %c48] : memref<8x64xf32, #tpu.memory_space<vmem>>, vector<8x8xf32>
    tpu.vector_store %arg14[%c0_62, %c48], %175 {strides = array<i32>} : memref<8x64xf32, #tpu.memory_space<vmem>>, vector<8x8xf32>,
    %177 = vector.extract_strided_slice %34 {offsets = [0, 56], sizes = [8, 8], strides = [1, 1]} : vector<8x64xbf16> to vector<8x8xbf16>
    %178 = vector.extract_strided_slice %35 {offsets = [0, 56], sizes = [8, 8], strides = [1, 1]} : vector<8x64xbf16> to vector<8x8xbf16>
    %179 = vector.extract_strided_slice %36 {offsets = [0, 56], sizes = [8, 8], strides = [1, 1]} : vector<8x64xbf16> to vector<8x8xbf16>
    %cst_63 = arith.constant dense<0.000000e+00> : vector<8x8xf32>
    %180 = tpu.matmul %177, %178, %cst_63 {dimension_numbers = #tpu.dot_dimension_numbers<[1], [1], [0], [0], [0, 0, 1, 0], [], []>} : vector<8x8xbf16>, vector<8x8xbf16>, vector<8x8xf32> -> vector<8x8xf32>
    %cst_64 = arith.constant 0.353553385 : f32
    %181 = vector.broadcast %cst_64 : f32 to vector<8x8xf32>
    %182 = arith.mulf %180, %181 : vector<8x8xf32>
    %183 = arith.addf %182, %33 : vector<8x8xf32>
    %cst_65 = arith.constant dense<0xFF800000> : vector<8xf32>
    %184 = vector.multi_reduction <maximumf>, %183, %cst_65 [1] : vector<8x8xf32> to vector<8xf32>
    %185 = vector.shape_cast %184 : vector<8xf32> to vector<8x1xf32>
    %186 = vector.broadcast %185 : vector<8x1xf32> to vector<8x8xf32>
    %187 = arith.subf %183, %186 : vector<8x8xf32>
    %188 = math.exp %187 : vector<8x8xf32>
    %cst_66 = arith.constant dense<0.000000e+00> : vector<8xf32>
    %189 = vector.multi_reduction <add>, %188, %cst_66 [1] : vector<8x8xf32> to vector<8xf32>
    %190 = vector.shape_cast %189 : vector<8xf32> to vector<8x1xf32>
    %191 = tpu.reciprocal %190 {approx = true} : vector<8x1xf32> -> vector<8x1xf32>
    %192 = vector.broadcast %191 : vector<8x1xf32> to vector<8x8xf32>
    %193 = arith.mulf %188, %192 : vector<8x8xf32>
    %194 = arith.truncf %193 : vector<8x8xf32> to vector<8x8xbf16>
    %cst_67 = arith.constant dense<0.000000e+00> : vector<8x8xf32>
    %195 = tpu.matmul %194, %179, %cst_67 {dimension_numbers = #tpu.dot_dimension_numbers<[1], [0], [0], [1], [0, 0, 1, 1], [], []>} : vector<8x8xbf16>, vector<8x8xbf16>, vector<8x8xf32> -> vector<8x8xf32>
    %c0_68 = arith.constant 0 : index
    %c56 = arith.constant 56 : index
    %196 = vector.load %arg14[%c0_68, %c56] : memref<8x64xf32, #tpu.memory_space<vmem>>, vector<8x8xf32>
    tpu.vector_store %arg14[%c0_68, %c56], %195 {strides = array<i32>} : memref<8x64xf32, #tpu.memory_space<vmem>>, vector<8x8xf32>,
    %c0_69 = arith.constant 0 : index
    %c0_70 = arith.constant 0 : index
    %197 = vector.load %arg14[%c0_69, %c0_70] : memref<8x64xf32, #tpu.memory_space<vmem>>, vector<8x64xf32>
    %198 = arith.truncf %197 : vector<8x64xf32> to vector<8x64xbf16>
    %c0_71 = arith.constant 0 : index
    %c0_72 = arith.constant 0 : index
    %199 = vector.load %arg9[%c0_71, %c0_72] : memref<64x64xbf16, #tpu.memory_space<vmem>>, vector<64x64xbf16>
    %cst_73 = arith.constant dense<0.000000e+00> : vector<8x64xf32>
    %200 = tpu.matmul %198, %199, %cst_73 {dimension_numbers = #tpu.dot_dimension_numbers<[1], [0], [0], [1], [0, 0, 1, 1], [], []>} : vector<8x64xbf16>, vector<64x64xbf16>, vector<8x64xf32> -> vector<8x64xf32>
    %c0_74 = arith.constant 0 : index
    %c0_75 = arith.constant 0 : index
    %201 = vector.load %arg10[%c0_74, %c0_75] : memref<1x64xf32, #tpu.memory_space<vmem>>, vector<1x64xf32>
    %202 = vector.broadcast %201 : vector<1x64xf32> to vector<8x64xf32>
    %203 = arith.addf %200, %202 : vector<8x64xf32>
    %204 = arith.addf %203, %1 : vector<8x64xf32>
    %c0_76 = arith.constant 0 : index
    %c0_77 = arith.constant 0 : index
    %205 = vector.load %arg11[%c0_76, %c0_77] : memref<1x64xf32, #tpu.memory_space<vmem>>, vector<1x64xf32>
    %c0_78 = arith.constant 0 : index
    %c0_79 = arith.constant 0 : index
    %206 = vector.load %arg12[%c0_78, %c0_79] : memref<1x64xf32, #tpu.memory_space<vmem>>, vector<1x64xf32>
    %cst_80 = arith.constant dense<0.000000e+00> : vector<8xf32>
    %207 = vector.multi_reduction <add>, %204, %cst_80 [1] : vector<8x64xf32> to vector<8xf32>
    %208 = vector.shape_cast %207 : vector<8xf32> to vector<8x1xf32>
    %cst_81 = arith.constant 6.400000e+01 : f32
    %209 = vector.broadcast %cst_81 : f32 to vector<8x1xf32>
    %210 = arith.divf %208, %209 : vector<8x1xf32>
    %211 = vector.broadcast %210 : vector<8x1xf32> to vector<8x64xf32>
    %212 = arith.subf %204, %211 : vector<8x64xf32>
    %213 = arith.mulf %212, %212 : vector<8x64xf32>
    %cst_82 = arith.constant dense<0.000000e+00> : vector<8xf32>
    %214 = vector.multi_reduction <add>, %213, %cst_82 [1] : vector<8x64xf32> to vector<8xf32>
    %215 = vector.shape_cast %214 : vector<8xf32> to vector<8x1xf32>
    %cst_83 = arith.constant 6.400000e+01 : f32
    %216 = vector.broadcast %cst_83 : f32 to vector<8x1xf32>
    %217 = arith.divf %215, %216 : vector<8x1xf32>
    %cst_84 = arith.constant 9.99999996E-13 : f32
    %218 = vector.broadcast %cst_84 : f32 to vector<8x1xf32>
    %219 = arith.addf %217, %218 : vector<8x1xf32>
    %220 = math.rsqrt %219 : vector<8x1xf32>
    %221 = vector.broadcast %220 : vector<8x1xf32> to vector<8x64xf32>
    %222 = arith.mulf %212, %221 : vector<8x64xf32>
    %223 = vector.broadcast %205 : vector<1x64xf32> to vector<8x64xf32>
    %224 = arith.mulf %222, %223 : vector<8x64xf32>
    %225 = vector.broadcast %206 : vector<1x64xf32> to vector<8x64xf32>
    %226 = arith.addf %224, %225 : vector<8x64xf32>
    %c0_85 = arith.constant 0 : index
    %c0_86 = arith.constant 0 : index
    %c0_87 = arith.constant 0 : index
    %227 = vector.load %arg13[%c0_85, %c0_86, %c0_87] : memref<1x8x64xf32, #tpu.memory_space<vmem>>, vector<1x8x64xf32>
    %228 = vector.shape_cast %227 : vector<1x8x64xf32> to vector<8x64xf32>
    %229 = vector.shape_cast %226 : vector<8x64xf32> to vector<1x8x64xf32>
    tpu.vector_store %arg13[%c0_85, %c0_86, %c0_87], %229 {strides = array<i32>} : memref<1x8x64xf32, #tpu.memory_space<vmem>>, vector<1x8x64xf32>,
    return
  }
  func.func @transform_0(%arg0: i32, %arg1: i32) -> (i32, i32, i32) {
    %c0_i32 = arith.constant 0 : i32
    %c0_i32_0 = arith.constant 0 : i32
    return %arg0, %arg1, %c0_i32 : i32, i32, i32
  }
  func.func @transform_1(%arg0: i32, %arg1: i32) -> (i32, i32, i32) {
    %c0_i32 = arith.constant 0 : i32
    %c0_i32_0 = arith.constant 0 : i32
    %c0_i32_1 = arith.constant 0 : i32
    return %arg0, %c0_i32, %c0_i32_0 : i32, i32, i32
  }
  func.func @transform_2(%arg0: i32, %arg1: i32) -> (i32, i32, i32) {
    %c0_i32 = arith.constant 0 : i32
    %c0_i32_0 = arith.constant 0 : i32
    %c0_i32_1 = arith.constant 0 : i32
    return %arg0, %c0_i32, %c0_i32_0 : i32, i32, i32
  }
  func.func @transform_3(%arg0: i32, %arg1: i32) -> (i32, i32) {
    %c0_i32 = arith.constant 0 : i32
    %c0_i32_0 = arith.constant 0 : i32
    %c0_i32_1 = arith.constant 0 : i32
    return %c0_i32, %c0_i32_0 : i32, i32
  }
  func.func @transform_4(%arg0: i32, %arg1: i32) -> (i32, i32) {
    %c0_i32 = arith.constant 0 : i32
    %c0_i32_0 = arith.constant 0 : i32
    %c0_i32_1 = arith.constant 0 : i32
    return %c0_i32, %c0_i32_0 : i32, i32
  }
  func.func @transform_5(%arg0: i32, %arg1: i32) -> (i32, i32) {
    %c0_i32 = arith.constant 0 : i32
    %c0_i32_0 = arith.constant 0 : i32
    %c0_i32_1 = arith.constant 0 : i32
    return %c0_i32, %c0_i32_0 : i32, i32
  }
  func.func @transform_6(%arg0: i32, %arg1: i32) -> (i32, i32) {
    %c0_i32 = arith.constant 0 : i32
    %c0_i32_0 = arith.constant 0 : i32
    %c0_i32_1 = arith.constant 0 : i32
    return %c0_i32, %c0_i32_0 : i32, i32
  }
  func.func @transform_7(%arg0: i32, %arg1: i32) -> (i32, i32) {
    %c0_i32 = arith.constant 0 : i32
    %c0_i32_0 = arith.constant 0 : i32
    %c0_i32_1 = arith.constant 0 : i32
    return %c0_i32, %c0_i32_0 : i32, i32
  }
  func.func @transform_8(%arg0: i32, %arg1: i32) -> (i32, i32) {
    %c0_i32 = arith.constant 0 : i32
    %c0_i32_0 = arith.constant 0 : i32
    %c0_i32_1 = arith.constant 0 : i32
    return %c0_i32, %c0_i32_0 : i32, i32
  }
  func.func @transform_9(%arg0: i32, %arg1: i32) -> (i32, i32) {
    %c0_i32 = arith.constant 0 : i32
    %c0_i32_0 = arith.constant 0 : i32
    %c0_i32_1 = arith.constant 0 : i32
    return %c0_i32, %c0_i32_0 : i32, i32
  }
  func.func @transform_10(%arg0: i32, %arg1: i32) -> (i32, i32) {
    %c0_i32 = arith.constant 0 : i32
    %c0_i32_0 = arith.constant 0 : i32
    %c0_i32_1 = arith.constant 0 : i32
    return %c0_i32, %c0_i32_0 : i32, i32
  }
  func.func @transform_11(%arg0: i32, %arg1: i32) -> (i32, i32, i32) {
    %c0_i32 = arith.constant 0 : i32
    %c0_i32_0 = arith.constant 0 : i32
    return %arg0, %arg1, %c0_i32 : i32, i32, i32
  }
}

module attributes {stable_mosaic.version = 11 : i64} {
  func.func @_attn_block_kernel(%arg0: i32, %arg1: i32, %arg2: memref<1x8x64xf32, #tpu.memory_space<vmem>>, %arg3: memref<1x8x64xf32, #tpu.memory_space<vmem>>, %arg4: memref<1x1x8xf32, #tpu.memory_space<vmem>>, %arg5: memref<64x64xbf16, #tpu.memory_space<vmem>>, %arg6: memref<1x64xf32, #tpu.memory_space<vmem>>, %arg7: memref<64x128xbf16, #tpu.memory_space<vmem>>, %arg8: memref<1x128xf32, #tpu.memory_space<vmem>>, %arg9: memref<64x64xbf16, #tpu.memory_space<vmem>>, %arg10: memref<1x64xf32, #tpu.memory_space<vmem>>, %arg11: memref<1x64xf32, #tpu.memory_space<vmem>>, %arg12: memref<1x64xf32, #tpu.memory_space<vmem>>, %arg13: memref<1x8x64xf32, #tpu.memory_space<vmem>>, %arg14: memref<8x64xf32, #tpu.memory_space<vmem>>) attributes {dimension_semantics = [#tpu.dimension_semantics<parallel>, #tpu.dimension_semantics<parallel>], iteration_bounds = array<i64: 2, 1>, scalar_prefetch = 0 : i64, scratch_operands = 1 : i64, tpu.core_type = #tpu.core_type<tc>, window_params = [{transform_indices = @transform_0, window_bounds = array<i64: 1, 8, 64>}, {transform_indices = @transform_1, window_bounds = array<i64: 1, 8, 64>}, {transform_indices = @transform_2, window_bounds = array<i64: 1, 1, 8>}, {pipeline_mode = #tpu.pipeline_mode<synchronous>, transform_indices = @transform_3, window_bounds = array<i64: 64, 64>}, {pipeline_mode = #tpu.pipeline_mode<synchronous>, transform_indices = @transform_4, window_bounds = array<i64: 1, 64>}, {pipeline_mode = #tpu.pipeline_mode<synchronous>, transform_indices = @transform_5, window_bounds = array<i64: 64, 128>}, {pipeline_mode = #tpu.pipeline_mode<synchronous>, transform_indices = @transform_6, window_bounds = array<i64: 1, 128>}, {pipeline_mode = #tpu.pipeline_mode<synchronous>, transform_indices = @transform_7, window_bounds = array<i64: 64, 64>}, {pipeline_mode = #tpu.pipeline_mode<synchronous>, transform_indices = @transform_8, window_bounds = array<i64: 1, 64>}, {pipeline_mode = #tpu.pipeline_mode<synchronous>, transform_indices = @transform_9, window_bounds = array<i64: 1, 64>}, {pipeline_mode = #tpu.pipeline_mode<synchronous>, transform_indices = @transform_10, window_bounds = array<i64: 1, 64>}, {transform_indices = @transform_11, window_bounds = array<i64: 1, 8, 64>}]} {
    %c0 = arith.constant 0 : index
    %c0_0 = arith.constant 0 : index
    %c0_1 = arith.constant 0 : index
    %0 = vector.load %arg2[%c0, %c0_0, %c0_1] : memref<1x8x64xf32, #tpu.memory_space<vmem>>, vector<1x8x64xf32>
    %1 = vector.shape_cast %0 : vector<1x8x64xf32> to vector<8x64xf32>
    %c0_2 = arith.constant 0 : index
    %c0_3 = arith.constant 0 : index
    %c0_4 = arith.constant 0 : index
    %2 = vector.load %arg3[%c0_2, %c0_3, %c0_4] : memref<1x8x64xf32, #tpu.memory_space<vmem>>, vector<1x8x64xf32>
    %3 = vector.shape_cast %2 : vector<1x8x64xf32> to vector<8x64xf32>
    %4 = arith.truncf %1 : vector<8x64xf32> to vector<8x64xbf16>
    %5 = arith.truncf %3 : vector<8x64xf32> to vector<8x64xbf16>
    %c0_5 = arith.constant 0 : index
    %c0_6 = arith.constant 0 : index
    %6 = vector.load %arg5[%c0_5, %c0_6] : memref<64x64xbf16, #tpu.memory_space<vmem>>, vector<64x64xbf16>
    %cst = arith.constant dense<0.000000e+00> : vector<8x64xf32>
    %7 = tpu.matmul %4, %6, %cst {dimension_numbers = #tpu.dot_dimension_numbers<[1], [0], [0], [1], [0, 0, 1, 1], [], []>} : vector<8x64xbf16>, vector<64x64xbf16>, vector<8x64xf32> -> vector<8x64xf32>
    %c0_7 = arith.constant 0 : index
    %c0_8 = arith.constant 0 : index
    %8 = vector.load %arg6[%c0_7, %c0_8] : memref<1x64xf32, #tpu.memory_space<vmem>>, vector<1x64xf32>
    %9 = vector.broadcast %8 : vector<1x64xf32> to vector<8x64xf32>
    %10 = arith.addf %7, %9 : vector<8x64xf32>
    %c0_9 = arith.constant 0 : index
    %c0_10 = arith.constant 0 : index
    %11 = vector.load %arg7[%c0_9, %c0_10] : memref<64x128xbf16, #tpu.memory_space<vmem>>, vector<64x128xbf16>
    %cst_11 = arith.constant dense<0.000000e+00> : vector<8x128xf32>
    %12 = tpu.matmul %5, %11, %cst_11 {dimension_numbers = #tpu.dot_dimension_numbers<[1], [0], [0], [1], [0, 0, 1, 1], [], []>} : vector<8x64xbf16>, vector<64x128xbf16>, vector<8x128xf32> -> vector<8x128xf32>
    %c0_12 = arith.constant 0 : index
    %c0_13 = arith.constant 0 : index
    %13 = vector.load %arg8[%c0_12, %c0_13] : memref<1x128xf32, #tpu.memory_space<vmem>>, vector<1x128xf32>
    %14 = vector.broadcast %13 : vector<1x128xf32> to vector<8x128xf32>
    %15 = arith.addf %12, %14 : vector<8x128xf32>
    %16 = vector.extract_strided_slice %15 {offsets = [0, 0], sizes = [8, 64], strides = [1, 1]} : vector<8x128xf32> to vector<8x64xf32>
    %17 = vector.extract_strided_slice %15 {offsets = [0, 64], sizes = [8, 64], strides = [1, 1]} : vector<8x128xf32> to vector<8x64xf32>
    %c0_14 = arith.constant 0 : index
    %c0_15 = arith.constant 0 : index
    %c0_16 = arith.constant 0 : index
    %18 = vector.load %arg4[%c0_14, %c0_15, %c0_16] : memref<1x1x8xf32, #tpu.memory_space<vmem>>, vector<1x1x8xf32>
    %19 = vector.shape_cast %18 : vector<1x1x8xf32> to vector<1x8xf32>
    %cst_17 = arith.constant 5.000000e-01 : f32
    %20 = vector.broadcast %cst_17 : f32 to vector<1x8xf32>
    %21 = arith.cmpf ogt, %19, %20 : vector<1x8xf32>
    %22 = vector.shape_cast %21 : vector<1x8xi1> to vector<1x8xi1>
    %23 = vector.broadcast %22 : vector<1x8xi1> to vector<8x8xi1>
    %cst_18 = arith.constant 0.000000e+00 : f32
    %cst_19 = arith.constant -1.000000e+04 : f32
    %24 = vector.broadcast %cst_18 : f32 to vector<8x8xf32>
    %25 = vector.broadcast %cst_19 : f32 to vector<8x8xf32>
    %26 = arith.select %23, %24, %25 : vector<8x8xi1>, vector<8x8xf32>
    %27 = arith.truncf %10 : vector<8x64xf32> to vector<8x64xbf16>
    %28 = arith.truncf %16 : vector<8x64xf32> to vector<8x64xbf16>
    %29 = arith.truncf %17 : vector<8x64xf32> to vector<8x64xbf16>
    %30 = vector.extract_strided_slice %27 {offsets = [0, 0], sizes = [8, 8], strides = [1, 1]} : vector<8x64xbf16> to vector<8x8xbf16>
    %31 = vector.extract_strided_slice %28 {offsets = [0, 0], sizes = [8, 8], strides = [1, 1]} : vector<8x64xbf16> to vector<8x8xbf16>
    %32 = vector.extract_strided_slice %29 {offsets = [0, 0], sizes = [8, 8], strides = [1, 1]} : vector<8x64xbf16> to vector<8x8xbf16>
    %cst_20 = arith.constant dense<0.000000e+00> : vector<8x8xf32>
    %33 = tpu.matmul %30, %31, %cst_20 {dimension_numbers = #tpu.dot_dimension_numbers<[1], [1], [0], [0], [0, 0, 1, 0], [], []>} : vector<8x8xbf16>, vector<8x8xbf16>, vector<8x8xf32> -> vector<8x8xf32>
    %cst_21 = arith.constant 0.353553385 : f32
    %34 = vector.broadcast %cst_21 : f32 to vector<8x8xf32>
    %35 = arith.mulf %33, %34 : vector<8x8xf32>
    %36 = arith.addf %35, %26 : vector<8x8xf32>
    %cst_22 = arith.constant dense<0xFF800000> : vector<8xf32>
    %37 = vector.multi_reduction <maximumf>, %36, %cst_22 [1] : vector<8x8xf32> to vector<8xf32>
    %38 = vector.shape_cast %37 : vector<8xf32> to vector<8x1xf32>
    %39 = vector.broadcast %38 : vector<8x1xf32> to vector<8x8xf32>
    %40 = arith.subf %36, %39 : vector<8x8xf32>
    %41 = math.exp %40 : vector<8x8xf32>
    %cst_23 = arith.constant dense<0.000000e+00> : vector<8xf32>
    %42 = vector.multi_reduction <add>, %41, %cst_23 [1] : vector<8x8xf32> to vector<8xf32>
    %43 = vector.shape_cast %42 : vector<8xf32> to vector<8x1xf32>
    %44 = tpu.reciprocal %43 {approx = true} : vector<8x1xf32> -> vector<8x1xf32>
    %45 = vector.broadcast %44 : vector<8x1xf32> to vector<8x8xf32>
    %46 = arith.mulf %41, %45 : vector<8x8xf32>
    %47 = arith.truncf %46 : vector<8x8xf32> to vector<8x8xbf16>
    %cst_24 = arith.constant dense<0.000000e+00> : vector<8x8xf32>
    %48 = tpu.matmul %47, %32, %cst_24 {dimension_numbers = #tpu.dot_dimension_numbers<[1], [0], [0], [1], [0, 0, 1, 1], [], []>} : vector<8x8xbf16>, vector<8x8xbf16>, vector<8x8xf32> -> vector<8x8xf32>
    %c0_25 = arith.constant 0 : index
    %c0_26 = arith.constant 0 : index
    %49 = vector.load %arg14[%c0_25, %c0_26] : memref<8x64xf32, #tpu.memory_space<vmem>>, vector<8x8xf32>
    tpu.vector_store %arg14[%c0_25, %c0_26], %48 {strides = array<i32>} : memref<8x64xf32, #tpu.memory_space<vmem>>, vector<8x8xf32>,
    %50 = vector.extract_strided_slice %27 {offsets = [0, 8], sizes = [8, 8], strides = [1, 1]} : vector<8x64xbf16> to vector<8x8xbf16>
    %51 = vector.extract_strided_slice %28 {offsets = [0, 8], sizes = [8, 8], strides = [1, 1]} : vector<8x64xbf16> to vector<8x8xbf16>
    %52 = vector.extract_strided_slice %29 {offsets = [0, 8], sizes = [8, 8], strides = [1, 1]} : vector<8x64xbf16> to vector<8x8xbf16>
    %cst_27 = arith.constant dense<0.000000e+00> : vector<8x8xf32>
    %53 = tpu.matmul %50, %51, %cst_27 {dimension_numbers = #tpu.dot_dimension_numbers<[1], [1], [0], [0], [0, 0, 1, 0], [], []>} : vector<8x8xbf16>, vector<8x8xbf16>, vector<8x8xf32> -> vector<8x8xf32>
    %cst_28 = arith.constant 0.353553385 : f32
    %54 = vector.broadcast %cst_28 : f32 to vector<8x8xf32>
    %55 = arith.mulf %53, %54 : vector<8x8xf32>
    %56 = arith.addf %55, %26 : vector<8x8xf32>
    %cst_29 = arith.constant dense<0xFF800000> : vector<8xf32>
    %57 = vector.multi_reduction <maximumf>, %56, %cst_29 [1] : vector<8x8xf32> to vector<8xf32>
    %58 = vector.shape_cast %57 : vector<8xf32> to vector<8x1xf32>
    %59 = vector.broadcast %58 : vector<8x1xf32> to vector<8x8xf32>
    %60 = arith.subf %56, %59 : vector<8x8xf32>
    %61 = math.exp %60 : vector<8x8xf32>
    %cst_30 = arith.constant dense<0.000000e+00> : vector<8xf32>
    %62 = vector.multi_reduction <add>, %61, %cst_30 [1] : vector<8x8xf32> to vector<8xf32>
    %63 = vector.shape_cast %62 : vector<8xf32> to vector<8x1xf32>
    %64 = tpu.reciprocal %63 {approx = true} : vector<8x1xf32> -> vector<8x1xf32>
    %65 = vector.broadcast %64 : vector<8x1xf32> to vector<8x8xf32>
    %66 = arith.mulf %61, %65 : vector<8x8xf32>
    %67 = arith.truncf %66 : vector<8x8xf32> to vector<8x8xbf16>
    %cst_31 = arith.constant dense<0.000000e+00> : vector<8x8xf32>
    %68 = tpu.matmul %67, %52, %cst_31 {dimension_numbers = #tpu.dot_dimension_numbers<[1], [0], [0], [1], [0, 0, 1, 1], [], []>} : vector<8x8xbf16>, vector<8x8xbf16>, vector<8x8xf32> -> vector<8x8xf32>
    %c0_32 = arith.constant 0 : index
    %c8 = arith.constant 8 : index
    %69 = vector.load %arg14[%c0_32, %c8] : memref<8x64xf32, #tpu.memory_space<vmem>>, vector<8x8xf32>
    tpu.vector_store %arg14[%c0_32, %c8], %68 {strides = array<i32>} : memref<8x64xf32, #tpu.memory_space<vmem>>, vector<8x8xf32>,
    %70 = vector.extract_strided_slice %27 {offsets = [0, 16], sizes = [8, 8], strides = [1, 1]} : vector<8x64xbf16> to vector<8x8xbf16>
    %71 = vector.extract_strided_slice %28 {offsets = [0, 16], sizes = [8, 8], strides = [1, 1]} : vector<8x64xbf16> to vector<8x8xbf16>
    %72 = vector.extract_strided_slice %29 {offsets = [0, 16], sizes = [8, 8], strides = [1, 1]} : vector<8x64xbf16> to vector<8x8xbf16>
    %cst_33 = arith.constant dense<0.000000e+00> : vector<8x8xf32>
    %73 = tpu.matmul %70, %71, %cst_33 {dimension_numbers = #tpu.dot_dimension_numbers<[1], [1], [0], [0], [0, 0, 1, 0], [], []>} : vector<8x8xbf16>, vector<8x8xbf16>, vector<8x8xf32> -> vector<8x8xf32>
    %cst_34 = arith.constant 0.353553385 : f32
    %74 = vector.broadcast %cst_34 : f32 to vector<8x8xf32>
    %75 = arith.mulf %73, %74 : vector<8x8xf32>
    %76 = arith.addf %75, %26 : vector<8x8xf32>
    %cst_35 = arith.constant dense<0xFF800000> : vector<8xf32>
    %77 = vector.multi_reduction <maximumf>, %76, %cst_35 [1] : vector<8x8xf32> to vector<8xf32>
    %78 = vector.shape_cast %77 : vector<8xf32> to vector<8x1xf32>
    %79 = vector.broadcast %78 : vector<8x1xf32> to vector<8x8xf32>
    %80 = arith.subf %76, %79 : vector<8x8xf32>
    %81 = math.exp %80 : vector<8x8xf32>
    %cst_36 = arith.constant dense<0.000000e+00> : vector<8xf32>
    %82 = vector.multi_reduction <add>, %81, %cst_36 [1] : vector<8x8xf32> to vector<8xf32>
    %83 = vector.shape_cast %82 : vector<8xf32> to vector<8x1xf32>
    %84 = tpu.reciprocal %83 {approx = true} : vector<8x1xf32> -> vector<8x1xf32>
    %85 = vector.broadcast %84 : vector<8x1xf32> to vector<8x8xf32>
    %86 = arith.mulf %81, %85 : vector<8x8xf32>
    %87 = arith.truncf %86 : vector<8x8xf32> to vector<8x8xbf16>
    %cst_37 = arith.constant dense<0.000000e+00> : vector<8x8xf32>
    %88 = tpu.matmul %87, %72, %cst_37 {dimension_numbers = #tpu.dot_dimension_numbers<[1], [0], [0], [1], [0, 0, 1, 1], [], []>} : vector<8x8xbf16>, vector<8x8xbf16>, vector<8x8xf32> -> vector<8x8xf32>
    %c0_38 = arith.constant 0 : index
    %c16 = arith.constant 16 : index
    %89 = vector.load %arg14[%c0_38, %c16] : memref<8x64xf32, #tpu.memory_space<vmem>>, vector<8x8xf32>
    tpu.vector_store %arg14[%c0_38, %c16], %88 {strides = array<i32>} : memref<8x64xf32, #tpu.memory_space<vmem>>, vector<8x8xf32>,
    %90 = vector.extract_strided_slice %27 {offsets = [0, 24], sizes = [8, 8], strides = [1, 1]} : vector<8x64xbf16> to vector<8x8xbf16>
    %91 = vector.extract_strided_slice %28 {offsets = [0, 24], sizes = [8, 8], strides = [1, 1]} : vector<8x64xbf16> to vector<8x8xbf16>
    %92 = vector.extract_strided_slice %29 {offsets = [0, 24], sizes = [8, 8], strides = [1, 1]} : vector<8x64xbf16> to vector<8x8xbf16>
    %cst_39 = arith.constant dense<0.000000e+00> : vector<8x8xf32>
    %93 = tpu.matmul %90, %91, %cst_39 {dimension_numbers = #tpu.dot_dimension_numbers<[1], [1], [0], [0], [0, 0, 1, 0], [], []>} : vector<8x8xbf16>, vector<8x8xbf16>, vector<8x8xf32> -> vector<8x8xf32>
    %cst_40 = arith.constant 0.353553385 : f32
    %94 = vector.broadcast %cst_40 : f32 to vector<8x8xf32>
    %95 = arith.mulf %93, %94 : vector<8x8xf32>
    %96 = arith.addf %95, %26 : vector<8x8xf32>
    %cst_41 = arith.constant dense<0xFF800000> : vector<8xf32>
    %97 = vector.multi_reduction <maximumf>, %96, %cst_41 [1] : vector<8x8xf32> to vector<8xf32>
    %98 = vector.shape_cast %97 : vector<8xf32> to vector<8x1xf32>
    %99 = vector.broadcast %98 : vector<8x1xf32> to vector<8x8xf32>
    %100 = arith.subf %96, %99 : vector<8x8xf32>
    %101 = math.exp %100 : vector<8x8xf32>
    %cst_42 = arith.constant dense<0.000000e+00> : vector<8xf32>
    %102 = vector.multi_reduction <add>, %101, %cst_42 [1] : vector<8x8xf32> to vector<8xf32>
    %103 = vector.shape_cast %102 : vector<8xf32> to vector<8x1xf32>
    %104 = tpu.reciprocal %103 {approx = true} : vector<8x1xf32> -> vector<8x1xf32>
    %105 = vector.broadcast %104 : vector<8x1xf32> to vector<8x8xf32>
    %106 = arith.mulf %101, %105 : vector<8x8xf32>
    %107 = arith.truncf %106 : vector<8x8xf32> to vector<8x8xbf16>
    %cst_43 = arith.constant dense<0.000000e+00> : vector<8x8xf32>
    %108 = tpu.matmul %107, %92, %cst_43 {dimension_numbers = #tpu.dot_dimension_numbers<[1], [0], [0], [1], [0, 0, 1, 1], [], []>} : vector<8x8xbf16>, vector<8x8xbf16>, vector<8x8xf32> -> vector<8x8xf32>
    %c0_44 = arith.constant 0 : index
    %c24 = arith.constant 24 : index
    %109 = vector.load %arg14[%c0_44, %c24] : memref<8x64xf32, #tpu.memory_space<vmem>>, vector<8x8xf32>
    tpu.vector_store %arg14[%c0_44, %c24], %108 {strides = array<i32>} : memref<8x64xf32, #tpu.memory_space<vmem>>, vector<8x8xf32>,
    %110 = vector.extract_strided_slice %27 {offsets = [0, 32], sizes = [8, 8], strides = [1, 1]} : vector<8x64xbf16> to vector<8x8xbf16>
    %111 = vector.extract_strided_slice %28 {offsets = [0, 32], sizes = [8, 8], strides = [1, 1]} : vector<8x64xbf16> to vector<8x8xbf16>
    %112 = vector.extract_strided_slice %29 {offsets = [0, 32], sizes = [8, 8], strides = [1, 1]} : vector<8x64xbf16> to vector<8x8xbf16>
    %cst_45 = arith.constant dense<0.000000e+00> : vector<8x8xf32>
    %113 = tpu.matmul %110, %111, %cst_45 {dimension_numbers = #tpu.dot_dimension_numbers<[1], [1], [0], [0], [0, 0, 1, 0], [], []>} : vector<8x8xbf16>, vector<8x8xbf16>, vector<8x8xf32> -> vector<8x8xf32>
    %cst_46 = arith.constant 0.353553385 : f32
    %114 = vector.broadcast %cst_46 : f32 to vector<8x8xf32>
    %115 = arith.mulf %113, %114 : vector<8x8xf32>
    %116 = arith.addf %115, %26 : vector<8x8xf32>
    %cst_47 = arith.constant dense<0xFF800000> : vector<8xf32>
    %117 = vector.multi_reduction <maximumf>, %116, %cst_47 [1] : vector<8x8xf32> to vector<8xf32>
    %118 = vector.shape_cast %117 : vector<8xf32> to vector<8x1xf32>
    %119 = vector.broadcast %118 : vector<8x1xf32> to vector<8x8xf32>
    %120 = arith.subf %116, %119 : vector<8x8xf32>
    %121 = math.exp %120 : vector<8x8xf32>
    %cst_48 = arith.constant dense<0.000000e+00> : vector<8xf32>
    %122 = vector.multi_reduction <add>, %121, %cst_48 [1] : vector<8x8xf32> to vector<8xf32>
    %123 = vector.shape_cast %122 : vector<8xf32> to vector<8x1xf32>
    %124 = tpu.reciprocal %123 {approx = true} : vector<8x1xf32> -> vector<8x1xf32>
    %125 = vector.broadcast %124 : vector<8x1xf32> to vector<8x8xf32>
    %126 = arith.mulf %121, %125 : vector<8x8xf32>
    %127 = arith.truncf %126 : vector<8x8xf32> to vector<8x8xbf16>
    %cst_49 = arith.constant dense<0.000000e+00> : vector<8x8xf32>
    %128 = tpu.matmul %127, %112, %cst_49 {dimension_numbers = #tpu.dot_dimension_numbers<[1], [0], [0], [1], [0, 0, 1, 1], [], []>} : vector<8x8xbf16>, vector<8x8xbf16>, vector<8x8xf32> -> vector<8x8xf32>
    %c0_50 = arith.constant 0 : index
    %c32 = arith.constant 32 : index
    %129 = vector.load %arg14[%c0_50, %c32] : memref<8x64xf32, #tpu.memory_space<vmem>>, vector<8x8xf32>
    tpu.vector_store %arg14[%c0_50, %c32], %128 {strides = array<i32>} : memref<8x64xf32, #tpu.memory_space<vmem>>, vector<8x8xf32>,
    %130 = vector.extract_strided_slice %27 {offsets = [0, 40], sizes = [8, 8], strides = [1, 1]} : vector<8x64xbf16> to vector<8x8xbf16>
    %131 = vector.extract_strided_slice %28 {offsets = [0, 40], sizes = [8, 8], strides = [1, 1]} : vector<8x64xbf16> to vector<8x8xbf16>
    %132 = vector.extract_strided_slice %29 {offsets = [0, 40], sizes = [8, 8], strides = [1, 1]} : vector<8x64xbf16> to vector<8x8xbf16>
    %cst_51 = arith.constant dense<0.000000e+00> : vector<8x8xf32>
    %133 = tpu.matmul %130, %131, %cst_51 {dimension_numbers = #tpu.dot_dimension_numbers<[1], [1], [0], [0], [0, 0, 1, 0], [], []>} : vector<8x8xbf16>, vector<8x8xbf16>, vector<8x8xf32> -> vector<8x8xf32>
    %cst_52 = arith.constant 0.353553385 : f32
    %134 = vector.broadcast %cst_52 : f32 to vector<8x8xf32>
    %135 = arith.mulf %133, %134 : vector<8x8xf32>
    %136 = arith.addf %135, %26 : vector<8x8xf32>
    %cst_53 = arith.constant dense<0xFF800000> : vector<8xf32>
    %137 = vector.multi_reduction <maximumf>, %136, %cst_53 [1] : vector<8x8xf32> to vector<8xf32>
    %138 = vector.shape_cast %137 : vector<8xf32> to vector<8x1xf32>
    %139 = vector.broadcast %138 : vector<8x1xf32> to vector<8x8xf32>
    %140 = arith.subf %136, %139 : vector<8x8xf32>
    %141 = math.exp %140 : vector<8x8xf32>
    %cst_54 = arith.constant dense<0.000000e+00> : vector<8xf32>
    %142 = vector.multi_reduction <add>, %141, %cst_54 [1] : vector<8x8xf32> to vector<8xf32>
    %143 = vector.shape_cast %142 : vector<8xf32> to vector<8x1xf32>
    %144 = tpu.reciprocal %143 {approx = true} : vector<8x1xf32> -> vector<8x1xf32>
    %145 = vector.broadcast %144 : vector<8x1xf32> to vector<8x8xf32>
    %146 = arith.mulf %141, %145 : vector<8x8xf32>
    %147 = arith.truncf %146 : vector<8x8xf32> to vector<8x8xbf16>
    %cst_55 = arith.constant dense<0.000000e+00> : vector<8x8xf32>
    %148 = tpu.matmul %147, %132, %cst_55 {dimension_numbers = #tpu.dot_dimension_numbers<[1], [0], [0], [1], [0, 0, 1, 1], [], []>} : vector<8x8xbf16>, vector<8x8xbf16>, vector<8x8xf32> -> vector<8x8xf32>
    %c0_56 = arith.constant 0 : index
    %c40 = arith.constant 40 : index
    %149 = vector.load %arg14[%c0_56, %c40] : memref<8x64xf32, #tpu.memory_space<vmem>>, vector<8x8xf32>
    tpu.vector_store %arg14[%c0_56, %c40], %148 {strides = array<i32>} : memref<8x64xf32, #tpu.memory_space<vmem>>, vector<8x8xf32>,
    %150 = vector.extract_strided_slice %27 {offsets = [0, 48], sizes = [8, 8], strides = [1, 1]} : vector<8x64xbf16> to vector<8x8xbf16>
    %151 = vector.extract_strided_slice %28 {offsets = [0, 48], sizes = [8, 8], strides = [1, 1]} : vector<8x64xbf16> to vector<8x8xbf16>
    %152 = vector.extract_strided_slice %29 {offsets = [0, 48], sizes = [8, 8], strides = [1, 1]} : vector<8x64xbf16> to vector<8x8xbf16>
    %cst_57 = arith.constant dense<0.000000e+00> : vector<8x8xf32>
    %153 = tpu.matmul %150, %151, %cst_57 {dimension_numbers = #tpu.dot_dimension_numbers<[1], [1], [0], [0], [0, 0, 1, 0], [], []>} : vector<8x8xbf16>, vector<8x8xbf16>, vector<8x8xf32> -> vector<8x8xf32>
    %cst_58 = arith.constant 0.353553385 : f32
    %154 = vector.broadcast %cst_58 : f32 to vector<8x8xf32>
    %155 = arith.mulf %153, %154 : vector<8x8xf32>
    %156 = arith.addf %155, %26 : vector<8x8xf32>
    %cst_59 = arith.constant dense<0xFF800000> : vector<8xf32>
    %157 = vector.multi_reduction <maximumf>, %156, %cst_59 [1] : vector<8x8xf32> to vector<8xf32>
    %158 = vector.shape_cast %157 : vector<8xf32> to vector<8x1xf32>
    %159 = vector.broadcast %158 : vector<8x1xf32> to vector<8x8xf32>
    %160 = arith.subf %156, %159 : vector<8x8xf32>
    %161 = math.exp %160 : vector<8x8xf32>
    %cst_60 = arith.constant dense<0.000000e+00> : vector<8xf32>
    %162 = vector.multi_reduction <add>, %161, %cst_60 [1] : vector<8x8xf32> to vector<8xf32>
    %163 = vector.shape_cast %162 : vector<8xf32> to vector<8x1xf32>
    %164 = tpu.reciprocal %163 {approx = true} : vector<8x1xf32> -> vector<8x1xf32>
    %165 = vector.broadcast %164 : vector<8x1xf32> to vector<8x8xf32>
    %166 = arith.mulf %161, %165 : vector<8x8xf32>
    %167 = arith.truncf %166 : vector<8x8xf32> to vector<8x8xbf16>
    %cst_61 = arith.constant dense<0.000000e+00> : vector<8x8xf32>
    %168 = tpu.matmul %167, %152, %cst_61 {dimension_numbers = #tpu.dot_dimension_numbers<[1], [0], [0], [1], [0, 0, 1, 1], [], []>} : vector<8x8xbf16>, vector<8x8xbf16>, vector<8x8xf32> -> vector<8x8xf32>
    %c0_62 = arith.constant 0 : index
    %c48 = arith.constant 48 : index
    %169 = vector.load %arg14[%c0_62, %c48] : memref<8x64xf32, #tpu.memory_space<vmem>>, vector<8x8xf32>
    tpu.vector_store %arg14[%c0_62, %c48], %168 {strides = array<i32>} : memref<8x64xf32, #tpu.memory_space<vmem>>, vector<8x8xf32>,
    %170 = vector.extract_strided_slice %27 {offsets = [0, 56], sizes = [8, 8], strides = [1, 1]} : vector<8x64xbf16> to vector<8x8xbf16>
    %171 = vector.extract_strided_slice %28 {offsets = [0, 56], sizes = [8, 8], strides = [1, 1]} : vector<8x64xbf16> to vector<8x8xbf16>
    %172 = vector.extract_strided_slice %29 {offsets = [0, 56], sizes = [8, 8], strides = [1, 1]} : vector<8x64xbf16> to vector<8x8xbf16>
    %cst_63 = arith.constant dense<0.000000e+00> : vector<8x8xf32>
    %173 = tpu.matmul %170, %171, %cst_63 {dimension_numbers = #tpu.dot_dimension_numbers<[1], [1], [0], [0], [0, 0, 1, 0], [], []>} : vector<8x8xbf16>, vector<8x8xbf16>, vector<8x8xf32> -> vector<8x8xf32>
    %cst_64 = arith.constant 0.353553385 : f32
    %174 = vector.broadcast %cst_64 : f32 to vector<8x8xf32>
    %175 = arith.mulf %173, %174 : vector<8x8xf32>
    %176 = arith.addf %175, %26 : vector<8x8xf32>
    %cst_65 = arith.constant dense<0xFF800000> : vector<8xf32>
    %177 = vector.multi_reduction <maximumf>, %176, %cst_65 [1] : vector<8x8xf32> to vector<8xf32>
    %178 = vector.shape_cast %177 : vector<8xf32> to vector<8x1xf32>
    %179 = vector.broadcast %178 : vector<8x1xf32> to vector<8x8xf32>
    %180 = arith.subf %176, %179 : vector<8x8xf32>
    %181 = math.exp %180 : vector<8x8xf32>
    %cst_66 = arith.constant dense<0.000000e+00> : vector<8xf32>
    %182 = vector.multi_reduction <add>, %181, %cst_66 [1] : vector<8x8xf32> to vector<8xf32>
    %183 = vector.shape_cast %182 : vector<8xf32> to vector<8x1xf32>
    %184 = tpu.reciprocal %183 {approx = true} : vector<8x1xf32> -> vector<8x1xf32>
    %185 = vector.broadcast %184 : vector<8x1xf32> to vector<8x8xf32>
    %186 = arith.mulf %181, %185 : vector<8x8xf32>
    %187 = arith.truncf %186 : vector<8x8xf32> to vector<8x8xbf16>
    %cst_67 = arith.constant dense<0.000000e+00> : vector<8x8xf32>
    %188 = tpu.matmul %187, %172, %cst_67 {dimension_numbers = #tpu.dot_dimension_numbers<[1], [0], [0], [1], [0, 0, 1, 1], [], []>} : vector<8x8xbf16>, vector<8x8xbf16>, vector<8x8xf32> -> vector<8x8xf32>
    %c0_68 = arith.constant 0 : index
    %c56 = arith.constant 56 : index
    %189 = vector.load %arg14[%c0_68, %c56] : memref<8x64xf32, #tpu.memory_space<vmem>>, vector<8x8xf32>
    tpu.vector_store %arg14[%c0_68, %c56], %188 {strides = array<i32>} : memref<8x64xf32, #tpu.memory_space<vmem>>, vector<8x8xf32>,
    %c0_69 = arith.constant 0 : index
    %c0_70 = arith.constant 0 : index
    %190 = vector.load %arg14[%c0_69, %c0_70] : memref<8x64xf32, #tpu.memory_space<vmem>>, vector<8x64xf32>
    %191 = arith.truncf %190 : vector<8x64xf32> to vector<8x64xbf16>
    %c0_71 = arith.constant 0 : index
    %c0_72 = arith.constant 0 : index
    %192 = vector.load %arg9[%c0_71, %c0_72] : memref<64x64xbf16, #tpu.memory_space<vmem>>, vector<64x64xbf16>
    %cst_73 = arith.constant dense<0.000000e+00> : vector<8x64xf32>
    %193 = tpu.matmul %191, %192, %cst_73 {dimension_numbers = #tpu.dot_dimension_numbers<[1], [0], [0], [1], [0, 0, 1, 1], [], []>} : vector<8x64xbf16>, vector<64x64xbf16>, vector<8x64xf32> -> vector<8x64xf32>
    %c0_74 = arith.constant 0 : index
    %c0_75 = arith.constant 0 : index
    %194 = vector.load %arg10[%c0_74, %c0_75] : memref<1x64xf32, #tpu.memory_space<vmem>>, vector<1x64xf32>
    %195 = vector.broadcast %194 : vector<1x64xf32> to vector<8x64xf32>
    %196 = arith.addf %193, %195 : vector<8x64xf32>
    %197 = arith.addf %196, %1 : vector<8x64xf32>
    %c0_76 = arith.constant 0 : index
    %c0_77 = arith.constant 0 : index
    %198 = vector.load %arg11[%c0_76, %c0_77] : memref<1x64xf32, #tpu.memory_space<vmem>>, vector<1x64xf32>
    %c0_78 = arith.constant 0 : index
    %c0_79 = arith.constant 0 : index
    %199 = vector.load %arg12[%c0_78, %c0_79] : memref<1x64xf32, #tpu.memory_space<vmem>>, vector<1x64xf32>
    %cst_80 = arith.constant dense<0.000000e+00> : vector<8xf32>
    %200 = vector.multi_reduction <add>, %197, %cst_80 [1] : vector<8x64xf32> to vector<8xf32>
    %201 = vector.shape_cast %200 : vector<8xf32> to vector<8x1xf32>
    %cst_81 = arith.constant 6.400000e+01 : f32
    %202 = vector.broadcast %cst_81 : f32 to vector<8x1xf32>
    %203 = arith.divf %201, %202 : vector<8x1xf32>
    %204 = vector.broadcast %203 : vector<8x1xf32> to vector<8x64xf32>
    %205 = arith.subf %197, %204 : vector<8x64xf32>
    %206 = arith.mulf %205, %205 : vector<8x64xf32>
    %cst_82 = arith.constant dense<0.000000e+00> : vector<8xf32>
    %207 = vector.multi_reduction <add>, %206, %cst_82 [1] : vector<8x64xf32> to vector<8xf32>
    %208 = vector.shape_cast %207 : vector<8xf32> to vector<8x1xf32>
    %cst_83 = arith.constant 6.400000e+01 : f32
    %209 = vector.broadcast %cst_83 : f32 to vector<8x1xf32>
    %210 = arith.divf %208, %209 : vector<8x1xf32>
    %cst_84 = arith.constant 9.99999996E-13 : f32
    %211 = vector.broadcast %cst_84 : f32 to vector<8x1xf32>
    %212 = arith.addf %210, %211 : vector<8x1xf32>
    %213 = math.rsqrt %212 : vector<8x1xf32>
    %214 = vector.broadcast %213 : vector<8x1xf32> to vector<8x64xf32>
    %215 = arith.mulf %205, %214 : vector<8x64xf32>
    %216 = vector.broadcast %198 : vector<1x64xf32> to vector<8x64xf32>
    %217 = arith.mulf %215, %216 : vector<8x64xf32>
    %218 = vector.broadcast %199 : vector<1x64xf32> to vector<8x64xf32>
    %219 = arith.addf %217, %218 : vector<8x64xf32>
    %c0_85 = arith.constant 0 : index
    %c0_86 = arith.constant 0 : index
    %c0_87 = arith.constant 0 : index
    %220 = vector.load %arg13[%c0_85, %c0_86, %c0_87] : memref<1x8x64xf32, #tpu.memory_space<vmem>>, vector<1x8x64xf32>
    %221 = vector.shape_cast %220 : vector<1x8x64xf32> to vector<8x64xf32>
    %222 = vector.shape_cast %219 : vector<8x64xf32> to vector<1x8x64xf32>
    tpu.vector_store %arg13[%c0_85, %c0_86, %c0_87], %222 {strides = array<i32>} : memref<1x8x64xf32, #tpu.memory_space<vmem>>, vector<1x8x64xf32>,
    return
  }
  func.func @transform_0(%arg0: i32, %arg1: i32) -> (i32, i32, i32) {
    %c0_i32 = arith.constant 0 : i32
    %c0_i32_0 = arith.constant 0 : i32
    return %arg0, %arg1, %c0_i32 : i32, i32, i32
  }
  func.func @transform_1(%arg0: i32, %arg1: i32) -> (i32, i32, i32) {
    %c0_i32 = arith.constant 0 : i32
    %c0_i32_0 = arith.constant 0 : i32
    %c0_i32_1 = arith.constant 0 : i32
    return %arg0, %c0_i32, %c0_i32_0 : i32, i32, i32
  }
  func.func @transform_2(%arg0: i32, %arg1: i32) -> (i32, i32, i32) {
    %c0_i32 = arith.constant 0 : i32
    %c0_i32_0 = arith.constant 0 : i32
    %c0_i32_1 = arith.constant 0 : i32
    return %arg0, %c0_i32, %c0_i32_0 : i32, i32, i32
  }
  func.func @transform_3(%arg0: i32, %arg1: i32) -> (i32, i32) {
    %c0_i32 = arith.constant 0 : i32
    %c0_i32_0 = arith.constant 0 : i32
    %c0_i32_1 = arith.constant 0 : i32
    return %c0_i32, %c0_i32_0 : i32, i32
  }
  func.func @transform_4(%arg0: i32, %arg1: i32) -> (i32, i32) {
    %c0_i32 = arith.constant 0 : i32
    %c0_i32_0 = arith.constant 0 : i32
    %c0_i32_1 = arith.constant 0 : i32
    return %c0_i32, %c0_i32_0 : i32, i32
  }
  func.func @transform_5(%arg0: i32, %arg1: i32) -> (i32, i32) {
    %c0_i32 = arith.constant 0 : i32
    %c0_i32_0 = arith.constant 0 : i32
    %c0_i32_1 = arith.constant 0 : i32
    return %c0_i32, %c0_i32_0 : i32, i32
  }
  func.func @transform_6(%arg0: i32, %arg1: i32) -> (i32, i32) {
    %c0_i32 = arith.constant 0 : i32
    %c0_i32_0 = arith.constant 0 : i32
    %c0_i32_1 = arith.constant 0 : i32
    return %c0_i32, %c0_i32_0 : i32, i32
  }
  func.func @transform_7(%arg0: i32, %arg1: i32) -> (i32, i32) {
    %c0_i32 = arith.constant 0 : i32
    %c0_i32_0 = arith.constant 0 : i32
    %c0_i32_1 = arith.constant 0 : i32
    return %c0_i32, %c0_i32_0 : i32, i32
  }
  func.func @transform_8(%arg0: i32, %arg1: i32) -> (i32, i32) {
    %c0_i32 = arith.constant 0 : i32
    %c0_i32_0 = arith.constant 0 : i32
    %c0_i32_1 = arith.constant 0 : i32
    return %c0_i32, %c0_i32_0 : i32, i32
  }
  func.func @transform_9(%arg0: i32, %arg1: i32) -> (i32, i32) {
    %c0_i32 = arith.constant 0 : i32
    %c0_i32_0 = arith.constant 0 : i32
    %c0_i32_1 = arith.constant 0 : i32
    return %c0_i32, %c0_i32_0 : i32, i32
  }
  func.func @transform_10(%arg0: i32, %arg1: i32) -> (i32, i32) {
    %c0_i32 = arith.constant 0 : i32
    %c0_i32_0 = arith.constant 0 : i32
    %c0_i32_1 = arith.constant 0 : i32
    return %c0_i32, %c0_i32_0 : i32, i32
  }
  func.func @transform_11(%arg0: i32, %arg1: i32) -> (i32, i32, i32) {
    %c0_i32 = arith.constant 0 : i32
    %c0_i32_0 = arith.constant 0 : i32
    return %arg0, %arg1, %c0_i32 : i32, i32, i32
  }
}

</mosaic_0001>

<bundles_post_ra>
// kernel: transformer_forward.21
= control target key start
LH: loop header
LB: loop body
LE: loop exit
PB: predicated region body
PF: predicated region fallthrough
CT: control target
= control target key end

     0   :  { %v166_v1 = vmov 0.0   ;;  %vm167_vm0 = vmmov 0   ;;  %s216_s0 = inlined_call_operand.vmem [shape: f32[16,64], index: 0, kind: input, shape index: {}]   ;;  %s217_s1 = inlined_call_operand.vmem [shape: bf16[64,128], index: 1, kind: input, shape index: {}]   ;;  %s218_s2 = inlined_call_operand.hbm [shape: f32[16,128], index: 2, kind: output, shape index: {}]  }
   0x1   :  { %v138_v0 = vld [vmem:[%s217_s1] sm:$0xff]   ;;  %121 = vmatprep.subr.bf16.mxu0 %v166_v1  ;;  %v139_v2 = vld [vmem:[%s217_s1 + $0x8] sm:$0xff]   ;;  %129 = vmatprep.mubr.msk.bf16.mxu0 %vm167_vm0, %v166_v1 }
   0x2   :  { %122 = vmatpush3.bf16.msra.mxu0 %v138_v0 }
   0x3   :  { %123 = vmatprep.subr.bf16.mxu0 %v166_v1 }
   0x4   :  { %7 = vsyncpa [#allocation3], 0  ;;  %v140_v3 = vld [vmem:[%s217_s1 + $0x10] sm:$0xff]   ;;  %v141_v4 = vld [vmem:[%s217_s1 + $0x18] sm:$0xff]   ;;  %vm48_vm1 = vcmask 523264   ;;  %s168_s21 = smov [#allocation2]  }
   0x5   :  { %v13_v5 = vld [vmem:[%s216_s0] sm:$0xff]  ;;  %v14_v6 = vld [vmem:[%s216_s0 + $0x8] sm:$0xff]  ;;  %s100_s22 = sshll.u32 %s168_s21, 4  ;;  %s101_s22 = int_to_ptr.vmem [resolvable:$true] %s100_s22 }
   0x6   :  { %124 = vmatpush3.bf16.msra.mxu0 %v139_v2  ;;  %v15_v7 = vpack.c.bf16 %v14_v6, %v13_v5  ;;  %s142_s1 = scalar_lea.vmem %s101_s22, 256  ;;  %p147_p1 = scmp.lt.s32.totalorder %s101_s22, %s101_s22 }
   0x7   :  { %125 = vmatprep.subr.bf16.mxu0 %v166_v1  ;;  %p143_p0 = scmp.ne.s32.totalorder %s101_s22, %s142_s1  ;;  %p148_p2 = scmp.lt.s32.totalorder %s142_s1, %s142_s1 }
   0x9   :  { %p149_p3 = por %p148_p2, %p147_p1 }
   0xa   :  { %126 = vmatpush3.bf16.msra.mxu0 %v140_v3 }
   0xb   :  { %127 = vmatprep.subr.bf16.mxu0 %v166_v1  ;;  %p150_p4 = pnand %p149_p3, %p143_p0 }
   0xe   :  { %128 = vmatpush3.bf16.msra.mxu0 %v141_v4 }
  0x11   :  { %130 = vmatmul.mubr.msk.bf16.vlgmr.msra.gmra.mrb[0].mxu0 %vm48_vm1, %v15_v7 }
  0xe4   :  { %v86_v8 = vpop.f32.mrb[0].mxu0 }
  0xe5   :  { %93 = vst [vmem:[#allocation2] sm:$0xff] %v86_v8  ;;  %v131_v9 = vpop.f32.mrb[1].mxu0 }
  0xe6   :  { %v89_v10 = vpop.f32.mrb[2].mxu0 }
  0xe7   :  { %94 = vst [vmem:[#allocation2 + $0x8] sm:$0xff] %v89_v10  ;;  %v132_v11 = vpop.f32.mrb[3].mxu0 }
  0xe8   :  { %153 = shalt.err (!%p150_p4)
}
  0xe9   :  { %s154_s24 = scalar_lea.hbm %s218_s2, 256 }
  0xea   :  { %p155_p5 = scmp.ne.s32.totalorder %s218_s2, %s154_s24  ;;  %p158_p6 = scmp.lt.u32.totalorder %s154_s24, %s218_s2 }
  0xec   :  { %p160_p7 = pnand %p158_p6, %p155_p5 }
  0xee   :  { %163 = shalt.err (!%p160_p7)
}
  0xef   :  { %s169_s29 = smov 128   ;;  %s170_s30 = smov 8  }
  0xf0   :  { %106 = dma.vmem_to_hbm [thread:$0]  %s101_s22, 256, %s218_s2, [#allocation3], %s169_s29, %s169_s29, %s170_s30  }
  0xf1   :  { %164 = dma.done.wait [#allocation3], 256  }
  0xf2   :  { %165 = vsyncadd [#allocation3], 4294967040 }
  0xf3   :  { %110 = vsyncpa [#allocation3], 1 }

// kernel: transformer_forward.12
= control target key start
LH: loop header
LB: loop body
LE: loop exit
PB: predicated region body
PF: predicated region fallthrough
CT: control target
= control target key end

     0   :  { %v383_v0 = vmov 0.0   ;;  %vm384_vm0 = vmmov 0   ;;  %vm69_vm1 = vcmask 523264   ;;  %s500_s1 = inlined_call_operand.vmem [shape: bf16[64,128], index: 1, kind: input, shape index: {}]   ;;  %s501_s0 = inlined_call_operand.vmem [shape: f32[16,64], index: 0, kind: input, shape index: {}]   ;;  %s502_s3 = inlined_call_operand.vmem [shape: bf16[128,64], index: 3, kind: input, shape index: {}]   ;;  %s503_s2 = inlined_call_operand.vmem [shape: f32[1,128], index: 2, kind: input, shape index: {}]   ;;  %s504_s4 = inlined_call_operand.vmem [shape: f32[1,64], index: 4, kind: input, shape index: {}]   ;;  %s505_s5 = inlined_call_operand.vmem [shape: f32[1,64], index: 5, kind: input, shape index: {}]   ;;  %s506_s6 = inlined_call_operand.vmem [shape: f32[1,64], index: 6, kind: input, shape index: {}]   ;;  %s507_s7 = inlined_call_operand.vmem [shape: f32[16,64], index: 7, kind: output, shape index: {}]  }
   0x1   :  { %329 = vmatprep.subr.bf16.mxu0 %v383_v0  ;;  %v363_v1 = vld [vmem:[%s500_s1] sm:$0xff]   ;;  %337 = vmatprep.mubr.msk.bf16.mxu0 %vm384_vm0, %v383_v0  ;;  %v364_v2 = vld [vmem:[%s500_s1 + $0x8] sm:$0xff]   ;;  %v365_v3 = vld [vmem:[%s500_s1 + $0x10] sm:$0xff]  }
   0x2   :  { %341 = vmatprep.subr.bf16.mxu1 %v383_v0  ;;  %357 = vmatprep.mubr.msk.bf16.mxu1 %vm384_vm0, %v383_v0  ;;  %v366_v4 = vld [vmem:[%s500_s1 + $0x18] sm:$0xff]   ;;  %v440_v5 = vld [vmem:[%s501_s0] sm:$0xff]  ;;  %v445_v6 = vld [vmem:[%s501_s0 + $0x8] sm:$0xff] }
   0x3   :  { %330 = vmatpush3.bf16.msra.mxu0 %v363_v1  ;;  %v29_v7 = vpack.c.bf16 %v445_v6, %v440_v5  ;;  %v367_v8 = vld [vmem:[%s502_s3] sm:$0xff]   ;;  %v368_v9 = vld [vmem:[%s502_s3 + $0x8] sm:$0xff]   ;;  %v369_v10 = vld [vmem:[%s502_s3 + $0x10] sm:$0xff]  }
   0x4   :  { %331 = vmatprep.subr.bf16.mxu0 %v383_v0  ;;  %342 = vmatpush3.bf16.msra.mxu1 %v367_v8  ;;  %v370_v11 = vld [vmem:[%s502_s3 + $0x18] sm:$0xff]   ;;  %v371_v12 = vld [vmem:[%s502_s3 + $0x20] sm:$0xff]   ;;  %v372_v13 = vld [vmem:[%s502_s3 + $0x28] sm:$0xff]  }
   0x5   :  { %343 = vmatprep.subr.bf16.mxu1 %v383_v0  ;;  %v373_v14 = vld [vmem:[%s502_s3 + $0x30] sm:$0xff]   ;;  %v374_v15 = vld [vmem:[%s502_s3 + $0x38] sm:$0xff]   ;;  %v298_v16 = vld [vmem:[%s503_s2] ss:$0 sm:$0xff] }
   0x6   :  { %v304_v42 = vld [vmem:[%s504_s4] ss:$0 sm:$0xff] }
   0x7   :  { %332 = vmatpush3.bf16.msra.mxu0 %v364_v2  ;;  %v314_v8 = vld [vmem:[%s506_s6] ss:$0 sm:$0xff] }
   0x8   :  { %333 = vmatprep.subr.bf16.mxu0 %v383_v0  ;;  %344 = vmatpush3.bf16.msra.mxu1 %v368_v9 }
   0x9   :  { %345 = vmatprep.subr.bf16.mxu1 %v383_v0 }
   0xb   :  { %334 = vmatpush3.bf16.msra.mxu0 %v365_v3 }
   0xc   :  { %335 = vmatprep.subr.bf16.mxu0 %v383_v0  ;;  %346 = vmatpush3.bf16.msra.mxu1 %v369_v10 }
   0xd   :  { %347 = vmatprep.subr.bf16.mxu1 %v383_v0 }
   0xf   :  { %336 = vmatpush3.bf16.msra.mxu0 %v366_v4 }
  0x10   :  { %348 = vmatpush3.bf16.msra.mxu1 %v370_v11 }
  0x11   :  { %349 = vmatprep.subr.bf16.mxu1 %v383_v0 }
  0x12   :  { %338 = vmatmul.mubr.msk.bf16.vlgmr.msra.gmra.mrb[0].mxu0 %vm69_vm1, %v29_v7 }
  0x14   :  { %350 = vmatpush3.bf16.msra.mxu1 %v371_v12 }
  0x15   :  { %351 = vmatprep.subr.bf16.mxu1 %v383_v0 }
  0x18   :  { %352 = vmatpush3.bf16.msra.mxu1 %v372_v13 }
  0x19   :  { %353 = vmatprep.subr.bf16.mxu1 %v383_v0 }
  0x1c   :  { %354 = vmatpush3.bf16.msra.mxu1 %v373_v14 }
  0x1d   :  { %355 = vmatprep.subr.bf16.mxu1 %v383_v0 }
  0x20   :  { %356 = vmatpush3.bf16.msra.mxu1 %v374_v15 }
  0xe5   :  { %v107_v17 = vpop.f32.mrb[0].mxu0 }
  0xe6   :  { %v108_v18 = vadd.f32 %v298_v16, %v107_v17  ;;  %v339_v19 = vpop.f32.mrb[1].mxu0 }
  0xe7   :  { %v110_v20 = vpop.f32.mrb[2].mxu0 }
  0xe8   :  { %v116_v21 = vmul.f32 0.044715, %v108_v18  ;;  %v111_v22 = vadd.f32 %v298_v16, %v110_v20  ;;  %v340_v23 = vpop.f32.mrb[3].mxu0  ;;  %v114_v36 = vmul.f32 0.5, %v108_v18 }
  0xea   :  { %v118_v24 = vmul.f32 %v116_v21, %v108_v18  ;;  %v117_v25 = vmul.f32 0.044715, %v111_v22  ;;  %v115_v37 = vmul.f32 0.5, %v111_v22 }
  0xec   :  { %v120_v26 = vmul.f32 %v118_v24, %v108_v18  ;;  %v119_v27 = vmul.f32 %v117_v25, %v111_v22 }
  0xee   :  { %v121_v28 = vmul.f32 %v119_v27, %v111_v22  ;;  %v122_v29 = vadd.f32 %v120_v26, %v108_v18 }
  0xf0   :  { %v123_v30 = vadd.f32 %v121_v28, %v111_v22  ;;  %v124_v31 = vmul.f32 0.7978846, %v122_v29 }
  0xf2   :  { %v125_v32 = vmul.f32 0.7978846, %v123_v30  ;;  %375 = vtanh.f32 %v124_v31 }
  0xf4   :  { %377 = vtanh.f32 %v125_v32 }
  0xfc   :  { %v376_v33 = vpop.eup %375 }
  0xfd   :  { %v128_v34 = vadd.f32 1.0, %v376_v33 }
  0xfe   :  { %v378_v35 = vpop.eup %377 }
  0xff   :  { %v129_v38 = vadd.f32 1.0, %v378_v35  ;;  %v130_v39 = vmul.f32 %v128_v34, %v114_v36 }
 0x101   :  { %v131_v40 = vmul.f32 %v129_v38, %v115_v37 }
 0x103   :  { %v132_v41 = vpack.c.bf16 %v131_v40, %v130_v39 }
 0x105   :  { %358 = vmatmul.mubr.bf16.vlgmr.msra.gmra.mrb[0].mxu1 %v132_v41 }
 0x1d8   :  { %v238_v43 = vpop.f32.mrb[0].mxu1 }
 0x1d9   :  { %v239_v44 = vadd.f32 %v304_v42, %v238_v43  ;;  %v359_v45 = vpop.f32.mrb[1].mxu1 }
 0x1da   :  { %v241_v46 = vpop.f32.mrb[2].mxu1 }
 0x1db   :  { %v242_v47 = vadd.f32 %v304_v42, %v241_v46  ;;  %v360_v48 = vpop.f32.mrb[3].mxu1  ;;  %v245_v49 = vadd.f32 %v239_v44, %v440_v5 }
 0x1dd   :  { %v249_v50 = vsel %vm69_vm1, %v245_v49, 0.0  ;;  %v246_v51 = vadd.f32 %v242_v47, %v445_v6  ;;  %v313_v6 = vld [vmem:[%s505_s5] ss:$0 sm:$0xff] }
 0x1de   :  { %250 = vadd.xlane.f32.xlu0 %v249_v50 }
 0x1df   :  { %v252_v52 = vsel %vm69_vm1, %v246_v51, 0.0 }
 0x1e2   :  { %253 = vadd.xlane.f32.xlu0 %v252_v52 }
 0x26b   :  { %v251_v53 = vpop.xlane.xlu0 %250 }
 0x26c   :  { %v256_v54 = vmul.f32 0.015625, %v251_v53 }
 0x26e   :  { %v258_v55 = vsub.f32 %v245_v49, %v256_v54 }
 0x26f   :  { %v254_v56 = vpop.xlane.xlu0 %253 }
 0x270   :  { %v257_v57 = vmul.f32 0.015625, %v254_v56  ;;  %v260_v58 = vmul.f32 %v258_v55, %v258_v55 }
 0x272   :  { %v259_v59 = vsub.f32 %v246_v51, %v257_v57  ;;  %v262_v60 = vsel %vm69_vm1, %v260_v58, 0.0 }
 0x273   :  { %263 = vadd.xlane.f32.xlu1 %v262_v60 }
 0x274   :  { %v261_v61 = vmul.f32 %v259_v59, %v259_v59 }
 0x276   :  { %v265_v62 = vsel %vm69_vm1, %v261_v61, 0.0 }
 0x277   :  { %266 = vadd.xlane.f32.xlu1 %v265_v62 }
 0x300   :  { %v264_v63 = vpop.xlane.xlu1 %263 }
 0x301   :  { %v268_v0 = vmul.f32 0.015625, %v264_v63 }
 0x303   :  { %v270_v1 = vadd.f32 1e-12, %v268_v0 }
 0x304   :  { %v267_v2 = vpop.xlane.xlu1 %266 }
 0x305   :  { %379 = vrsqrt.f32 %v270_v1  ;;  %v269_v3 = vmul.f32 0.015625, %v267_v2 }
 0x307   :  { %v271_v4 = vadd.f32 1e-12, %v269_v3 }
 0x309   :  { %381 = vrsqrt.f32 %v271_v4 }
 0x30f   :  { %v380_v5 = vpop.eup %379 }
 0x310   :  { %v274_v7 = vmul.f32 %v380_v5, %v258_v55 }
 0x312   :  { %v282_v9 = vmul.f32 %v313_v6, %v274_v7 }
 0x313   :  { %v382_v10 = vpop.eup %381 }
 0x314   :  { %v290_v11 = vadd.f32 %v314_v8, %v282_v9  ;;  %v275_v12 = vmul.f32 %v382_v10, %v259_v59 }
 0x316   :  { %292 = vst.msk [vmem:[%s507_s7] sm:$0xff] %vm69_vm1, %v290_v11  ;;  %v283_v13 = vmul.f32 %v313_v6, %v275_v12 }
 0x318   :  { %v291_v14 = vadd.f32 %v314_v8, %v283_v13 }
 0x31a   :  { %293 = vst.msk [vmem:[%s507_s7 + $0x8] sm:$0xff] %vm69_vm1, %v291_v14 }

// kernel: transformer_forward.11
= control target key start
LH: loop header
LB: loop body
LE: loop exit
PB: predicated region body
PF: predicated region fallthrough
CT: control target
= control target key end

     0   :  { %s2192_s17 = smov 0   ;;  %s2194_s18 = smov 0   ;;  %s2507_s0 = inlined_call_operand.vmem [shape: f32[2,8,64], index: 0, kind: input, shape index: {}, may-alias: {0,1}]   ;;  %s2508_s1 = inlined_call_operand.vmem [shape: f32[2,8,64], index: 1, kind: input, shape index: {}, may-alias: {0,1}]   ;;  %s2509_s2 = inlined_call_operand.vmem [shape: f32[2,1,8], index: 2, kind: input, shape index: {}]   ;;  %s2510_s3 = inlined_call_operand.vmem [shape: bf16[64,64], index: 3, kind: input, shape index: {}]   ;;  %s2511_s4 = inlined_call_operand.vmem [shape: f32[1,64], index: 4, kind: input, shape index: {}]   ;;  %s2512_s5 = inlined_call_operand.vmem [shape: bf16[64,128], index: 5, kind: input, shape index: {}]   ;;  %s2513_s6 = inlined_call_operand.vmem [shape: f32[1,128], index: 6, kind: input, shape index: {}]   ;;  %s2514_s7 = inlined_call_operand.vmem [shape: bf16[64,64], index: 7, kind: input, shape index: {}]   ;;  %s2515_s8 = inlined_call_operand.vmem [shape: f32[1,64], index: 8, kind: input, shape index: {}]   ;;  %s2516_s9 = inlined_call_operand.vmem [shape: f32[1,64], index: 9, kind: input, shape index: {}]   ;;  %s2517_s10 = inlined_call_operand.vmem [shape: f32[1,64], index: 10, kind: input, shape index: {}]   ;;  %s2518_s11 = inlined_call_operand.vmem [shape: f32[2,8,64], index: 11, kind: output, shape index: {}]  }
   0x1   :  { %s2196_s19 = smov 0  }
   0x2 LB: > { %s33_s20 = sadd.s32 1, %s2107_s18  ;;  %p1779_p0 = scmp.ge.s32.totalorder %s2111_s19, 1  ;;  %s2111_s19 = sphi %s2196_s19, %s21_s19   ;;  %s2107_s18 = sphi %s2194_s18, %s2520_s18   ;;  %s2103_s17 = sphi %s2192_s17, %s2519_s17  }
   0x3   : > { %p35_p1 = scmp.ge.s32.totalorder %s33_s20, 2  ;;  %p372_p2 = scmp.lt.s32.totalorder %s2111_s19, 3 }
   0x5   : > { %s2522_s20 = smov (%p35_p1, %s33_s20), 0  ;;  %p373_p3 = pnand %p1779_p0, %p372_p2 }
   0x6   : > { %v2043_v0 = vld [vmem:[%s2512_s5] sm:$0xff] (!%p373_p3)   ;;  %v2113_v1 = vmov (!%p373_p3), 0.0   ;;  %v2045_v3 = vld [vmem:[%s2512_s5 + $0x8] sm:$0xff] (!%p373_p3)   ;;  %vm2114_vm0 = vmmov (!%p373_p3), 0   ;;  %p423_p4 = scmp.lt.s32.totalorder (!%p373_p3), %s2103_s17, 1  ;;  %v2047_v5 = vld [vmem:[%s2512_s5 + $0x10] sm:$0xff] (!%p373_p3)   ;;  %v617_v49 = vlaneseq (!%p373_p3) }
   0x7   : > { %376 = sbr.rel (%p373_p3) target bundleno = 1863 (0x747), region = 64  ;;  %1880 = vmatprep.subr.bf16.mxu1 (!%p373_p3), %v2113_v1  ;;  %1868 = vmatprep.subr.bf16.mxu0 (!%p373_p3), %v2113_v1  ;;  %v2044_v2 = vld [vmem:[%s2510_s3] sm:$0xff] (!%p373_p3)   ;;  %v2046_v4 = vld [vmem:[%s2510_s3 + $0x8] sm:$0xff] (!%p373_p3)   ;;  %v2048_v6 = vld [vmem:[%s2510_s3 + $0x10] sm:$0xff] (!%p373_p3)   ;;  %vm488_vm1 = vcmask (!%p373_p3), 523264   ;;  %vm625_vm2 = vcmask (!%p373_p3), 64512  }
   0x8   : > { %1881 = vmatpush3.bf16.msra.mxu1 (!%p373_p3), %v2043_v0  ;;  %1888 = vmatprep.mubr.msk.bf16.mxu1 (!%p373_p3), %vm2114_vm0, %v2113_v1  ;;  %v2049_v7 = vld [vmem:[%s2512_s5 + $0x18] sm:$0xff] (!%p373_p3)   ;;  %v1789_v13 = vld [vmem:[%s2513_s6] ss:$0 sm:$0xff] (!%p373_p3)  ;;  %s2115_s15 = smov (!%p373_p3), 112   ;;  %s2116_s16 = smov (!%p373_p3), 120   ;;  %v618_v51 = vshrl.u32 (!%p373_p3), %v617_v49, 7 }
   0x9   : > { %1882 = vmatprep.subr.bf16.mxu1 (!%p373_p3), %v2113_v1  ;;  %1869 = vmatpush3.bf16.msra.mxu0 (!%p373_p3), %v2044_v2  ;;  %v2050_v9 = vld [vmem:[%s2510_s3 + $0x18] sm:$0xff] (!%p373_p3)   ;;  %v1783_v14 = vld [vmem:[%s2511_s4] ss:$0 sm:$0xff] (!%p373_p3)  ;;  %s2118_s22 = smov (!%p373_p3), 96   ;;  %s2119_s23 = smov (!%p373_p3), 88   ;;  %v2122_v53 = vmov (!%p373_p3), 0  }
   0xa   : > { %1870 = vmatprep.subr.bf16.mxu0 (!%p373_p3), %v2113_v1  ;;  %1876 = vmatprep.mubr.msk.bf16.mxu0 (!%p373_p3), %vm2114_vm0, %v2113_v1  ;;  %s2120_s24 = smov (!%p373_p3), 80   ;;  %s2121_s25 = smov (!%p373_p3), 72   ;;  %v619_v52 = vsub.s32 (!%p373_p3), 0, %v618_v51  ;;  %v2123_v56 = vmov (!%p373_p3), -10000.0   ;;  %vm692_vm5 = vcmask (!%p373_p3), 1043456   ;;  %vm854_vm6 = vcmask (!%p373_p3), 130112  }
   0xb   : > { %s2125_s29 = smov (!%p373_p3), 64   ;;  %s2126_s30 = smov (!%p373_p3), 48   ;;  %vm972_vm7 = vcmask (!%p373_p3), 195712   ;;  %vm1090_vm8 = vcmask (!%p373_p3), 261312   ;;  %vm1208_vm9 = vcmask (!%p373_p3), 326912   ;;  %vm1326_vm10 = vcmask (!%p373_p3), 392512  }
   0xc   : > { %1883 = vmatpush3.bf16.msra.mxu1 (!%p373_p3), %v2045_v3  ;;  %s2127_s13 = smov (!%p373_p3), 40   ;;  %s2128_s14 = smov (!%p373_p3), 24   ;;  %vm1444_vm11 = vcmask (!%p373_p3), 458112   ;;  %vm1562_vm12 = vcmask (!%p373_p3), 523712  }
   0xd   : > { %1884 = vmatprep.subr.bf16.mxu1 (!%p373_p3), %v2113_v1  ;;  %1871 = vmatpush3.bf16.msra.mxu0 (!%p373_p3), %v2046_v4 }
   0xe   : > { %s2524_s17 = smov (!%p423_p4, %s2103_s17), 1  ;;  %1872 = vmatprep.subr.bf16.mxu0 %v2113_v1 }
   0xf   : > { %s2236_s12 = sshll.u32 %s2524_s17, 3  ;;  %s436_s28 = scalar_lea.vmem %s2509_s2, %s2524_s17 }
  0x10   : > { %s433_s21 = scalar_lea.vmem %s2508_s1, %s2236_s12  ;;  %s429_s26 = scalar_lea.vmem %s2507_s0, %s2236_s12  ;;  %1885 = vmatpush3.bf16.msra.mxu1 %v2047_v5  ;;  %v614_v50 = vld [vmem:[%s436_s28] sm:$0x1] }
  0x11   : > { %v446_v8 = vld [vmem:[%s433_s21] sm:$0xff]  ;;  %1886 = vmatprep.subr.bf16.mxu1 %v2113_v1  ;;  %1873 = vmatpush3.bf16.msra.mxu0 %v2048_v6  ;;  %s2117_s21 = smov 104   ;;  %vm615_vm3 = vcmp.gt.f32.partialorder %v614_v50, 0.5  ;;  %s2124_s17 = smov 56  }
  0x12   : > { %v2257_v10 = vld [vmem:[%s429_s26] sm:$0xff]  ;;  %1874 = vmatprep.subr.bf16.mxu0 %v2113_v1  ;;  %v448_v11 = vpack.c.bf16 %v446_v8, %v446_v8  ;;  %v616_v54 = vsel %vm615_vm3, 1, %v2122_v53 }
  0x13   : > { %v447_v12 = vpack.c.bf16 %v2257_v10, %v2257_v10  ;;  %v620_v55 = vrot.slane %v616_v54, %v619_v52 }
  0x14   : > { %1887 = vmatpush3.bf16.msra.mxu1 %v2049_v7 }
  0x15   : > { %1875 = vmatpush3.bf16.msra.mxu0 %v2050_v9  ;;  %1892 = vmatprep.subr.bf16.mxu1 %v2113_v1  ;;  %vm621_vm4 = vcmp.eq.s32.totalorder %v620_v55, 1 }
  0x16   : > { %1904 = vmatprep.subr.bf16.mxu0 %v2113_v1  ;;  %v2331_v57 = vsel %vm621_vm4, 0.0, %v2123_v56 }
  0x17   : > { %1889 = vmatmul.mubr.msk.bf16.vlgmr.msra.gmra.mrb[0].mxu1 %vm488_vm1, %v448_v11 }
  0x18   : > { %1877 = vmatmul.mubr.msk.bf16.vlgmr.msra.gmra.mrb[0].mxu0 %vm488_vm1, %v447_v12  ;;  %1894 = vmatprep.mubr.msk.bf16.mxu1 %vm2114_vm0, %v2113_v1 }
  0x19   : > { %1906 = vmatprep.mubr.msk.bf16.mxu0 %vm2114_vm0, %v2113_v1 }
  0xea   : > { %v608_v15 = vpop.f32.mrb[0].mxu1 }
  0xeb   : > { %v609_v16 = vadd.f32 %v1789_v13, %v608_v15  ;;  %v1890_v17 = vpop.f32.mrb[1].mxu1  ;;  %v526_v18 = vpop.f32.mrb[0].mxu0 }
  0xec   : > { %v611_v19 = vpop.f32.mrb[2].mxu1  ;;  %v527_v20 = vadd.f32 %v1783_v14, %v526_v18  ;;  %v1878_v21 = vpop.f32.mrb[1].mxu0 }
  0xed   : > { %v2277_v22 = vpack.c.bf16 %v609_v16, %v609_v16  ;;  %v1891_v23 = vpop.f32.mrb[3].mxu1  ;;  %v529_v24 = vpop.f32.mrb[2].mxu0 }
  0xee   : > { %v1879_v25 = vpop.f32.mrb[3].mxu0  ;;  %v623_v26 = vpack.c.bf16 %v527_v20, %v527_v20 }
  0xef   : > { %858 = vrot.lane.b32.xlu1 %v2277_v22, %s2115_s15  ;;  %740 = vrot.lane.b32.xlu0 %v2277_v22, %s2116_s16  ;;  %v630_v27 = vsel %vm625_vm2, %v2277_v22, 0 }
  0xf0   : > { %1893 = vmatpush3.bf16.xpose.msra.mxu1 %v630_v27 }
  0xf1   : > { %1898 = vmatprep.subr.bf16.mxu1 %v2113_v1 }
  0xf3   : > { %856 = vrot.lane.b32.xlu1 %v623_v26, %s2115_s15  ;;  %738 = vrot.lane.b32.xlu0 %v623_v26, %s2116_s16  ;;  %s2129_s15 = smov 16   ;;  %s2130_s16 = smov 8  }
  0xf7   : > { %974 = vrot.lane.b32.xlu1 %v623_v26, %s2117_s21  ;;  %976 = vrot.lane.b32.xlu0 %v2277_v22, %s2117_s21  ;;  %s2131_s21 = smov 32  }
  0xf8   : > { %1895 = vmatmul.mubr.msk.bf16.vlgmr.msra.gmra.mrb[4].mxu1 %vm625_vm2, %v623_v26 }
  0xf9   : > { %1900 = vmatprep.mubr.msk.bf16.mxu1 %vm2114_vm0, %v2113_v1 }
  0xfb   : > { %1092 = vrot.lane.b32.xlu1 %v623_v26, %s2118_s22  ;;  %1094 = vrot.lane.b32.xlu0 %v2277_v22, %s2118_s22 }
  0xff   : > { %1210 = vrot.lane.b32.xlu1 %v623_v26, %s2119_s23  ;;  %1212 = vrot.lane.b32.xlu0 %v2277_v22, %s2119_s23  ;;  %s443_s23 = scalar_lea.vmem %s2518_s11, %s2236_s12 }
 0x103   : > { %1328 = vrot.lane.b32.xlu1 %v623_v26, %s2120_s24  ;;  %1330 = vrot.lane.b32.xlu0 %v2277_v22, %s2120_s24 }
 0x107   : > { %1446 = vrot.lane.b32.xlu1 %v623_v26, %s2121_s25  ;;  %1448 = vrot.lane.b32.xlu0 %v2277_v22, %s2121_s25 }
 0x161   : > { %v741_v28 = vpop.permute.xlu0 %740  ;;  %v859_v30 = vpop.permute.xlu1 %858 }
 0x162   : > { %v746_v29 = vsel %vm625_vm2, %v741_v28, 0  ;;  %v864_v32 = vsel %vm625_vm2, %v859_v30, 0 }
 0x163   : > { %1905 = vmatpush3.bf16.xpose.msra.mxu0 %v746_v29 }
 0x164   : > { %1916 = vmatprep.subr.bf16.mxu0 %v2113_v1 }
 0x165   : > { %v739_v31 = vpop.permute.xlu0 %738  ;;  %v857_v34 = vpop.permute.xlu1 %856 }
 0x169   : > { %v977_v33 = vpop.permute.xlu0 %976  ;;  %v975_v37 = vpop.permute.xlu1 %974 }
 0x16a   : > { %1907 = vmatmul.mubr.msk.bf16.vlgmr.msra.gmra.mrb[4].mxu0 %vm625_vm2, %v739_v31  ;;  %v982_v35 = vsel %vm625_vm2, %v977_v33, 0 }
 0x16b   : > { %1917 = vmatpush3.bf16.xpose.msra.mxu0 %v864_v32  ;;  %1918 = vmatprep.mubr.msk.bf16.mxu0 %vm2114_vm0, %v2113_v1 }
 0x16c   : > { %1928 = vmatprep.subr.bf16.mxu0 %v2113_v1 }
 0x16d   : > { %v1095_v36 = vpop.permute.xlu0 %1094  ;;  %v1093_v40 = vpop.permute.xlu1 %1092 }
 0x16e   : > { %v1100_v38 = vsel %vm625_vm2, %v1095_v36, 0 }
 0x171   : > { %v1213_v39 = vpop.permute.xlu0 %1212  ;;  %v1211_v43 = vpop.permute.xlu1 %1210 }
 0x172   : > { %1919 = vmatmul.mubr.msk.bf16.vlgmr.msra.gmra.mrb[8].mxu0 %vm625_vm2, %v857_v34  ;;  %v1218_v41 = vsel %vm625_vm2, %v1213_v39, 0 }
 0x173   : > { %1929 = vmatpush3.bf16.xpose.msra.mxu0 %v982_v35  ;;  %1930 = vmatprep.mubr.msk.bf16.mxu0 %vm2114_vm0, %v2113_v1 }
 0x174   : > { %1940 = vmatprep.subr.bf16.mxu0 %v2113_v1 }
 0x175   : > { %v1331_v42 = vpop.permute.xlu0 %1330  ;;  %v1329_v46 = vpop.permute.xlu1 %1328 }
 0x176   : > { %v1336_v44 = vsel %vm625_vm2, %v1331_v42, 0 }
 0x179   : > { %v1449_v45 = vpop.permute.xlu0 %1448  ;;  %v1447_v48 = vpop.permute.xlu1 %1446 }
 0x17a   : > { %1931 = vmatmul.mubr.msk.bf16.vlgmr.msra.gmra.mrb[12].mxu0 %vm625_vm2, %v975_v37  ;;  %v1454_v47 = vsel %vm625_vm2, %v1449_v45, 0 }
 0x17b   : > { %1941 = vmatpush3.bf16.xpose.msra.mxu0 %v1100_v38  ;;  %1942 = vmatprep.mubr.msk.bf16.mxu0 %vm2114_vm0, %v2113_v1 }
 0x17c   : > { %1952 = vmatprep.subr.bf16.mxu0 %v2113_v1 }
 0x182   : > { %1943 = vmatmul.mubr.msk.bf16.vlgmr.msra.gmra.mrb[16].mxu0 %vm625_vm2, %v1093_v40 }
 0x183   : > { %1953 = vmatpush3.bf16.xpose.msra.mxu0 %v1218_v41  ;;  %1954 = vmatprep.mubr.msk.bf16.mxu0 %vm2114_vm0, %v2113_v1 }
 0x184   : > { %1964 = vmatprep.subr.bf16.mxu0 %v2113_v1 }
 0x18a   : > { %1955 = vmatmul.mubr.msk.bf16.vlgmr.msra.gmra.mrb[20].mxu0 %vm625_vm2, %v1211_v43 }
 0x18b   : > { %1965 = vmatpush3.bf16.xpose.msra.mxu0 %v1336_v44  ;;  %1966 = vmatprep.mubr.msk.bf16.mxu0 %vm2114_vm0, %v2113_v1 }
 0x18c   : > { %1976 = vmatprep.subr.bf16.mxu0 %v2113_v1 }
 0x192   : > { %1967 = vmatmul.mubr.msk.bf16.vlgmr.msra.gmra.mrb[24].mxu0 %vm625_vm2, %v1329_v46 }
 0x193   : > { %1977 = vmatpush3.bf16.xpose.msra.mxu0 %v1454_v47  ;;  %1978 = vmatprep.mubr.msk.bf16.mxu0 %vm2114_vm0, %v2113_v1 }
 0x194   : > { %1988 = vmatprep.subr.bf16.mxu0 %v2113_v1 }
 0x19a   : > { %1979 = vmatmul.mubr.msk.bf16.vlgmr.msra.gmra.mrb[28].mxu0 %vm625_vm2, %v1447_v48 }
 0x19b   : > { %1996 = vmatprep.mubr.msk.bf16.mxu0 %vm2114_vm0, %v2113_v1 }
 0x1cb   : > { %v666_v58 = vpop.f32.mrb[4].mxu1 }
 0x1cc   : > { %v672_v59 = vmul.f32 0.35355338, %v666_v58  ;;  %v1896_v60 = vpop.f32.mrb[5].mxu1 }
 0x1cd   : > { %v669_v61 = vpop.f32.mrb[6].mxu1 }
 0x1ce   : > { %v1897_v62 = vpop.f32.mrb[7].mxu1  ;;  %v673_v63 = vadd.f32 %v672_v59, %v2331_v57 }
 0x1d0   : > { %v674_v0 = vsel %vm625_vm2, %v673_v63, -inf }
 0x1d1   : > { %675 = vmax.xlane.f32.xlu0 %v674_v0 }
 0x23d   : > { %v782_v2 = vpop.f32.mrb[4].mxu0 }
 0x23e   : > { %v788_v3 = vmul.f32 0.35355338, %v782_v2  ;;  %v1908_v4 = vpop.f32.mrb[5].mxu0 }
 0x23f   : > { %v785_v5 = vpop.f32.mrb[6].mxu0 }
 0x240   : > { %v1909_v6 = vpop.f32.mrb[7].mxu0  ;;  %v2336_v7 = vadd.f32 %v788_v3, %v2331_v57 }
 0x242   : > { %v790_v8 = vsel %vm625_vm2, %v2336_v7, -inf }
 0x243   : > { %791 = vmax.xlane.f32.xlu1 %v790_v8 }
 0x245   : > { %v900_v9 = vpop.f32.mrb[8].mxu0 }
 0x246   : > { %v906_v11 = vmul.f32 0.35355338, %v900_v9  ;;  %v1920_v12 = vpop.f32.mrb[9].mxu0 }
 0x247   : > { %v903_v13 = vpop.f32.mrb[10].mxu0 }
 0x248   : > { %v1921_v14 = vpop.f32.mrb[11].mxu0  ;;  %v907_v15 = vadd.f32 %v906_v11, %v2331_v57 }
 0x24a   : > { %v908_v16 = vsel %vm625_vm2, %v907_v15, -inf }
 0x24b   : > { %909 = vmax.xlane.f32.xlu0 %v908_v16 }
 0x24d   : > { %v1018_v17 = vpop.f32.mrb[12].mxu0 }
 0x24e   : > { %v1024_v18 = vmul.f32 0.35355338, %v1018_v17  ;;  %v1932_v19 = vpop.f32.mrb[13].mxu0 }
 0x24f   : > { %v1021_v20 = vpop.f32.mrb[14].mxu0 }
 0x250   : > { %v1933_v21 = vpop.f32.mrb[15].mxu0  ;;  %v2343_v23 = vadd.f32 %v1024_v18, %v2331_v57 }
 0x252   : > { %v1026_v24 = vsel %vm625_vm2, %v2343_v23, -inf }
 0x253   : > { %1027 = vmax.xlane.f32.xlu0 %v1026_v24 }
 0x255   : > { %v1136_v25 = vpop.f32.mrb[16].mxu0 }
 0x256   : > { %v1142_v26 = vmul.f32 0.35355338, %v1136_v25  ;;  %v1944_v27 = vpop.f32.mrb[17].mxu0 }
 0x257   : > { %v1139_v28 = vpop.f32.mrb[18].mxu0 }
 0x258   : > { %v1945_v29 = vpop.f32.mrb[19].mxu0  ;;  %v2348_v30 = vadd.f32 %v1142_v26, %v2331_v57 }
 0x25a   : > { %v1144_v31 = vsel %vm625_vm2, %v2348_v30, -inf }
 0x25b   : > { %1145 = vmax.xlane.f32.xlu1 %v1144_v31 }
 0x25d   : > { %v1254_v32 = vpop.f32.mrb[20].mxu0 }
 0x25e   : > { %v1260_v33 = vmul.f32 0.35355338, %v1254_v32  ;;  %v1956_v34 = vpop.f32.mrb[21].mxu0  ;;  %v676_v50 = vpop.xlane.xlu0 %675 }
 0x25f   : > { %v1257_v35 = vpop.f32.mrb[22].mxu0  ;;  %v677_v51 = vsub.f32 %v673_v63, %v676_v50 }
 0x260   : > { %v1957_v36 = vpop.f32.mrb[23].mxu0  ;;  %v2353_v37 = vadd.f32 %v1260_v33, %v2331_v57 }
 0x261   : > { %v678_v52 = vmul.f32 1.442695, %v677_v51 }
 0x262   : > { %v1262_v38 = vsel %vm625_vm2, %v2353_v37, -inf }
 0x263   : > { %1263 = vmax.xlane.f32.xlu0 %v1262_v38  ;;  %2055 = vpow2.f32 %v678_v52 }
 0x265   : > { %v1372_v39 = vpop.f32.mrb[24].mxu0 }
 0x266   : > { %v1378_v40 = vmul.f32 0.35355338, %v1372_v39  ;;  %v1968_v41 = vpop.f32.mrb[25].mxu0 }
 0x267   : > { %v1375_v42 = vpop.f32.mrb[26].mxu0 }
 0x268   : > { %v1969_v43 = vpop.f32.mrb[27].mxu0  ;;  %v1379_v44 = vadd.f32 %v1378_v40, %v2331_v57 }
 0x26a   : > { %v1380_v45 = vsel %vm625_vm2, %v1379_v44, -inf }
 0x26b   : > { %1381 = vmax.xlane.f32.xlu1 %v1380_v45 }
 0x26d   : > { %v1490_v46 = vpop.f32.mrb[28].mxu0  ;;  %v2364_v56 = vpop.eup %2055 }
 0x26e   : > { %v1980_v47 = vpop.f32.mrb[29].mxu0  ;;  %v1496_v53 = vmul.f32 0.35355338, %v1490_v46  ;;  %v680_v58 = vsel %vm625_vm2, %v2364_v56, 0.0 }
 0x26f   : > { %v1493_v48 = vpop.f32.mrb[30].mxu0 }
 0x270   : > { %v1981_v49 = vpop.f32.mrb[31].mxu0  ;;  %v1497_v54 = vadd.f32 %v1496_v53, %v2331_v57 }
 0x272   : > { %v1498_v55 = vsel %vm625_vm2, %v1497_v54, -inf }
 0x279   : > { %802 = vrot.lane.b32.xlu0 %v2277_v22, %s2124_s17 }
 0x27c   : > { %687 = vrot.lane.b32.xlu1 %v2277_v22, %s2125_s29 }
 0x298   : > { %1499 = vmax.xlane.f32.xlu0 %v1498_v55 }
 0x2a0   : > { %681 = vadd.xlane.f32.xlu1 %v680_v58 }
 0x2d0   : > { %v792_v59 = vpop.xlane.xlu1 %791 }
 0x2d1   : > { %v793_v60 = vsub.f32 %v2336_v7, %v792_v59 }
 0x2d3   : > { %v794_v61 = vmul.f32 1.442695, %v793_v60 }
 0x2d5   : > { %2057 = vpow2.f32 %v794_v61 }
 0x2d8   : > { %v910_v62 = vpop.xlane.xlu0 %909 }
 0x2d9   : > { %v911_v63 = vsub.f32 %v907_v15, %v910_v62 }
 0x2db   : > { %v912_v0 = vmul.f32 1.442695, %v911_v63 }
 0x2dd   : > { %2059 = vpow2.f32 %v912_v0 }
 0x2df   : > { %v2369_v2 = vpop.eup %2057 }
 0x2e0   : > { %v796_v57 = vsel %vm625_vm2, %v2369_v2, 0.0  ;;  %v1028_v8 = vpop.xlane.xlu0 %1027 }
 0x2e1   : > { %797 = vadd.xlane.f32.xlu0 %v796_v57  ;;  %v1029_v11 = vsub.f32 %v2343_v23, %v1028_v8 }
 0x2e3   : > { %v1030_v12 = vmul.f32 1.442695, %v1029_v11 }
 0x2e5   : > { %2061 = vpow2.f32 %v1030_v12 }
 0x2e7   : > { %v2373_v3 = vpop.eup %2059 }
 0x2e8   : > { %v914_v4 = vsel %vm625_vm2, %v2373_v3, 0.0  ;;  %v1146_v5 = vpop.xlane.xlu1 %1145 }
 0x2e9   : > { %915 = vadd.xlane.f32.xlu1 %v914_v4  ;;  %v1147_v13 = vsub.f32 %v2348_v30, %v1146_v5 }
 0x2eb   : > { %v1148_v16 = vmul.f32 1.442695, %v1147_v13 }
 0x2ed   : > { %2063 = vpow2.f32 %v1148_v16 }
 0x2ef   : > { %v2386_v20 = vpop.eup %2061 }
 0x2f0   : > { %v1264_v14 = vpop.xlane.xlu0 %1263  ;;  %v1032_v21 = vsel %vm625_vm2, %v2386_v20, 0.0 }
 0x2f1   : > { %v1265_v15 = vsub.f32 %v2353_v37, %v1264_v14 }
 0x2f3   : > { %v1266_v18 = vmul.f32 1.442695, %v1265_v15 }
 0x2f4   : > { %v803_v29 = vpop.permute.xlu0 %802 }
 0x2f5   : > { %2065 = vpow2.f32 %v1266_v18  ;;  %v808_v39 = vsel %vm692_vm5, %v803_v29, 0 }
 0x2f7   : > { %920 = vrot.lane.b32.xlu0 %v2277_v22, %s2126_s30  ;;  %v2390_v23 = vpop.eup %2063 }
 0x2f8   : > { %v1382_v6 = vpop.xlane.xlu1 %1381  ;;  %v1150_v25 = vsel %vm625_vm2, %v2390_v23, 0.0 }
 0x2f9   : > { %v1383_v17 = vsub.f32 %v1379_v44, %v1382_v6 }
 0x2fa   : > { %1038 = vrot.lane.b32.xlu1 %v2277_v22, %s2127_s13 }
 0x2fb   : > { %v1384_v19 = vmul.f32 1.442695, %v1383_v17 }
 0x2fc   : > { %v688_v7 = vpop.permute.xlu1 %687 }
 0x2fd   : > { %v694_v9 = vsel %vm692_vm5, %v688_v7, 0  ;;  %2067 = vpow2.f32 %v1384_v19 }
 0x2fe   : > { %1899 = vmatpush3.bf16.msra.mxu1 %v694_v9 }
 0x2ff   : > { %1910 = vmatprep.subr.bf16.mxu1 %v2113_v1  ;;  %v2392_v24 = vpop.eup %2065 }
 0x300   : > { %v1268_v27 = vsel %vm625_vm2, %v2392_v24, 0.0 }
 0x307   : > { %v2396_v26 = vpop.eup %2067 }
 0x308   : > { %v1386_v28 = vsel %vm625_vm2, %v2396_v26, 0.0 }
 0x316   : > { %1033 = vadd.xlane.f32.xlu0 %v1032_v21 }
 0x31a   : > { %1151 = vadd.xlane.f32.xlu0 %v1150_v25 }
 0x31e   : > { %1269 = vadd.xlane.f32.xlu1 %v1268_v27  ;;  %1387 = vadd.xlane.f32.xlu0 %v1386_v28 }
 0x325   : > { %v1500_v30 = vpop.xlane.xlu0 %1499 }
 0x326   : > { %v1501_v31 = vsub.f32 %v1497_v54, %v1500_v30 }
 0x328   : > { %v1502_v32 = vmul.f32 1.442695, %v1501_v31 }
 0x32a   : > { %2069 = vpow2.f32 %v1502_v32 }
 0x32d   : > { %v682_v33 = vpop.xlane.xlu1 %681 }
 0x32e   : > { %2071 = vrcp.f32 %v682_v33 }
 0x32f   : > { %1274 = vrot.lane.b32.xlu1 %v2277_v22, %s2128_s14 }
 0x333   : > { %1392 = vrot.lane.b32.xlu1 %v2277_v22, %s2129_s15 }
 0x334   : > { %v2406_v34 = vpop.eup %2069 }
 0x335   : > { %v1504_v35 = vsel %vm625_vm2, %v2406_v34, 0.0 }
 0x336   : > { %1505 = vadd.xlane.f32.xlu0 %v1504_v35 }
 0x337   : > { %1510 = vrot.lane.b32.xlu1 %v2277_v22, %s2130_s16 }
 0x338   : > { %v2072_v36 = vpop.eup %2071 }
 0x339   : > { %v684_v37 = vmul.f32 %v2072_v36, %v2364_v56 }
 0x33b   : > { %v685_v38 = vpack.c.bf16 %v684_v37, %v684_v37 }
 0x33d   : > { %1901 = vmatmul.mubr.msk.bf16.vlgmr.msra.gmra.mrb[8].mxu1 %vm625_vm2, %v685_v38  ;;  %v2051_v38 = vld [vmem:[%s2514_s7] sm:$0xff]  }
 0x33e   : > { %1911 = vmatpush3.bf16.msra.mxu1 %v808_v39  ;;  %1912 = vmatprep.mubr.msk.bf16.mxu1 %vm2114_vm0, %v2113_v1  ;;  %v2052_v39 = vld [vmem:[%s2514_s7 + $0x8] sm:$0xff]  }
 0x33f   : > { %1922 = vmatprep.subr.bf16.mxu1 %v2113_v1  ;;  %1989 = vmatpush3.bf16.msra.mxu0 %v2051_v38 }
 0x340   : > { %1990 = vmatprep.subr.bf16.mxu0 %v2113_v1 }
 0x343   : > { %1991 = vmatpush3.bf16.msra.mxu0 %v2052_v39 }
 0x344   : > { %1992 = vmatprep.subr.bf16.mxu0 %v2113_v1 }
 0x34c   : > { %1156 = vrot.lane.b32.xlu0 %v2277_v22, %s2131_s21 }
 0x36e   : > { %v798_v40 = vpop.xlane.xlu0 %797 }
 0x36f   : > { %2073 = vrcp.f32 %v798_v40 }
 0x372   : > { %v921_v44 = vpop.permute.xlu0 %920 }
 0x373   : > { %v926_v46 = vsel %vm692_vm5, %v921_v44, 0  ;;  %v2053_v44 = vld [vmem:[%s2514_s7 + $0x10] sm:$0xff]  }
 0x374   : > { %1993 = vmatpush3.bf16.msra.mxu0 %v2053_v44 }
 0x375   : > { %1994 = vmatprep.subr.bf16.mxu0 %v2113_v1 }
 0x376   : > { %v916_v41 = vpop.xlane.xlu1 %915 }
 0x377   : > { %2075 = vrcp.f32 %v916_v41 }
 0x379   : > { %v2074_v42 = vpop.eup %2073 }
 0x37a   : > { %v800_v43 = vmul.f32 %v2074_v42, %v2369_v2  ;;  %v1039_v48 = vpop.permute.xlu1 %1038 }
 0x37b   : > { %v1044_v50 = vsel %vm692_vm5, %v1039_v48, 0 }
 0x37c   : > { %v801_v45 = vpack.c.bf16 %v800_v43, %v800_v43 }
 0x37e   : > { %1913 = vmatmul.mubr.msk.bf16.vlgmr.msra.gmra.mrb[12].mxu1 %vm625_vm2, %v801_v45  ;;  %v2054_v45 = vld [vmem:[%s2514_s7 + $0x18] sm:$0xff]  }
 0x37f   : > { %1923 = vmatpush3.bf16.msra.mxu1 %v926_v46  ;;  %1924 = vmatprep.mubr.msk.bf16.mxu1 %vm2114_vm0, %v2113_v1 }
 0x380   : > { %1934 = vmatprep.subr.bf16.mxu1 %v2113_v1  ;;  %1995 = vmatpush3.bf16.msra.mxu0 %v2054_v45 }
 0x381   : > { %v2076_v22 = vpop.eup %2075 }
 0x382   : > { %v918_v47 = vmul.f32 %v2076_v22, %v2373_v3 }
 0x384   : > { %v919_v49 = vpack.c.bf16 %v918_v47, %v918_v47 }
 0x386   : > { %1925 = vmatmul.mubr.msk.bf16.vlgmr.msra.gmra.mrb[16].mxu1 %vm625_vm2, %v919_v49 }
 0x387   : > { %1935 = vmatpush3.bf16.msra.mxu1 %v1044_v50  ;;  %1936 = vmatprep.mubr.msk.bf16.mxu1 %vm2114_vm0, %v2113_v1 }
 0x388   : > { %1946 = vmatprep.subr.bf16.mxu1 %v2113_v1 }
 0x3a3   : > { %v1034_v51 = vpop.xlane.xlu0 %1033 }
 0x3a4   : > { %2077 = vrcp.f32 %v1034_v51 }
 0x3a7   : > { %v1152_v55 = vpop.xlane.xlu0 %1151 }
 0x3a8   : > { %2079 = vrcp.f32 %v1152_v55 }
 0x3ab   : > { %v1270_v56 = vpop.xlane.xlu1 %1269  ;;  %v1388_v58 = vpop.xlane.xlu0 %1387 }
 0x3ac   : > { %2081 = vrcp.f32 %v1270_v56 }
 0x3ad   : > { %2083 = vrcp.f32 %v1388_v58 }
 0x3ae   : > { %v2078_v52 = vpop.eup %2077 }
 0x3af   : > { %v1036_v53 = vmul.f32 %v2078_v52, %v2386_v20  ;;  %v1275_v0 = vpop.permute.xlu1 %1274 }
 0x3b0   : > { %v1280_v3 = vsel %vm692_vm5, %v1275_v0, 0 }
 0x3b1   : > { %v1037_v54 = vpack.c.bf16 %v1036_v53, %v1036_v53 }
 0x3b2   : > { %v2080_v59 = vpop.eup %2079 }
 0x3b3   : > { %1937 = vmatmul.mubr.msk.bf16.vlgmr.msra.gmra.mrb[20].mxu1 %vm625_vm2, %v1037_v54  ;;  %v1154_v61 = vmul.f32 %v2080_v59, %v2390_v23  ;;  %v1393_v5 = vpop.permute.xlu1 %1392 }
 0x3b4   : > { %1948 = vmatprep.mubr.msk.bf16.mxu1 %vm2114_vm0, %v2113_v1  ;;  %v1398_v8 = vsel %vm692_vm5, %v1393_v5, 0 }
 0x3b5   : > { %v1155_v2 = vpack.c.bf16 %v1154_v61, %v1154_v61 }
 0x3b6   : > { %v2082_v57 = vpop.eup %2081 }
 0x3b7   : > { %v1272_v4 = vmul.f32 %v2082_v57, %v2392_v24  ;;  %v2084_v7 = vpop.eup %2083  ;;  %v1511_v11 = vpop.permute.xlu1 %1510 }
 0x3b8   : > { %v1390_v9 = vmul.f32 %v2084_v7, %v2396_v26  ;;  %v1516_v14 = vsel %vm692_vm5, %v1511_v11, 0 }
 0x3b9   : > { %v1273_v6 = vpack.c.bf16 %v1272_v4, %v1272_v4 }
 0x3ba   : > { %v1391_v12 = vpack.c.bf16 %v1390_v9, %v1390_v9 }
 0x3c3   : > { %v1506_v60 = vpop.xlane.xlu0 %1505 }
 0x3c4   : > { %2085 = vrcp.f32 %v1506_v60 }
 0x3c7   : > { %v1157_v62 = vpop.permute.xlu0 %1156 }
 0x3c8   : > { %v1162_v63 = vsel %vm692_vm5, %v1157_v62, 0  ;;  %v1811_v62 = vld [vmem:[%s2515_s8] ss:$0 sm:$0xff] }
 0x3c9   : > { %1947 = vmatpush3.bf16.msra.mxu1 %v1162_v63 }
 0x3ca   : > { %1958 = vmatprep.subr.bf16.mxu1 %v2113_v1 }
 0x3cc   : > { %1949 = vmatmul.mubr.msk.bf16.vlgmr.msra.gmra.mrb[24].mxu1 %vm625_vm2, %v1155_v2 }
 0x3cd   : > { %1959 = vmatpush3.bf16.msra.mxu1 %v1280_v3  ;;  %1960 = vmatprep.mubr.msk.bf16.mxu1 %vm2114_vm0, %v2113_v1 }
 0x3ce   : > { %1970 = vmatprep.subr.bf16.mxu1 %v2113_v1  ;;  %v2086_v13 = vpop.eup %2085 }
 0x3cf   : > { %v1508_v15 = vmul.f32 %v2086_v13, %v2406_v34 }
 0x3d1   : > { %v1509_v16 = vpack.c.bf16 %v1508_v15, %v1508_v15 }
 0x3d4   : > { %1961 = vmatmul.mubr.msk.bf16.vlgmr.msra.gmra.mrb[28].mxu1 %vm625_vm2, %v1273_v6 }
 0x3d5   : > { %1971 = vmatpush3.bf16.msra.mxu1 %v1398_v8  ;;  %1972 = vmatprep.mubr.msk.bf16.mxu1 %vm2114_vm0, %v2113_v1 }
 0x3d6   : > { %1982 = vmatprep.subr.bf16.mxu1 %v2113_v1 }
 0x3dc   : > { %1973 = vmatmul.mubr.msk.bf16.vlgmr.msra.gmra.mrb[32].mxu1 %vm625_vm2, %v1391_v12 }
 0x3dd   : > { %1983 = vmatpush3.bf16.msra.mxu1 %v1516_v14  ;;  %1984 = vmatprep.mubr.msk.bf16.mxu1 %vm2114_vm0, %v2113_v1 }
 0x3e4   : > { %1985 = vmatmul.mubr.msk.bf16.vlgmr.msra.gmra.mrb[36].mxu1 %vm625_vm2, %v1509_v16 }
 0x410   : > { %v730_v17 = vpop.f32.mrb[8].mxu1 }
 0x411   : > { %736 = vst.msk [vmem:[#allocation2] sm:$0xff] %vm625_vm2, %v730_v17  ;;  %v1902_v18 = vpop.f32.mrb[9].mxu1  ;;  %v1818_v17 = vld [vmem:[%s2517_s10] ss:$0 sm:$0xff] }
 0x412   : > { %v733_v19 = vpop.f32.mrb[10].mxu1 }
 0x413   : > { %v1903_v20 = vpop.f32.mrb[11].mxu1 }
 0x451   : > { %v844_v21 = vpop.f32.mrb[12].mxu1 }
 0x452   : > { %851 = vrot.lane.b32.xlu1 %v844_v21, %s2130_s16  ;;  %v1914_v23 = vpop.f32.mrb[13].mxu1 }
 0x453   : > { %v847_v24 = vpop.f32.mrb[14].mxu1 }
 0x454   : > { %v1915_v25 = vpop.f32.mrb[15].mxu1 }
 0x459   : > { %v962_v26 = vpop.f32.mrb[16].mxu1 }
 0x45a   : > { %969 = vrot.lane.b32.xlu1 %v962_v26, %s2129_s15  ;;  %v1926_v27 = vpop.f32.mrb[17].mxu1 }
 0x45b   : > { %v965_v28 = vpop.f32.mrb[18].mxu1 }
 0x45c   : > { %v1927_v29 = vpop.f32.mrb[19].mxu1 }
 0x486   : > { %v1080_v30 = vpop.f32.mrb[20].mxu1 }
 0x487   : > { %1087 = vrot.lane.b32.xlu0 %v1080_v30, %s2128_s14  ;;  %v1938_v31 = vpop.f32.mrb[21].mxu1 }
 0x488   : > { %v1083_v32 = vpop.f32.mrb[22].mxu1 }
 0x489   : > { %v1939_v33 = vpop.f32.mrb[23].mxu1 }
 0x49f   : > { %v1198_v34 = vpop.f32.mrb[24].mxu1 }
 0x4a0   : > { %1205 = vrot.lane.b32.xlu1 %v1198_v34, %s2131_s21  ;;  %v1950_v35 = vpop.f32.mrb[25].mxu1 }
 0x4a1   : > { %v1201_v36 = vpop.f32.mrb[26].mxu1 }
 0x4a2   : > { %v1951_v37 = vpop.f32.mrb[27].mxu1 }
 0x4a7   : > { %v1316_v40 = vpop.f32.mrb[28].mxu1 }
 0x4a8   : > { %1323 = vrot.lane.b32.xlu0 %v1316_v40, %s2127_s13  ;;  %v1962_v41 = vpop.f32.mrb[29].mxu1 }
 0x4a9   : > { %v1319_v42 = vpop.f32.mrb[30].mxu1 }
 0x4aa   : > { %v1963_v43 = vpop.f32.mrb[31].mxu1 }
 0x4af   : > { %v1434_v46 = vpop.f32.mrb[32].mxu1 }
 0x4b0   : > { %1441 = vrot.lane.b32.xlu1 %v1434_v46, %s2126_s30  ;;  %v1974_v22 = vpop.f32.mrb[33].mxu1 }
 0x4b1   : > { %v1437_v47 = vpop.f32.mrb[34].mxu1 }
 0x4b2   : > { %v1975_v48 = vpop.f32.mrb[35].mxu1 }
 0x4b7   : > { %v1552_v49 = vpop.f32.mrb[36].mxu1 }
 0x4b8   : > { %1559 = vrot.lane.b32.xlu0 %v1552_v49, %s2124_s17  ;;  %v1986_v50 = vpop.f32.mrb[37].mxu1 }
 0x4b9   : > { %v1555_v51 = vpop.f32.mrb[38].mxu1 }
 0x4ba   : > { %v1987_v52 = vpop.f32.mrb[39].mxu1 }
 0x4c4   : > { %v852_v53 = vpop.permute.xlu1 %851 }
 0x4c5   : > { %855 = vst.msk [vmem:[#allocation2] sm:$0xff] %vm854_vm6, %v852_v53 }
 0x4cc   : > { %v970_v54 = vpop.permute.xlu1 %969 }
 0x4cd   : > { %973 = vst.msk [vmem:[#allocation2] sm:$0xff] %vm972_vm7, %v970_v54 }
 0x4f9   : > { %v1088_v1 = vpop.permute.xlu0 %1087 }
 0x4fa   : > { %1091 = vst.msk [vmem:[#allocation2] sm:$0xff] %vm1090_vm8, %v1088_v1 }
 0x512   : > { %v1206_v55 = vpop.permute.xlu1 %1205 }
 0x513   : > { %1209 = vst.msk [vmem:[#allocation2] sm:$0xff] %vm1208_vm9, %v1206_v55 }
 0x51a   : > { %v1324_v56 = vpop.permute.xlu0 %1323 }
 0x51b   : > { %1327 = vst.msk [vmem:[#allocation2] sm:$0xff] %vm1326_vm10, %v1324_v56 }
 0x522   : > { %v1442_v58 = vpop.permute.xlu1 %1441 }
 0x523   : > { %1445 = vst.msk [vmem:[#allocation2] sm:$0xff] %vm1444_vm11, %v1442_v58 }
 0x52a   : > { %v1560_v59 = vpop.permute.xlu0 %1559 }
 0x52b   : > { %1563 = vst.msk [vmem:[#allocation2] sm:$0xff] %vm1562_vm12, %v1560_v59 }
 0x532   : > { %v1564_v60 = vld [vmem:[#allocation2] sm:$0xff] }
 0x533   : > { %v1565_v61 = vpack.c.bf16 %v1564_v60, %v1564_v60 }
 0x535   : > { %1997 = vmatmul.mubr.msk.bf16.vlgmr.msra.gmra.mrb[32].mxu0 %vm488_vm1, %v1565_v61 }
 0x608   : > { %v1642_v63 = vpop.f32.mrb[32].mxu0 }
 0x609   : > { %v1643_v0 = vadd.f32 %v1811_v62, %v1642_v63  ;;  %v1998_v2 = vpop.f32.mrb[33].mxu0 }
 0x60a   : > { %v1645_v57 = vpop.f32.mrb[34].mxu0 }
 0x60b   : > { %v1999_v3 = vpop.f32.mrb[35].mxu0  ;;  %v1648_v4 = vadd.f32 %v1643_v0, %v2257_v10  ;;  %v1817_v10 = vld [vmem:[%s2516_s9] ss:$0 sm:$0xff] }
 0x60d   : > { %v1651_v5 = vsel %vm488_vm1, %v1648_v4, 0.0 }
 0x60e   : > { %1652 = vadd.xlane.f32.xlu1 %v1651_v5 }
 0x69b   : > { %v1653_v6 = vpop.xlane.xlu1 %1652 }
 0x69c   : > { %v1655_v7 = vmul.f32 0.015625, %v1653_v6 }
 0x69e   : > { %v1656_v8 = vsub.f32 %v1648_v4, %v1655_v7 }
 0x6a0   : > { %v1657_v9 = vmul.f32 %v1656_v8, %v1656_v8 }
 0x6a2   : > { %v1658_v11 = vsel %vm488_vm1, %v1657_v9, 0.0 }
 0x6a3   : > { %1659 = vadd.xlane.f32.xlu0 %v1658_v11 }
 0x730   : > { %v1660_v12 = vpop.xlane.xlu0 %1659 }
 0x731   : > { %v1661_v13 = vmul.f32 0.015625, %v1660_v12 }
 0x733   : > { %v1662_v14 = vadd.f32 1e-12, %v1661_v13 }
 0x735   : > { %2087 = vrsqrt.f32 %v1662_v14 }
 0x73f   : > { %v2088_v15 = vpop.eup %2087 }
 0x740   : > { %v1664_v16 = vmul.f32 %v2088_v15, %v1656_v8 }
 0x742   : > { %v1671_v18 = vmul.f32 %v1817_v10, %v1664_v16 }
 0x744   : > { %v1678_v19 = vadd.f32 %v1818_v17, %v1671_v18 }
 0x746   : > { %1679 = vst.msk [vmem:[%s443_s23] sm:$0xff] %vm488_vm1, %v1678_v19 }
 0x747 PF: > { %s21_s19 = sadd.s32 1, %s2111_s19   ;;  %s2519_s17 = smov %s2107_s18 }
 0x748   : > { %p18_p5 = scmp.ge.s32.totalorder %s21_s19, 4   ;;  %s2520_s18 = smov %s2522_s20 }
 0x74a   :  { %20 = sbr.rel (!%p18_p5) target bundleno = 2 (0x2), region = 100 }

// kernel: transformer_forward.15
= control target key start
LH: loop header
LB: loop body
LE: loop exit
PB: predicated region body
PF: predicated region fallthrough
CT: control target
= control target key end

     0   :  { %s2201_s17 = smov 0   ;;  %s2203_s18 = smov 0   ;;  %s2516_s0 = inlined_call_operand.vmem [shape: f32[2,8,64], index: 0, kind: input, shape index: {}, may-alias: {0,1}]   ;;  %s2517_s1 = inlined_call_operand.vmem [shape: f32[2,8,64], index: 1, kind: input, shape index: {}, may-alias: {0,1}]   ;;  %s2518_s2 = inlined_call_operand.vmem [shape: f32[2,1,8], index: 2, kind: input, shape index: {}]   ;;  %s2519_s3 = inlined_call_operand.vmem [shape: bf16[64,64], index: 3, kind: input, shape index: {}]   ;;  %s2520_s4 = inlined_call_operand.vmem [shape: f32[1,64], index: 4, kind: input, shape index: {}]   ;;  %s2521_s5 = inlined_call_operand.vmem [shape: bf16[64,128], index: 5, kind: input, shape index: {}]   ;;  %s2522_s6 = inlined_call_operand.vmem [shape: f32[1,128], index: 6, kind: input, shape index: {}]   ;;  %s2523_s7 = inlined_call_operand.vmem [shape: bf16[64,64], index: 7, kind: input, shape index: {}]   ;;  %s2524_s8 = inlined_call_operand.vmem [shape: f32[1,64], index: 8, kind: input, shape index: {}]   ;;  %s2525_s9 = inlined_call_operand.vmem [shape: f32[1,64], index: 9, kind: input, shape index: {}]   ;;  %s2526_s10 = inlined_call_operand.vmem [shape: f32[1,64], index: 10, kind: input, shape index: {}]   ;;  %s2527_s11 = inlined_call_operand.vmem [shape: f32[2,8,64], index: 11, kind: output, shape index: {}]  }
   0x1   :  { %s2205_s19 = smov 0  }
   0x2 LB: > { %s33_s20 = sadd.s32 1, %s2116_s18  ;;  %p1788_p0 = scmp.ge.s32.totalorder %s2120_s19, 1  ;;  %s2120_s19 = sphi %s2205_s19, %s21_s19   ;;  %s2116_s18 = sphi %s2203_s18, %s2529_s18   ;;  %s2112_s17 = sphi %s2201_s17, %s2528_s17  }
   0x3   : > { %p35_p1 = scmp.ge.s32.totalorder %s33_s20, 2  ;;  %p372_p2 = scmp.lt.s32.totalorder %s2120_s19, 3 }
   0x5   : > { %s2531_s20 = smov (%p35_p1, %s33_s20), 0  ;;  %p373_p3 = pnand %p1788_p0, %p372_p2 }
   0x6   : > { %v2052_v0 = vld [vmem:[%s2521_s5] sm:$0xff] (!%p373_p3)   ;;  %v2122_v1 = vmov (!%p373_p3), 0.0   ;;  %v2054_v3 = vld [vmem:[%s2521_s5 + $0x8] sm:$0xff] (!%p373_p3)   ;;  %vm2123_vm0 = vmmov (!%p373_p3), 0   ;;  %p423_p4 = scmp.lt.s32.totalorder (!%p373_p3), %s2112_s17, 1  ;;  %v2056_v5 = vld [vmem:[%s2521_s5 + $0x10] sm:$0xff] (!%p373_p3)   ;;  %v617_v49 = vlaneseq (!%p373_p3) }
   0x7   : > { %376 = sbr.rel (%p373_p3) target bundleno = 1863 (0x747), region = 64  ;;  %1889 = vmatprep.subr.bf16.mxu1 (!%p373_p3), %v2122_v1  ;;  %1877 = vmatprep.subr.bf16.mxu0 (!%p373_p3), %v2122_v1  ;;  %v2053_v2 = vld [vmem:[%s2519_s3] sm:$0xff] (!%p373_p3)   ;;  %v2055_v4 = vld [vmem:[%s2519_s3 + $0x8] sm:$0xff] (!%p373_p3)   ;;  %v2057_v6 = vld [vmem:[%s2519_s3 + $0x10] sm:$0xff] (!%p373_p3)   ;;  %vm488_vm1 = vcmask (!%p373_p3), 523264   ;;  %vm634_vm2 = vcmask (!%p373_p3), 64512  }
   0x8   : > { %1890 = vmatpush3.bf16.msra.mxu1 (!%p373_p3), %v2052_v0  ;;  %1897 = vmatprep.mubr.msk.bf16.mxu1 (!%p373_p3), %vm2123_vm0, %v2122_v1  ;;  %v2058_v7 = vld [vmem:[%s2521_s5 + $0x18] sm:$0xff] (!%p373_p3)   ;;  %v1798_v13 = vld [vmem:[%s2522_s6] ss:$0 sm:$0xff] (!%p373_p3)  ;;  %s2124_s15 = smov (!%p373_p3), 112   ;;  %s2125_s16 = smov (!%p373_p3), 120   ;;  %v618_v51 = vshrl.u32 (!%p373_p3), %v617_v49, 7 }
   0x9   : > { %1891 = vmatprep.subr.bf16.mxu1 (!%p373_p3), %v2122_v1  ;;  %1878 = vmatpush3.bf16.msra.mxu0 (!%p373_p3), %v2053_v2  ;;  %v2059_v9 = vld [vmem:[%s2519_s3 + $0x18] sm:$0xff] (!%p373_p3)   ;;  %v1792_v14 = vld [vmem:[%s2520_s4] ss:$0 sm:$0xff] (!%p373_p3)  ;;  %s2127_s22 = smov (!%p373_p3), 96   ;;  %s2128_s23 = smov (!%p373_p3), 88   ;;  %v2131_v53 = vmov (!%p373_p3), 0  }
   0xa   : > { %1879 = vmatprep.subr.bf16.mxu0 (!%p373_p3), %v2122_v1  ;;  %1885 = vmatprep.mubr.msk.bf16.mxu0 (!%p373_p3), %vm2123_vm0, %v2122_v1  ;;  %s2129_s24 = smov (!%p373_p3), 80   ;;  %s2130_s25 = smov (!%p373_p3), 72   ;;  %v619_v52 = vsub.s32 (!%p373_p3), 0, %v618_v51  ;;  %v628_v56 = vand.u32 (!%p373_p3), 127, %v617_v49  ;;  %v2132_v58 = vmov (!%p373_p3), -10000.0   ;;  %vm701_vm7 = vcmask (!%p373_p3), 1043456  }
   0xb   : > { %s2134_s29 = smov (!%p373_p3), 64   ;;  %s2135_s30 = smov (!%p373_p3), 48   ;;  %vm863_vm8 = vcmask (!%p373_p3), 130112   ;;  %vm981_vm9 = vcmask (!%p373_p3), 195712   ;;  %vm1099_vm10 = vcmask (!%p373_p3), 261312   ;;  %vm1217_vm11 = vcmask (!%p373_p3), 326912  }
   0xc   : > { %1892 = vmatpush3.bf16.msra.mxu1 (!%p373_p3), %v2054_v3  ;;  %vm629_vm5 = vcmp.le.s32.totalorder (!%p373_p3), %v628_v56, %v618_v51  ;;  %s2136_s13 = smov (!%p373_p3), 40   ;;  %s2137_s14 = smov (!%p373_p3), 24   ;;  %vm1335_vm12 = vcmask (!%p373_p3), 392512   ;;  %vm1453_vm13 = vcmask (!%p373_p3), 458112   ;;  %vm1571_vm14 = vcmask (!%p373_p3), 523712  }
   0xd   : > { %1893 = vmatprep.subr.bf16.mxu1 (!%p373_p3), %v2122_v1  ;;  %1880 = vmatpush3.bf16.msra.mxu0 (!%p373_p3), %v2055_v4 }
   0xe   : > { %s2533_s17 = smov (!%p423_p4, %s2112_s17), 1  ;;  %1881 = vmatprep.subr.bf16.mxu0 %v2122_v1 }
   0xf   : > { %s2245_s12 = sshll.u32 %s2533_s17, 3  ;;  %s436_s28 = scalar_lea.vmem %s2518_s2, %s2533_s17 }
  0x10   : > { %s433_s21 = scalar_lea.vmem %s2517_s1, %s2245_s12  ;;  %s429_s26 = scalar_lea.vmem %s2516_s0, %s2245_s12  ;;  %1894 = vmatpush3.bf16.msra.mxu1 %v2056_v5  ;;  %v614_v50 = vld [vmem:[%s436_s28] sm:$0x1] }
  0x11   : > { %v446_v8 = vld [vmem:[%s433_s21] sm:$0xff]  ;;  %1895 = vmatprep.subr.bf16.mxu1 %v2122_v1  ;;  %1882 = vmatpush3.bf16.msra.mxu0 %v2057_v6  ;;  %s2126_s21 = smov 104   ;;  %vm615_vm3 = vcmp.gt.f32.partialorder %v614_v50, 0.5  ;;  %s2133_s17 = smov 56  }
  0x12   : > { %v2266_v10 = vld [vmem:[%s429_s26] sm:$0xff]  ;;  %1883 = vmatprep.subr.bf16.mxu0 %v2122_v1  ;;  %v448_v11 = vpack.c.bf16 %v446_v8, %v446_v8  ;;  %v616_v54 = vsel %vm615_vm3, 1, %v2131_v53 }
  0x13   : > { %v447_v12 = vpack.c.bf16 %v2266_v10, %v2266_v10  ;;  %v620_v55 = vrot.slane %v616_v54, %v619_v52 }
  0x14   : > { %1896 = vmatpush3.bf16.msra.mxu1 %v2058_v7 }
  0x15   : > { %1884 = vmatpush3.bf16.msra.mxu0 %v2059_v9  ;;  %1901 = vmatprep.subr.bf16.mxu1 %v2122_v1  ;;  %vm621_vm4 = vcmp.eq.s32.totalorder %v620_v55, 1 }
  0x16   : > { %1913 = vmatprep.subr.bf16.mxu0 %v2122_v1  ;;  %vm630_vm6 = vmand %vm621_vm4, %vm629_vm5 }
  0x17   : > { %1898 = vmatmul.mubr.msk.bf16.vlgmr.msra.gmra.mrb[0].mxu1 %vm488_vm1, %v448_v11  ;;  %v2340_v59 = vsel %vm630_vm6, 0.0, %v2132_v58 }
  0x18   : > { %1886 = vmatmul.mubr.msk.bf16.vlgmr.msra.gmra.mrb[0].mxu0 %vm488_vm1, %v447_v12  ;;  %1903 = vmatprep.mubr.msk.bf16.mxu1 %vm2123_vm0, %v2122_v1 }
  0x19   : > { %1915 = vmatprep.mubr.msk.bf16.mxu0 %vm2123_vm0, %v2122_v1 }
  0xea   : > { %v608_v15 = vpop.f32.mrb[0].mxu1 }
  0xeb   : > { %v609_v16 = vadd.f32 %v1798_v13, %v608_v15  ;;  %v1899_v17 = vpop.f32.mrb[1].mxu1  ;;  %v526_v18 = vpop.f32.mrb[0].mxu0 }
  0xec   : > { %v611_v19 = vpop.f32.mrb[2].mxu1  ;;  %v527_v20 = vadd.f32 %v1792_v14, %v526_v18  ;;  %v1887_v21 = vpop.f32.mrb[1].mxu0 }
  0xed   : > { %v2286_v22 = vpack.c.bf16 %v609_v16, %v609_v16  ;;  %v1900_v23 = vpop.f32.mrb[3].mxu1  ;;  %v529_v24 = vpop.f32.mrb[2].mxu0 }
  0xee   : > { %v1888_v25 = vpop.f32.mrb[3].mxu0  ;;  %v632_v26 = vpack.c.bf16 %v527_v20, %v527_v20 }
  0xef   : > { %867 = vrot.lane.b32.xlu1 %v2286_v22, %s2124_s15  ;;  %749 = vrot.lane.b32.xlu0 %v2286_v22, %s2125_s16  ;;  %v639_v27 = vsel %vm634_vm2, %v2286_v22, 0 }
  0xf0   : > { %1902 = vmatpush3.bf16.xpose.msra.mxu1 %v639_v27 }
  0xf1   : > { %1907 = vmatprep.subr.bf16.mxu1 %v2122_v1 }
  0xf3   : > { %865 = vrot.lane.b32.xlu1 %v632_v26, %s2124_s15  ;;  %747 = vrot.lane.b32.xlu0 %v632_v26, %s2125_s16  ;;  %s2138_s15 = smov 16   ;;  %s2139_s16 = smov 8  }
  0xf7   : > { %983 = vrot.lane.b32.xlu1 %v632_v26, %s2126_s21  ;;  %985 = vrot.lane.b32.xlu0 %v2286_v22, %s2126_s21  ;;  %s2140_s21 = smov 32  }
  0xf8   : > { %1904 = vmatmul.mubr.msk.bf16.vlgmr.msra.gmra.mrb[4].mxu1 %vm634_vm2, %v632_v26 }
  0xf9   : > { %1909 = vmatprep.mubr.msk.bf16.mxu1 %vm2123_vm0, %v2122_v1 }
  0xfb   : > { %1101 = vrot.lane.b32.xlu1 %v632_v26, %s2127_s22  ;;  %1103 = vrot.lane.b32.xlu0 %v2286_v22, %s2127_s22 }
  0xff   : > { %1219 = vrot.lane.b32.xlu1 %v632_v26, %s2128_s23  ;;  %1221 = vrot.lane.b32.xlu0 %v2286_v22, %s2128_s23  ;;  %s443_s23 = scalar_lea.vmem %s2527_s11, %s2245_s12 }
 0x103   : > { %1337 = vrot.lane.b32.xlu1 %v632_v26, %s2129_s24  ;;  %1339 = vrot.lane.b32.xlu0 %v2286_v22, %s2129_s24 }
 0x107   : > { %1455 = vrot.lane.b32.xlu1 %v632_v26, %s2130_s25  ;;  %1457 = vrot.lane.b32.xlu0 %v2286_v22, %s2130_s25 }
 0x161   : > { %v750_v28 = vpop.permute.xlu0 %749  ;;  %v868_v30 = vpop.permute.xlu1 %867 }
 0x162   : > { %v755_v29 = vsel %vm634_vm2, %v750_v28, 0  ;;  %v873_v32 = vsel %vm634_vm2, %v868_v30, 0 }
 0x163   : > { %1914 = vmatpush3.bf16.xpose.msra.mxu0 %v755_v29 }
 0x164   : > { %1925 = vmatprep.subr.bf16.mxu0 %v2122_v1 }
 0x165   : > { %v748_v31 = vpop.permute.xlu0 %747  ;;  %v866_v34 = vpop.permute.xlu1 %865 }
 0x169   : > { %v986_v33 = vpop.permute.xlu0 %985  ;;  %v984_v37 = vpop.permute.xlu1 %983 }
 0x16a   : > { %1916 = vmatmul.mubr.msk.bf16.vlgmr.msra.gmra.mrb[4].mxu0 %vm634_vm2, %v748_v31  ;;  %v991_v35 = vsel %vm634_vm2, %v986_v33, 0 }
 0x16b   : > { %1926 = vmatpush3.bf16.xpose.msra.mxu0 %v873_v32  ;;  %1927 = vmatprep.mubr.msk.bf16.mxu0 %vm2123_vm0, %v2122_v1 }
 0x16c   : > { %1937 = vmatprep.subr.bf16.mxu0 %v2122_v1 }
 0x16d   : > { %v1104_v36 = vpop.permute.xlu0 %1103  ;;  %v1102_v40 = vpop.permute.xlu1 %1101 }
 0x16e   : > { %v1109_v38 = vsel %vm634_vm2, %v1104_v36, 0 }
 0x171   : > { %v1222_v39 = vpop.permute.xlu0 %1221  ;;  %v1220_v43 = vpop.permute.xlu1 %1219 }
 0x172   : > { %1928 = vmatmul.mubr.msk.bf16.vlgmr.msra.gmra.mrb[8].mxu0 %vm634_vm2, %v866_v34  ;;  %v1227_v41 = vsel %vm634_vm2, %v1222_v39, 0 }
 0x173   : > { %1938 = vmatpush3.bf16.xpose.msra.mxu0 %v991_v35  ;;  %1939 = vmatprep.mubr.msk.bf16.mxu0 %vm2123_vm0, %v2122_v1 }
 0x174   : > { %1949 = vmatprep.subr.bf16.mxu0 %v2122_v1 }
 0x175   : > { %v1340_v42 = vpop.permute.xlu0 %1339  ;;  %v1338_v46 = vpop.permute.xlu1 %1337 }
 0x176   : > { %v1345_v44 = vsel %vm634_vm2, %v1340_v42, 0 }
 0x179   : > { %v1458_v45 = vpop.permute.xlu0 %1457  ;;  %v1456_v48 = vpop.permute.xlu1 %1455 }
 0x17a   : > { %1940 = vmatmul.mubr.msk.bf16.vlgmr.msra.gmra.mrb[12].mxu0 %vm634_vm2, %v984_v37  ;;  %v1463_v47 = vsel %vm634_vm2, %v1458_v45, 0 }
 0x17b   : > { %1950 = vmatpush3.bf16.xpose.msra.mxu0 %v1109_v38  ;;  %1951 = vmatprep.mubr.msk.bf16.mxu0 %vm2123_vm0, %v2122_v1 }
 0x17c   : > { %1961 = vmatprep.subr.bf16.mxu0 %v2122_v1 }
 0x182   : > { %1952 = vmatmul.mubr.msk.bf16.vlgmr.msra.gmra.mrb[16].mxu0 %vm634_vm2, %v1102_v40 }
 0x183   : > { %1962 = vmatpush3.bf16.xpose.msra.mxu0 %v1227_v41  ;;  %1963 = vmatprep.mubr.msk.bf16.mxu0 %vm2123_vm0, %v2122_v1 }
 0x184   : > { %1973 = vmatprep.subr.bf16.mxu0 %v2122_v1 }
 0x18a   : > { %1964 = vmatmul.mubr.msk.bf16.vlgmr.msra.gmra.mrb[20].mxu0 %vm634_vm2, %v1220_v43 }
 0x18b   : > { %1974 = vmatpush3.bf16.xpose.msra.mxu0 %v1345_v44  ;;  %1975 = vmatprep.mubr.msk.bf16.mxu0 %vm2123_vm0, %v2122_v1 }
 0x18c   : > { %1985 = vmatprep.subr.bf16.mxu0 %v2122_v1 }
 0x192   : > { %1976 = vmatmul.mubr.msk.bf16.vlgmr.msra.gmra.mrb[24].mxu0 %vm634_vm2, %v1338_v46 }
 0x193   : > { %1986 = vmatpush3.bf16.xpose.msra.mxu0 %v1463_v47  ;;  %1987 = vmatprep.mubr.msk.bf16.mxu0 %vm2123_vm0, %v2122_v1 }
 0x194   : > { %1997 = vmatprep.subr.bf16.mxu0 %v2122_v1 }
 0x19a   : > { %1988 = vmatmul.mubr.msk.bf16.vlgmr.msra.gmra.mrb[28].mxu0 %vm634_vm2, %v1456_v48 }
 0x19b   : > { %2005 = vmatprep.mubr.msk.bf16.mxu0 %vm2123_vm0, %v2122_v1 }
 0x1cb   : > { %v675_v57 = vpop.f32.mrb[4].mxu1 }
 0x1cc   : > { %v681_v60 = vmul.f32 0.35355338, %v675_v57  ;;  %v1905_v61 = vpop.f32.mrb[5].mxu1 }
 0x1cd   : > { %v678_v62 = vpop.f32.mrb[6].mxu1 }
 0x1ce   : > { %v1906_v63 = vpop.f32.mrb[7].mxu1  ;;  %v682_v0 = vadd.f32 %v681_v60, %v2340_v59 }
 0x1d0   : > { %v683_v2 = vsel %vm634_vm2, %v682_v0, -inf }
 0x1d1   : > { %684 = vmax.xlane.f32.xlu0 %v683_v2 }
 0x23d   : > { %v791_v3 = vpop.f32.mrb[4].mxu0 }
 0x23e   : > { %v797_v4 = vmul.f32 0.35355338, %v791_v3  ;;  %v1917_v5 = vpop.f32.mrb[5].mxu0 }
 0x23f   : > { %v794_v6 = vpop.f32.mrb[6].mxu0 }
 0x240   : > { %v1918_v7 = vpop.f32.mrb[7].mxu0  ;;  %v2345_v8 = vadd.f32 %v797_v4, %v2340_v59 }
 0x242   : > { %v799_v9 = vsel %vm634_vm2, %v2345_v8, -inf }
 0x243   : > { %800 = vmax.xlane.f32.xlu1 %v799_v9 }
 0x245   : > { %v909_v11 = vpop.f32.mrb[8].mxu0 }
 0x246   : > { %v915_v12 = vmul.f32 0.35355338, %v909_v11  ;;  %v1929_v13 = vpop.f32.mrb[9].mxu0 }
 0x247   : > { %v912_v14 = vpop.f32.mrb[10].mxu0 }
 0x248   : > { %v1930_v15 = vpop.f32.mrb[11].mxu0  ;;  %v916_v16 = vadd.f32 %v915_v12, %v2340_v59 }
 0x24a   : > { %v917_v17 = vsel %vm634_vm2, %v916_v16, -inf }
 0x24b   : > { %918 = vmax.xlane.f32.xlu0 %v917_v17 }
 0x24d   : > { %v1027_v18 = vpop.f32.mrb[12].mxu0 }
 0x24e   : > { %v1033_v19 = vmul.f32 0.35355338, %v1027_v18  ;;  %v1941_v20 = vpop.f32.mrb[13].mxu0 }
 0x24f   : > { %v1030_v21 = vpop.f32.mrb[14].mxu0 }
 0x250   : > { %v1942_v23 = vpop.f32.mrb[15].mxu0  ;;  %v2352_v24 = vadd.f32 %v1033_v19, %v2340_v59 }
 0x252   : > { %v1035_v25 = vsel %vm634_vm2, %v2352_v24, -inf }
 0x253   : > { %1036 = vmax.xlane.f32.xlu0 %v1035_v25 }
 0x255   : > { %v1145_v26 = vpop.f32.mrb[16].mxu0 }
 0x256   : > { %v1151_v27 = vmul.f32 0.35355338, %v1145_v26  ;;  %v1953_v28 = vpop.f32.mrb[17].mxu0 }
 0x257   : > { %v1148_v29 = vpop.f32.mrb[18].mxu0 }
 0x258   : > { %v1954_v30 = vpop.f32.mrb[19].mxu0  ;;  %v2357_v31 = vadd.f32 %v1151_v27, %v2340_v59 }
 0x25a   : > { %v1153_v32 = vsel %vm634_vm2, %v2357_v31, -inf }
 0x25b   : > { %1154 = vmax.xlane.f32.xlu1 %v1153_v32 }
 0x25d   : > { %v1263_v33 = vpop.f32.mrb[20].mxu0 }
 0x25e   : > { %v1269_v34 = vmul.f32 0.35355338, %v1263_v33  ;;  %v1965_v35 = vpop.f32.mrb[21].mxu0  ;;  %v685_v51 = vpop.xlane.xlu0 %684 }
 0x25f   : > { %v1266_v36 = vpop.f32.mrb[22].mxu0  ;;  %v686_v52 = vsub.f32 %v682_v0, %v685_v51 }
 0x260   : > { %v1966_v37 = vpop.f32.mrb[23].mxu0  ;;  %v2362_v38 = vadd.f32 %v1269_v34, %v2340_v59 }
 0x261   : > { %v687_v53 = vmul.f32 1.442695, %v686_v52 }
 0x262   : > { %v1271_v39 = vsel %vm634_vm2, %v2362_v38, -inf }
 0x263   : > { %1272 = vmax.xlane.f32.xlu0 %v1271_v39  ;;  %2064 = vpow2.f32 %v687_v53 }
 0x265   : > { %v1381_v40 = vpop.f32.mrb[24].mxu0 }
 0x266   : > { %v1387_v41 = vmul.f32 0.35355338, %v1381_v40  ;;  %v1977_v42 = vpop.f32.mrb[25].mxu0 }
 0x267   : > { %v1384_v43 = vpop.f32.mrb[26].mxu0 }
 0x268   : > { %v1978_v44 = vpop.f32.mrb[27].mxu0  ;;  %v1388_v45 = vadd.f32 %v1387_v41, %v2340_v59 }
 0x26a   : > { %v1389_v46 = vsel %vm634_vm2, %v1388_v45, -inf }
 0x26b   : > { %1390 = vmax.xlane.f32.xlu1 %v1389_v46 }
 0x26d   : > { %v1499_v47 = vpop.f32.mrb[28].mxu0  ;;  %v2373_v57 = vpop.eup %2064 }
 0x26e   : > { %v1989_v48 = vpop.f32.mrb[29].mxu0  ;;  %v1505_v54 = vmul.f32 0.35355338, %v1499_v47  ;;  %v689_v58 = vsel %vm634_vm2, %v2373_v57, 0.0 }
 0x26f   : > { %v1502_v49 = vpop.f32.mrb[30].mxu0 }
 0x270   : > { %v1990_v50 = vpop.f32.mrb[31].mxu0  ;;  %v1506_v55 = vadd.f32 %v1505_v54, %v2340_v59 }
 0x272   : > { %v1507_v56 = vsel %vm634_vm2, %v1506_v55, -inf }
 0x279   : > { %811 = vrot.lane.b32.xlu0 %v2286_v22, %s2133_s17 }
 0x27c   : > { %696 = vrot.lane.b32.xlu1 %v2286_v22, %s2134_s29 }
 0x298   : > { %1508 = vmax.xlane.f32.xlu0 %v1507_v56 }
 0x2a0   : > { %690 = vadd.xlane.f32.xlu1 %v689_v58 }
 0x2d0   : > { %v801_v60 = vpop.xlane.xlu1 %800 }
 0x2d1   : > { %v802_v61 = vsub.f32 %v2345_v8, %v801_v60 }
 0x2d3   : > { %v803_v62 = vmul.f32 1.442695, %v802_v61 }
 0x2d5   : > { %2066 = vpow2.f32 %v803_v62 }
 0x2d8   : > { %v919_v63 = vpop.xlane.xlu0 %918 }
 0x2d9   : > { %v920_v0 = vsub.f32 %v916_v16, %v919_v63 }
 0x2db   : > { %v921_v2 = vmul.f32 1.442695, %v920_v0 }
 0x2dd   : > { %2068 = vpow2.f32 %v921_v2 }
 0x2df   : > { %v2378_v3 = vpop.eup %2066 }
 0x2e0   : > { %v805_v59 = vsel %vm634_vm2, %v2378_v3, 0.0  ;;  %v1037_v9 = vpop.xlane.xlu0 %1036 }
 0x2e1   : > { %806 = vadd.xlane.f32.xlu0 %v805_v59  ;;  %v1038_v12 = vsub.f32 %v2352_v24, %v1037_v9 }
 0x2e3   : > { %v1039_v13 = vmul.f32 1.442695, %v1038_v12 }
 0x2e5   : > { %2070 = vpow2.f32 %v1039_v13 }
 0x2e7   : > { %v2382_v4 = vpop.eup %2068 }
 0x2e8   : > { %v923_v5 = vsel %vm634_vm2, %v2382_v4, 0.0  ;;  %v1155_v6 = vpop.xlane.xlu1 %1154 }
 0x2e9   : > { %924 = vadd.xlane.f32.xlu1 %v923_v5  ;;  %v1156_v14 = vsub.f32 %v2357_v31, %v1155_v6 }
 0x2eb   : > { %v1157_v17 = vmul.f32 1.442695, %v1156_v14 }
 0x2ed   : > { %2072 = vpow2.f32 %v1157_v17 }
 0x2ef   : > { %v2395_v21 = vpop.eup %2070 }
 0x2f0   : > { %v1273_v15 = vpop.xlane.xlu0 %1272  ;;  %v1041_v23 = vsel %vm634_vm2, %v2395_v21, 0.0 }
 0x2f1   : > { %v1274_v16 = vsub.f32 %v2362_v38, %v1273_v15 }
 0x2f3   : > { %v1275_v19 = vmul.f32 1.442695, %v1274_v16 }
 0x2f4   : > { %v812_v30 = vpop.permute.xlu0 %811 }
 0x2f5   : > { %2074 = vpow2.f32 %v1275_v19  ;;  %v817_v40 = vsel %vm701_vm7, %v812_v30, 0 }
 0x2f7   : > { %929 = vrot.lane.b32.xlu0 %v2286_v22, %s2135_s30  ;;  %v2399_v24 = vpop.eup %2072 }
 0x2f8   : > { %v1391_v7 = vpop.xlane.xlu1 %1390  ;;  %v1159_v26 = vsel %vm634_vm2, %v2399_v24, 0.0 }
 0x2f9   : > { %v1392_v18 = vsub.f32 %v1388_v45, %v1391_v7 }
 0x2fa   : > { %1047 = vrot.lane.b32.xlu1 %v2286_v22, %s2136_s13 }
 0x2fb   : > { %v1393_v20 = vmul.f32 1.442695, %v1392_v18 }
 0x2fc   : > { %v697_v8 = vpop.permute.xlu1 %696 }
 0x2fd   : > { %v703_v11 = vsel %vm701_vm7, %v697_v8, 0  ;;  %2076 = vpow2.f32 %v1393_v20 }
 0x2fe   : > { %1908 = vmatpush3.bf16.msra.mxu1 %v703_v11 }
 0x2ff   : > { %1919 = vmatprep.subr.bf16.mxu1 %v2122_v1  ;;  %v2401_v25 = vpop.eup %2074 }
 0x300   : > { %v1277_v28 = vsel %vm634_vm2, %v2401_v25, 0.0 }
 0x307   : > { %v2405_v27 = vpop.eup %2076 }
 0x308   : > { %v1395_v29 = vsel %vm634_vm2, %v2405_v27, 0.0 }
 0x316   : > { %1042 = vadd.xlane.f32.xlu0 %v1041_v23 }
 0x31a   : > { %1160 = vadd.xlane.f32.xlu0 %v1159_v26 }
 0x31e   : > { %1278 = vadd.xlane.f32.xlu1 %v1277_v28  ;;  %1396 = vadd.xlane.f32.xlu0 %v1395_v29 }
 0x325   : > { %v1509_v31 = vpop.xlane.xlu0 %1508 }
 0x326   : > { %v1510_v32 = vsub.f32 %v1506_v55, %v1509_v31 }
 0x328   : > { %v1511_v33 = vmul.f32 1.442695, %v1510_v32 }
 0x32a   : > { %2078 = vpow2.f32 %v1511_v33 }
 0x32d   : > { %v691_v34 = vpop.xlane.xlu1 %690 }
 0x32e   : > { %2080 = vrcp.f32 %v691_v34 }
 0x32f   : > { %1283 = vrot.lane.b32.xlu1 %v2286_v22, %s2137_s14 }
 0x333   : > { %1401 = vrot.lane.b32.xlu1 %v2286_v22, %s2138_s15 }
 0x334   : > { %v2415_v35 = vpop.eup %2078 }
 0x335   : > { %v1513_v36 = vsel %vm634_vm2, %v2415_v35, 0.0 }
 0x336   : > { %1514 = vadd.xlane.f32.xlu0 %v1513_v36 }
 0x337   : > { %1519 = vrot.lane.b32.xlu1 %v2286_v22, %s2139_s16 }
 0x338   : > { %v2081_v37 = vpop.eup %2080 }
 0x339   : > { %v693_v38 = vmul.f32 %v2081_v37, %v2373_v57 }
 0x33b   : > { %v694_v39 = vpack.c.bf16 %v693_v38, %v693_v38 }
 0x33d   : > { %1910 = vmatmul.mubr.msk.bf16.vlgmr.msra.gmra.mrb[8].mxu1 %vm634_vm2, %v694_v39  ;;  %v2060_v39 = vld [vmem:[%s2523_s7] sm:$0xff]  }
 0x33e   : > { %1920 = vmatpush3.bf16.msra.mxu1 %v817_v40  ;;  %1921 = vmatprep.mubr.msk.bf16.mxu1 %vm2123_vm0, %v2122_v1  ;;  %v2061_v40 = vld [vmem:[%s2523_s7 + $0x8] sm:$0xff]  }
 0x33f   : > { %1931 = vmatprep.subr.bf16.mxu1 %v2122_v1  ;;  %1998 = vmatpush3.bf16.msra.mxu0 %v2060_v39 }
 0x340   : > { %1999 = vmatprep.subr.bf16.mxu0 %v2122_v1 }
 0x343   : > { %2000 = vmatpush3.bf16.msra.mxu0 %v2061_v40 }
 0x344   : > { %2001 = vmatprep.subr.bf16.mxu0 %v2122_v1 }
 0x34c   : > { %1165 = vrot.lane.b32.xlu0 %v2286_v22, %s2140_s21 }
 0x36e   : > { %v807_v41 = vpop.xlane.xlu0 %806 }
 0x36f   : > { %2082 = vrcp.f32 %v807_v41 }
 0x372   : > { %v930_v45 = vpop.permute.xlu0 %929 }
 0x373   : > { %v935_v47 = vsel %vm701_vm7, %v930_v45, 0  ;;  %v2062_v45 = vld [vmem:[%s2523_s7 + $0x10] sm:$0xff]  }
 0x374   : > { %2002 = vmatpush3.bf16.msra.mxu0 %v2062_v45 }
 0x375   : > { %2003 = vmatprep.subr.bf16.mxu0 %v2122_v1 }
 0x376   : > { %v925_v42 = vpop.xlane.xlu1 %924 }
 0x377   : > { %2084 = vrcp.f32 %v925_v42 }
 0x379   : > { %v2083_v43 = vpop.eup %2082 }
 0x37a   : > { %v809_v44 = vmul.f32 %v2083_v43, %v2378_v3  ;;  %v1048_v49 = vpop.permute.xlu1 %1047 }
 0x37b   : > { %v1053_v51 = vsel %vm701_vm7, %v1048_v49, 0 }
 0x37c   : > { %v810_v46 = vpack.c.bf16 %v809_v44, %v809_v44 }
 0x37e   : > { %1922 = vmatmul.mubr.msk.bf16.vlgmr.msra.gmra.mrb[12].mxu1 %vm634_vm2, %v810_v46  ;;  %v2063_v46 = vld [vmem:[%s2523_s7 + $0x18] sm:$0xff]  }
 0x37f   : > { %1932 = vmatpush3.bf16.msra.mxu1 %v935_v47  ;;  %1933 = vmatprep.mubr.msk.bf16.mxu1 %vm2123_vm0, %v2122_v1 }
 0x380   : > { %1943 = vmatprep.subr.bf16.mxu1 %v2122_v1  ;;  %2004 = vmatpush3.bf16.msra.mxu0 %v2063_v46 }
 0x381   : > { %v2085_v22 = vpop.eup %2084 }
 0x382   : > { %v927_v48 = vmul.f32 %v2085_v22, %v2382_v4 }
 0x384   : > { %v928_v50 = vpack.c.bf16 %v927_v48, %v927_v48 }
 0x386   : > { %1934 = vmatmul.mubr.msk.bf16.vlgmr.msra.gmra.mrb[16].mxu1 %vm634_vm2, %v928_v50 }
 0x387   : > { %1944 = vmatpush3.bf16.msra.mxu1 %v1053_v51  ;;  %1945 = vmatprep.mubr.msk.bf16.mxu1 %vm2123_vm0, %v2122_v1 }
 0x388   : > { %1955 = vmatprep.subr.bf16.mxu1 %v2122_v1 }
 0x3a3   : > { %v1043_v52 = vpop.xlane.xlu0 %1042 }
 0x3a4   : > { %2086 = vrcp.f32 %v1043_v52 }
 0x3a7   : > { %v1161_v56 = vpop.xlane.xlu0 %1160 }
 0x3a8   : > { %2088 = vrcp.f32 %v1161_v56 }
 0x3ab   : > { %v1279_v57 = vpop.xlane.xlu1 %1278  ;;  %v1397_v58 = vpop.xlane.xlu0 %1396 }
 0x3ac   : > { %2090 = vrcp.f32 %v1279_v57 }
 0x3ad   : > { %2092 = vrcp.f32 %v1397_v58 }
 0x3ae   : > { %v2087_v53 = vpop.eup %2086 }
 0x3af   : > { %v1045_v54 = vmul.f32 %v2087_v53, %v2395_v21  ;;  %v1284_v2 = vpop.permute.xlu1 %1283 }
 0x3b0   : > { %v1289_v4 = vsel %vm701_vm7, %v1284_v2, 0 }
 0x3b1   : > { %v1046_v55 = vpack.c.bf16 %v1045_v54, %v1045_v54 }
 0x3b2   : > { %v2089_v60 = vpop.eup %2088 }
 0x3b3   : > { %1946 = vmatmul.mubr.msk.bf16.vlgmr.msra.gmra.mrb[20].mxu1 %vm634_vm2, %v1046_v55  ;;  %v1163_v62 = vmul.f32 %v2089_v60, %v2399_v24  ;;  %v1402_v6 = vpop.permute.xlu1 %1401 }
 0x3b4   : > { %1957 = vmatprep.mubr.msk.bf16.mxu1 %vm2123_vm0, %v2122_v1  ;;  %v1407_v9 = vsel %vm701_vm7, %v1402_v6, 0 }
 0x3b5   : > { %v1164_v3 = vpack.c.bf16 %v1163_v62, %v1163_v62 }
 0x3b6   : > { %v2091_v59 = vpop.eup %2090 }
 0x3b7   : > { %v1281_v5 = vmul.f32 %v2091_v59, %v2401_v25  ;;  %v2093_v8 = vpop.eup %2092  ;;  %v1520_v12 = vpop.permute.xlu1 %1519 }
 0x3b8   : > { %v1399_v11 = vmul.f32 %v2093_v8, %v2405_v27  ;;  %v1525_v15 = vsel %vm701_vm7, %v1520_v12, 0 }
 0x3b9   : > { %v1282_v7 = vpack.c.bf16 %v1281_v5, %v1281_v5 }
 0x3ba   : > { %v1400_v13 = vpack.c.bf16 %v1399_v11, %v1399_v11 }
 0x3c3   : > { %v1515_v61 = vpop.xlane.xlu0 %1514 }
 0x3c4   : > { %2094 = vrcp.f32 %v1515_v61 }
 0x3c7   : > { %v1166_v63 = vpop.permute.xlu0 %1165 }
 0x3c8   : > { %v1171_v0 = vsel %vm701_vm7, %v1166_v63, 0  ;;  %v1820_v63 = vld [vmem:[%s2524_s8] ss:$0 sm:$0xff] }
 0x3c9   : > { %1956 = vmatpush3.bf16.msra.mxu1 %v1171_v0 }
 0x3ca   : > { %1967 = vmatprep.subr.bf16.mxu1 %v2122_v1 }
 0x3cc   : > { %1958 = vmatmul.mubr.msk.bf16.vlgmr.msra.gmra.mrb[24].mxu1 %vm634_vm2, %v1164_v3 }
 0x3cd   : > { %1968 = vmatpush3.bf16.msra.mxu1 %v1289_v4  ;;  %1969 = vmatprep.mubr.msk.bf16.mxu1 %vm2123_vm0, %v2122_v1 }
 0x3ce   : > { %1979 = vmatprep.subr.bf16.mxu1 %v2122_v1  ;;  %v2095_v14 = vpop.eup %2094 }
 0x3cf   : > { %v1517_v16 = vmul.f32 %v2095_v14, %v2415_v35 }
 0x3d1   : > { %v1518_v17 = vpack.c.bf16 %v1517_v16, %v1517_v16 }
 0x3d4   : > { %1970 = vmatmul.mubr.msk.bf16.vlgmr.msra.gmra.mrb[28].mxu1 %vm634_vm2, %v1282_v7 }
 0x3d5   : > { %1980 = vmatpush3.bf16.msra.mxu1 %v1407_v9  ;;  %1981 = vmatprep.mubr.msk.bf16.mxu1 %vm2123_vm0, %v2122_v1 }
 0x3d6   : > { %1991 = vmatprep.subr.bf16.mxu1 %v2122_v1 }
 0x3dc   : > { %1982 = vmatmul.mubr.msk.bf16.vlgmr.msra.gmra.mrb[32].mxu1 %vm634_vm2, %v1400_v13 }
 0x3dd   : > { %1992 = vmatpush3.bf16.msra.mxu1 %v1525_v15  ;;  %1993 = vmatprep.mubr.msk.bf16.mxu1 %vm2123_vm0, %v2122_v1 }
 0x3e4   : > { %1994 = vmatmul.mubr.msk.bf16.vlgmr.msra.gmra.mrb[36].mxu1 %vm634_vm2, %v1518_v17 }
 0x410   : > { %v739_v18 = vpop.f32.mrb[8].mxu1 }
 0x411   : > { %745 = vst.msk [vmem:[#allocation2] sm:$0xff] %vm634_vm2, %v739_v18  ;;  %v1911_v19 = vpop.f32.mrb[9].mxu1  ;;  %v1827_v18 = vld [vmem:[%s2526_s10] ss:$0 sm:$0xff] }
 0x412   : > { %v742_v20 = vpop.f32.mrb[10].mxu1 }
 0x413   : > { %v1912_v21 = vpop.f32.mrb[11].mxu1 }
 0x451   : > { %v853_v23 = vpop.f32.mrb[12].mxu1 }
 0x452   : > { %860 = vrot.lane.b32.xlu1 %v853_v23, %s2139_s16  ;;  %v1923_v24 = vpop.f32.mrb[13].mxu1 }
 0x453   : > { %v856_v25 = vpop.f32.mrb[14].mxu1 }
 0x454   : > { %v1924_v26 = vpop.f32.mrb[15].mxu1 }
 0x459   : > { %v971_v27 = vpop.f32.mrb[16].mxu1 }
 0x45a   : > { %978 = vrot.lane.b32.xlu1 %v971_v27, %s2138_s15  ;;  %v1935_v28 = vpop.f32.mrb[17].mxu1 }
 0x45b   : > { %v974_v29 = vpop.f32.mrb[18].mxu1 }
 0x45c   : > { %v1936_v30 = vpop.f32.mrb[19].mxu1 }
 0x486   : > { %v1089_v31 = vpop.f32.mrb[20].mxu1 }
 0x487   : > { %1096 = vrot.lane.b32.xlu0 %v1089_v31, %s2137_s14  ;;  %v1947_v32 = vpop.f32.mrb[21].mxu1 }
 0x488   : > { %v1092_v33 = vpop.f32.mrb[22].mxu1 }
 0x489   : > { %v1948_v34 = vpop.f32.mrb[23].mxu1 }
 0x49f   : > { %v1207_v35 = vpop.f32.mrb[24].mxu1 }
 0x4a0   : > { %1214 = vrot.lane.b32.xlu1 %v1207_v35, %s2140_s21  ;;  %v1959_v36 = vpop.f32.mrb[25].mxu1 }
 0x4a1   : > { %v1210_v37 = vpop.f32.mrb[26].mxu1 }
 0x4a2   : > { %v1960_v38 = vpop.f32.mrb[27].mxu1 }
 0x4a7   : > { %v1325_v41 = vpop.f32.mrb[28].mxu1 }
 0x4a8   : > { %1332 = vrot.lane.b32.xlu0 %v1325_v41, %s2136_s13  ;;  %v1971_v42 = vpop.f32.mrb[29].mxu1 }
 0x4a9   : > { %v1328_v43 = vpop.f32.mrb[30].mxu1 }
 0x4aa   : > { %v1972_v44 = vpop.f32.mrb[31].mxu1 }
 0x4af   : > { %v1443_v47 = vpop.f32.mrb[32].mxu1 }
 0x4b0   : > { %1450 = vrot.lane.b32.xlu1 %v1443_v47, %s2135_s30  ;;  %v1983_v22 = vpop.f32.mrb[33].mxu1 }
 0x4b1   : > { %v1446_v48 = vpop.f32.mrb[34].mxu1 }
 0x4b2   : > { %v1984_v49 = vpop.f32.mrb[35].mxu1 }
 0x4b7   : > { %v1561_v50 = vpop.f32.mrb[36].mxu1 }
 0x4b8   : > { %1568 = vrot.lane.b32.xlu0 %v1561_v50, %s2133_s17  ;;  %v1995_v51 = vpop.f32.mrb[37].mxu1 }
 0x4b9   : > { %v1564_v52 = vpop.f32.mrb[38].mxu1 }
 0x4ba   : > { %v1996_v53 = vpop.f32.mrb[39].mxu1 }
 0x4c4   : > { %v861_v54 = vpop.permute.xlu1 %860 }
 0x4c5   : > { %864 = vst.msk [vmem:[#allocation2] sm:$0xff] %vm863_vm8, %v861_v54 }
 0x4cc   : > { %v979_v55 = vpop.permute.xlu1 %978 }
 0x4cd   : > { %982 = vst.msk [vmem:[#allocation2] sm:$0xff] %vm981_vm9, %v979_v55 }
 0x4f9   : > { %v1097_v1 = vpop.permute.xlu0 %1096 }
 0x4fa   : > { %1100 = vst.msk [vmem:[#allocation2] sm:$0xff] %vm1099_vm10, %v1097_v1 }
 0x512   : > { %v1215_v56 = vpop.permute.xlu1 %1214 }
 0x513   : > { %1218 = vst.msk [vmem:[#allocation2] sm:$0xff] %vm1217_vm11, %v1215_v56 }
 0x51a   : > { %v1333_v57 = vpop.permute.xlu0 %1332 }
 0x51b   : > { %1336 = vst.msk [vmem:[#allocation2] sm:$0xff] %vm1335_vm12, %v1333_v57 }
 0x522   : > { %v1451_v58 = vpop.permute.xlu1 %1450 }
 0x523   : > { %1454 = vst.msk [vmem:[#allocation2] sm:$0xff] %vm1453_vm13, %v1451_v58 }
 0x52a   : > { %v1569_v60 = vpop.permute.xlu0 %1568 }
 0x52b   : > { %1572 = vst.msk [vmem:[#allocation2] sm:$0xff] %vm1571_vm14, %v1569_v60 }
 0x532   : > { %v1573_v61 = vld [vmem:[#allocation2] sm:$0xff] }
 0x533   : > { %v1574_v62 = vpack.c.bf16 %v1573_v61, %v1573_v61 }
 0x535   : > { %2006 = vmatmul.mubr.msk.bf16.vlgmr.msra.gmra.mrb[32].mxu0 %vm488_vm1, %v1574_v62 }
 0x608   : > { %v1651_v0 = vpop.f32.mrb[32].mxu0 }
 0x609   : > { %v1652_v2 = vadd.f32 %v1820_v63, %v1651_v0  ;;  %v2007_v3 = vpop.f32.mrb[33].mxu0 }
 0x60a   : > { %v1654_v59 = vpop.f32.mrb[34].mxu0 }
 0x60b   : > { %v2008_v4 = vpop.f32.mrb[35].mxu0  ;;  %v1657_v5 = vadd.f32 %v1652_v2, %v2266_v10  ;;  %v1826_v10 = vld [vmem:[%s2525_s9] ss:$0 sm:$0xff] }
 0x60d   : > { %v1660_v6 = vsel %vm488_vm1, %v1657_v5, 0.0 }
 0x60e   : > { %1661 = vadd.xlane.f32.xlu1 %v1660_v6 }
 0x69b   : > { %v1662_v7 = vpop.xlane.xlu1 %1661 }
 0x69c   : > { %v1664_v8 = vmul.f32 0.015625, %v1662_v7 }
 0x69e   : > { %v1665_v9 = vsub.f32 %v1657_v5, %v1664_v8 }
 0x6a0   : > { %v1666_v11 = vmul.f32 %v1665_v9, %v1665_v9 }
 0x6a2   : > { %v1667_v12 = vsel %vm488_vm1, %v1666_v11, 0.0 }
 0x6a3   : > { %1668 = vadd.xlane.f32.xlu0 %v1667_v12 }
 0x730   : > { %v1669_v13 = vpop.xlane.xlu0 %1668 }
 0x731   : > { %v1670_v14 = vmul.f32 0.015625, %v1669_v13 }
 0x733   : > { %v1671_v15 = vadd.f32 1e-12, %v1670_v14 }
 0x735   : > { %2096 = vrsqrt.f32 %v1671_v15 }
 0x73f   : > { %v2097_v16 = vpop.eup %2096 }
 0x740   : > { %v1673_v17 = vmul.f32 %v2097_v16, %v1665_v9 }
 0x742   : > { %v1680_v19 = vmul.f32 %v1826_v10, %v1673_v17 }
 0x744   : > { %v1687_v20 = vadd.f32 %v1827_v18, %v1680_v19 }
 0x746   : > { %1688 = vst.msk [vmem:[%s443_s23] sm:$0xff] %vm488_vm1, %v1687_v20 }
 0x747 PF: > { %s21_s19 = sadd.s32 1, %s2120_s19   ;;  %s2528_s17 = smov %s2116_s18 }
 0x748   : > { %p18_p5 = scmp.ge.s32.totalorder %s21_s19, 4   ;;  %s2529_s18 = smov %s2531_s20 }
 0x74a   :  { %20 = sbr.rel (!%p18_p5) target bundleno = 2 (0x2), region = 100 }

</bundles_post_ra>
